<compile_context>
chip_gen: v5e
topology: v5e:2x2
jax: 0.10.0
libtpu: 0.0.40
codegen_flags: <defaults>
</compile_context>

<pallas_src>
import functools

import jax
import jax.numpy as jnp
from jax.experimental import pallas as pl
from jax.experimental.pallas import tpu as pltpu


# --------------------------------------------------------------------------- #
# Kernels
# --------------------------------------------------------------------------- #
def vasp_trunk_kernel(x_ref, we1_ref, be1_ref, wmulv_ref, bmulv_ref,
                      wd1_ref, bd1_ref, mulv_ref, hd_ref):
    """Encoder + decoder layer 1 for one batch tile (tiny vs. the EASE path)."""
    x = x_ref[...]                                                     # (tmt, N) bf16
    h = jnp.tanh(
        jnp.dot(x, we1_ref[...], preferred_element_type=jnp.float32) + be1_ref[...])
    mulv = (jnp.dot(h.astype(wmulv_ref.dtype), wmulv_ref[...],
                    preferred_element_type=jnp.float32) + bmulv_ref[...])
    mulv_ref[...] = mulv                                               # (tmt, 2L) f32, lane-dense
    latent = wd1_ref.shape[0]
    mu = mulv[:, :latent]                                              # eval mode: z = mu
    hd = jnp.tanh(
        jnp.dot(mu.astype(wd1_ref.dtype), wd1_ref[...],
                preferred_element_type=jnp.float32) + bd1_ref[...])
    hd_ref[...] = hd.astype(hd_ref.dtype)                              # (tmt, H) bf16


def vasp_head_kernel(x_ref, hd_ref, wd2_ref, bd2_ref, wease_ref, y_ref):
    """Decoder output layer + EASE path for one (batch, item-column) tile."""
    x_pred = jax.nn.sigmoid(
        jnp.dot(hd_ref[...], wd2_ref[...], preferred_element_type=jnp.float32)
        + bd2_ref[...])
    x_ease = jax.nn.sigmoid(
        jnp.dot(x_ref[...], wease_ref[...], preferred_element_type=jnp.float32))
    y_ref[...] = (x_pred * x_ease).astype(y_ref.dtype)                 # bf16 store


# --------------------------------------------------------------------------- #
# Tiling helpers
# --------------------------------------------------------------------------- #
def _pick_divisor(dim, candidates):
    for c in candidates:
        if c <= dim and dim % c == 0:
            return c
    return dim


def _vmem_budget_bytes():
    # Per-generation budget: ~48 MiB on v7x (64 MiB physical per TC),
    # ~96 MiB on v5e/v6e (128 MiB physical).  Leave 25% headroom for
    # compiler / internal scratch instead of hard-coding the physical limit.
    try:
        phys = pltpu.get_tpu_info().vmem_capacity_bytes
    except Exception:
        phys = 64 * 1024 * 1024          # most conservative (v7x per-TensorCore)
    return int(phys) * 3 // 4


def _head_vmem_bytes(tm, tn, N, H):
    """Estimated VMEM footprint of the head kernel (default double-buffering)."""
    bf = 2
    return (2 * tm * N * bf              # x   (resident across the column sweep)
            + 2 * tm * H * bf            # hd
            + 2 * H * tn * bf            # wd2
            + 2 * tn * 4                 # bd2
            + 2 * N * tn * bf            # wease  (dominant HBM stream)
            + 2 * tm * tn * bf)          # y (bf16 output)


# --------------------------------------------------------------------------- #
# Forward wrapper
# --------------------------------------------------------------------------- #
@functools.partial(jax.jit, static_argnames=("tm", "tn"))
def vasp_forward(x, params, tm=None, tn=None):
    (we1, be1, wmu, bmu, wlv, blv, wd1, bd1, wd2, bd2, wease) = params
    B, N = x.shape
    H = we1.shape[1]
    L = wmu.shape[1]

    budget = _vmem_budget_bytes()

    # ---- tile selection ------------------------------------------------------
    if tn is None:
        tn = _pick_divisor(N, (256, 128))                   # MXU-width columns
        if N % 128 == 0 and _head_vmem_bytes(8, tn, N, H) > budget:
            tn = 128                                        # shrink wease block if tight
    if tm is None:
        # Largest batch tile (whole batch if possible) that fits the VMEM budget:
        # arithmetic intensity of the wease stream is exactly tm FLOP/byte.
        cands = [B] + [c for c in (2048, 1024, 512, 256, 128, 64, 32, 16, 8) if c < B]
        tm = B
        for c in cands:
            if B % c == 0 and _head_vmem_bytes(c, tn, N, H) <= budget:
                tm = c
                break
    assert B % tm == 0 and N % tn == 0, "batch / input_dim must divide tile sizes"

    wdt = jnp.bfloat16
    xb = x.astype(wdt)
    # Fuse mu / logvar heads into one (H, 2L) matmul -> single lane-dense store.
    # (L=64 in the demo keeps 2L a multiple of 128; pad L externally otherwise.)
    wmulv = jnp.concatenate([wmu, wlv], axis=1).astype(wdt)  # (H, 2L)
    bmulv = jnp.concatenate([bmu, blv], axis=1)              # (1, 2L) f32

    # ---- 1) trunk kernel: encoder + decoder layer 1 (negligible FLOPs) -------
    tmt = _pick_divisor(B, (512, 256, 128, 64, 32, 16, 8))
    trunk_flops = 2 * B * (N * H + H * 2 * L + L * H)
    trunk_bytes = (2 * (B * N + N * H + H * 2 * L + L * H + B * H)
                   + 4 * (2 * H + 2 * L) + 4 * B * 2 * L)
    mulv, hd = pl.pallas_call(
        vasp_trunk_kernel,
        out_shape=(
            jax.ShapeDtypeStruct((B, 2 * L), jnp.float32),   # mu || logvar
            jax.ShapeDtypeStruct((B, H), wdt),               # hd (decoder hidden)
        ),
        grid_spec=pltpu.PrefetchScalarGridSpec(
            num_scalar_prefetch=0,
            grid=(B // tmt,),
            in_specs=[
                pl.BlockSpec((tmt, N), lambda i: (i, 0)),        # x
                pl.BlockSpec((N, H), lambda i: (0, 0)),          # we1
                pl.BlockSpec((1, H), lambda i: (0, 0)),          # be1
                pl.BlockSpec((H, 2 * L), lambda i: (0, 0)),      # wmu || wlv
                pl.BlockSpec((1, 2 * L), lambda i: (0, 0)),      # bmu || blv
                pl.BlockSpec((L, H), lambda i: (0, 0)),          # wd1
                pl.BlockSpec((1, H), lambda i: (0, 0)),          # bd1
            ],
            out_specs=(
                pl.BlockSpec((tmt, 2 * L), lambda i: (i, 0)),
                pl.BlockSpec((tmt, H), lambda i: (i, 0)),
            ),
        ),
        compiler_params=pltpu.CompilerParams(
            dimension_semantics=("parallel",),
            vmem_limit_bytes=budget,
        ),
        cost_estimate=pl.CostEstimate(
            flops=trunk_flops,
            transcendentals=2 * B * H,
            bytes_accessed=trunk_bytes,
        ),
    )(xb, we1.astype(wdt), be1, wmulv, bmulv, wd1.astype(wdt), bd1)

    # ---- 2) head kernel: decoder output layer + EASE (dominant, O(B*N^2)) ----
    n_batch_tiles = B // tm
    head_flops = 2 * B * N * (H + N)
    head_bytes = (2 * (B * N + B * H)                              # x, hd (read once)
                  + n_batch_tiles * (2 * H * N + 4 * N + 2 * N * N)  # wd2/bd2/wease re-reads
                  + 2 * B * N)                                      # y (bf16 out)
    y = pl.pallas_call(
        vasp_head_kernel,
        out_shape=jax.ShapeDtypeStruct((B, N), wdt),               # bf16 output stream
        grid_spec=pltpu.PrefetchScalarGridSpec(
            num_scalar_prefetch=0,
            grid=(B // tm, N // tn),
            in_specs=[
                pl.BlockSpec((tm, N), lambda i, j: (i, 0)),        # x  (resident over j)
                pl.BlockSpec((tm, H), lambda i, j: (i, 0)),        # hd (resident over j)
                pl.BlockSpec((H, tn), lambda i, j: (0, j)),        # wd2   (column tiled)
                pl.BlockSpec((1, tn), lambda i, j: (0, j)),        # bd2   (column tiled)
                pl.BlockSpec((N, tn), lambda i, j: (0, j)),        # wease (column tiled)
            ],
            out_specs=pl.BlockSpec((tm, tn), lambda i, j: (i, j)),
        ),
        compiler_params=pltpu.CompilerParams(
            # All tiles are independent -> both axes parallel (v7x: 2 TensorCores).
            dimension_semantics=("parallel", "parallel"),
            vmem_limit_bytes=budget,
        ),
        cost_estimate=pl.CostEstimate(
            flops=head_flops,
            transcendentals=2 * B * N,
            bytes_accessed=head_bytes,
        ),
    )(xb, hd, wd2.astype(wdt), bd2, wease.astype(wdt))

    mu = mulv[:, :L]
    logvar = mulv[:, L:]
    return y, mu, logvar


# --------------------------------------------------------------------------- #
# Parameter init (matches the PyTorch module's init_weights / EASE init)
# --------------------------------------------------------------------------- #
def init_params(key, hidden_dim, latent_dim, input_dim):
    """xavier_normal_ weights, normal(0, 0.001) biases, EASE ~ N(0, 0.01) with
    zero diagonal (enforced at init; re-mask if loading external checkpoints)."""
    ks = jax.random.split(key, 11)

    def xavier(k, fan_in, fan_out):
        std = (2.0 / (fan_in + fan_out)) ** 0.5
        return std * jax.random.normal(k, (fan_in, fan_out), dtype=jnp.float32)

    def bias(k, n):
        return 0.001 * jax.random.normal(k, (1, n), dtype=jnp.float32)

    we1 = xavier(ks[0], input_dim, hidden_dim)
    be1 = bias(ks[1], hidden_dim)
    wmu = xavier(ks[2], hidden_dim, latent_dim)
    bmu = bias(ks[3], latent_dim)
    wlv = xavier(ks[4], hidden_dim, latent_dim)
    blv = bias(ks[5], latent_dim)
    wd1 = xavier(ks[6], latent_dim, hidden_dim)
    bd1 = bias(ks[7], hidden_dim)
    wd2 = xavier(ks[8], hidden_dim, input_dim)
    bd2 = bias(ks[9], input_dim)
    wease = 0.01 * jax.random.normal(ks[10], (input_dim, input_dim), dtype=jnp.float32)
    wease = wease * (1.0 - jnp.eye(input_dim, dtype=jnp.float32))
    return (we1, be1, wmu, bmu, wlv, blv, wd1, bd1, wd2, bd2, wease)


# --------------------------------------------------------------------------- #
# Demo / correctness check
# --------------------------------------------------------------------------- #
if __name__ == "__main__":
    hidden_dim, latent_dim, input_dim = 128, 64, 256
    batch = 128

    key = jax.random.PRNGKey(0)
    k_x, k_p = jax.random.split(key)
    # x is a (batch, input_dim) interaction matrix (binary implicit feedback).
    x = (jax.random.uniform(k_x, (batch, input_dim)) < 0.3).astype(jnp.float32)
    params = init_params(k_p, hidden_dim, latent_dim, input_dim)

    # Default tiles: tm = whole batch (maximal arithmetic intensity), tn = 256.
    y, mu, logvar = vasp_forward(x, params)
    jax.block_until_ready((y, mu, logvar))

    # Plain-JAX reference with the same bf16 operands / f32 accumulation.
    we1, be1, wmu, bmu, wlv, blv, wd1, bd1, wd2, bd2, wease = params
    bf = jnp.bfloat16
    xb = x.astype(bf)
    h_ref = jnp.tanh(jnp.dot(xb, we1.astype(bf), preferred_element_type=jnp.float32) + be1)
    mu_ref = jnp.dot(h_ref.astype(bf), wmu.astype(bf),
                     preferred_element_type=jnp.float32) + bmu
    lv_ref = jnp.dot(h_ref.astype(bf), wlv.astype(bf),
                     preferred_element_type=jnp.float32) + blv
    hd_ref = jnp.tanh(jnp.dot(mu_ref.astype(bf), wd1.astype(bf),
                              preferred_element_type=jnp.float32) + bd1)
    x_pred_ref = jax.nn.sigmoid(jnp.dot(hd_ref.astype(bf), wd2.astype(bf),
                                        preferred_element_type=jnp.float32) + bd2)
    x_ease_ref = jax.nn.sigmoid(jnp.dot(xb, wease.astype(bf),
                                        preferred_element_type=jnp.float32))
    y_ref = x_pred_ref * x_ease_ref

    assert jnp.allclose(y.astype(jnp.float32), y_ref, atol=1e-2), "y mismatch"
    assert jnp.allclose(mu, mu_ref, atol=2e-2), "mu mismatch"
    assert jnp.allclose(logvar, lv_ref, atol=2e-2), "logvar mismatch"

    # Multi-tile grid correctness check (exercises both grid axes; not a perf config).
    y_t, mu_t, lv_t = vasp_forward(x, params, tm=32, tn=128)
    jax.block_until_ready((y_t, mu_t, lv_t))
    assert jnp.allclose(y_t.astype(jnp.float32), y.astype(jnp.float32), atol=1e-2)
    assert jnp.allclose(mu_t, mu, atol=1e-3) and jnp.allclose(lv_t, logvar, atol=1e-3)

    print("KERNEL_OK")
</pallas_src>

<mosaic_0001>
module attributes {stable_mosaic.version = 11 : i64} {
  func.func @vasp_trunk_kernel(%arg0: i32, %arg1: memref<128x256xbf16, #tpu.memory_space<vmem>>, %arg2: memref<256x128xbf16, #tpu.memory_space<vmem>>, %arg3: memref<1x128xf32, #tpu.memory_space<vmem>>, %arg4: memref<128x128xbf16, #tpu.memory_space<vmem>>, %arg5: memref<1x128xf32, #tpu.memory_space<vmem>>, %arg6: memref<64x128xbf16, #tpu.memory_space<vmem>>, %arg7: memref<1x128xf32, #tpu.memory_space<vmem>>, %arg8: memref<128x128xf32, #tpu.memory_space<vmem>>, %arg9: memref<128x128xbf16, #tpu.memory_space<vmem>>) attributes {dimension_semantics = [#tpu.dimension_semantics<parallel>], iteration_bounds = array<i64: 1>, scalar_prefetch = 0 : i64, scratch_operands = 0 : i64, tpu.core_type = #tpu.core_type<tc>, window_params = [{transform_indices = @transform_0, window_bounds = array<i64: 128, 256>}, {pipeline_mode = #tpu.pipeline_mode<synchronous>, transform_indices = @transform_1, window_bounds = array<i64: 256, 128>}, {pipeline_mode = #tpu.pipeline_mode<synchronous>, transform_indices = @transform_2, window_bounds = array<i64: 1, 128>}, {pipeline_mode = #tpu.pipeline_mode<synchronous>, transform_indices = @transform_3, window_bounds = array<i64: 128, 128>}, {pipeline_mode = #tpu.pipeline_mode<synchronous>, transform_indices = @transform_4, window_bounds = array<i64: 1, 128>}, {pipeline_mode = #tpu.pipeline_mode<synchronous>, transform_indices = @transform_5, window_bounds = array<i64: 64, 128>}, {pipeline_mode = #tpu.pipeline_mode<synchronous>, transform_indices = @transform_6, window_bounds = array<i64: 1, 128>}, {transform_indices = @transform_7, window_bounds = array<i64: 128, 128>}, {transform_indices = @transform_8, window_bounds = array<i64: 128, 128>}]} {
    %c0 = arith.constant 0 : index
    %c0_0 = arith.constant 0 : index
    %0 = vector.load %arg1[%c0, %c0_0] : memref<128x256xbf16, #tpu.memory_space<vmem>>, vector<128x256xbf16>
    %c0_1 = arith.constant 0 : index
    %c0_2 = arith.constant 0 : index
    %1 = vector.load %arg2[%c0_1, %c0_2] : memref<256x128xbf16, #tpu.memory_space<vmem>>, vector<256x128xbf16>
    %cst = arith.constant dense<0.000000e+00> : vector<128x128xf32>
    %2 = tpu.matmul %0, %1, %cst {dimension_numbers = #tpu.dot_dimension_numbers<[1], [0], [0], [1], [0, 0, 1, 1], [], []>} : vector<128x256xbf16>, vector<256x128xbf16>, vector<128x128xf32> -> vector<128x128xf32>
    %c0_3 = arith.constant 0 : index
    %c0_4 = arith.constant 0 : index
    %3 = vector.load %arg3[%c0_3, %c0_4] : memref<1x128xf32, #tpu.memory_space<vmem>>, vector<1x128xf32>
    %4 = vector.broadcast %3 : vector<1x128xf32> to vector<128x128xf32>
    %5 = arith.addf %2, %4 : vector<128x128xf32>
    %6 = math.tanh %5 : vector<128x128xf32>
    %7 = arith.truncf %6 : vector<128x128xf32> to vector<128x128xbf16>
    %c0_5 = arith.constant 0 : index
    %c0_6 = arith.constant 0 : index
    %8 = vector.load %arg4[%c0_5, %c0_6] : memref<128x128xbf16, #tpu.memory_space<vmem>>, vector<128x128xbf16>
    %cst_7 = arith.constant dense<0.000000e+00> : vector<128x128xf32>
    %9 = tpu.matmul %7, %8, %cst_7 {dimension_numbers = #tpu.dot_dimension_numbers<[1], [0], [0], [1], [0, 0, 1, 1], [], []>} : vector<128x128xbf16>, vector<128x128xbf16>, vector<128x128xf32> -> vector<128x128xf32>
    %c0_8 = arith.constant 0 : index
    %c0_9 = arith.constant 0 : index
    %10 = vector.load %arg5[%c0_8, %c0_9] : memref<1x128xf32, #tpu.memory_space<vmem>>, vector<1x128xf32>
    %11 = vector.broadcast %10 : vector<1x128xf32> to vector<128x128xf32>
    %12 = arith.addf %9, %11 : vector<128x128xf32>
    %c0_10 = arith.constant 0 : index
    %c0_11 = arith.constant 0 : index
    %13 = vector.load %arg8[%c0_10, %c0_11] : memref<128x128xf32, #tpu.memory_space<vmem>>, vector<128x128xf32>
    tpu.vector_store %arg8[%c0_10, %c0_11], %12 {strides = array<i32>} : memref<128x128xf32, #tpu.memory_space<vmem>>, vector<128x128xf32>,
    %14 = vector.extract_strided_slice %12 {offsets = [0, 0], sizes = [128, 64], strides = [1, 1]} : vector<128x128xf32> to vector<128x64xf32>
    %15 = arith.truncf %14 : vector<128x64xf32> to vector<128x64xbf16>
    %c0_12 = arith.constant 0 : index
    %c0_13 = arith.constant 0 : index
    %16 = vector.load %arg6[%c0_12, %c0_13] : memref<64x128xbf16, #tpu.memory_space<vmem>>, vector<64x128xbf16>
    %cst_14 = arith.constant dense<0.000000e+00> : vector<128x128xf32>
    %17 = tpu.matmul %15, %16, %cst_14 {dimension_numbers = #tpu.dot_dimension_numbers<[1], [0], [0], [1], [0, 0, 1, 1], [], []>} : vector<128x64xbf16>, vector<64x128xbf16>, vector<128x128xf32> -> vector<128x128xf32>
    %c0_15 = arith.constant 0 : index
    %c0_16 = arith.constant 0 : index
    %18 = vector.load %arg7[%c0_15, %c0_16] : memref<1x128xf32, #tpu.memory_space<vmem>>, vector<1x128xf32>
    %19 = vector.broadcast %18 : vector<1x128xf32> to vector<128x128xf32>
    %20 = arith.addf %17, %19 : vector<128x128xf32>
    %21 = math.tanh %20 : vector<128x128xf32>
    %22 = arith.truncf %21 : vector<128x128xf32> to vector<128x128xbf16>
    %c0_17 = arith.constant 0 : index
    %c0_18 = arith.constant 0 : index
    %23 = vector.load %arg9[%c0_17, %c0_18] : memref<128x128xbf16, #tpu.memory_space<vmem>>, vector<128x128xbf16>
    tpu.vector_store %arg9[%c0_17, %c0_18], %22 {strides = array<i32>} : memref<128x128xbf16, #tpu.memory_space<vmem>>, vector<128x128xbf16>,
    return
  }
  func.func @transform_0(%arg0: i32) -> (i32, i32) {
    %c0_i32 = arith.constant 0 : i32
    %c0_i32_0 = arith.constant 0 : i32
    return %arg0, %c0_i32 : i32, i32
  }
  func.func @transform_1(%arg0: i32) -> (i32, i32) {
    %c0_i32 = arith.constant 0 : i32
    %c0_i32_0 = arith.constant 0 : i32
    %c0_i32_1 = arith.constant 0 : i32
    return %c0_i32, %c0_i32_0 : i32, i32
  }
  func.func @transform_2(%arg0: i32) -> (i32, i32) {
    %c0_i32 = arith.constant 0 : i32
    %c0_i32_0 = arith.constant 0 : i32
    %c0_i32_1 = arith.constant 0 : i32
    return %c0_i32, %c0_i32_0 : i32, i32
  }
  func.func @transform_3(%arg0: i32) -> (i32, i32) {
    %c0_i32 = arith.constant 0 : i32
    %c0_i32_0 = arith.constant 0 : i32
    %c0_i32_1 = arith.constant 0 : i32
    return %c0_i32, %c0_i32_0 : i32, i32
  }
  func.func @transform_4(%arg0: i32) -> (i32, i32) {
    %c0_i32 = arith.constant 0 : i32
    %c0_i32_0 = arith.constant 0 : i32
    %c0_i32_1 = arith.constant 0 : i32
    return %c0_i32, %c0_i32_0 : i32, i32
  }
  func.func @transform_5(%arg0: i32) -> (i32, i32) {
    %c0_i32 = arith.constant 0 : i32
    %c0_i32_0 = arith.constant 0 : i32
    %c0_i32_1 = arith.constant 0 : i32
    return %c0_i32, %c0_i32_0 : i32, i32
  }
  func.func @transform_6(%arg0: i32) -> (i32, i32) {
    %c0_i32 = arith.constant 0 : i32
    %c0_i32_0 = arith.constant 0 : i32
    %c0_i32_1 = arith.constant 0 : i32
    return %c0_i32, %c0_i32_0 : i32, i32
  }
  func.func @transform_7(%arg0: i32) -> (i32, i32) {
    %c0_i32 = arith.constant 0 : i32
    %c0_i32_0 = arith.constant 0 : i32
    return %arg0, %c0_i32 : i32, i32
  }
  func.func @transform_8(%arg0: i32) -> (i32, i32) {
    %c0_i32 = arith.constant 0 : i32
    %c0_i32_0 = arith.constant 0 : i32
    return %arg0, %c0_i32 : i32, i32
  }
}

module attributes {stable_mosaic.version = 11 : i64} {
  func.func @vasp_head_kernel(%arg0: i32, %arg1: i32, %arg2: memref<128x256xbf16, #tpu.memory_space<vmem>>, %arg3: memref<128x128xbf16, #tpu.memory_space<vmem>>, %arg4: memref<128x256xbf16, #tpu.memory_space<vmem>>, %arg5: memref<1x256xf32, #tpu.memory_space<vmem>>, %arg6: memref<256x256xbf16, #tpu.memory_space<vmem>>, %arg7: memref<128x256xbf16, #tpu.memory_space<vmem>>) attributes {dimension_semantics = [#tpu.dimension_semantics<parallel>, #tpu.dimension_semantics<parallel>], iteration_bounds = array<i64: 1, 1>, scalar_prefetch = 0 : i64, scratch_operands = 0 : i64, tpu.core_type = #tpu.core_type<tc>, window_params = [{transform_indices = @transform_0, window_bounds = array<i64: 128, 256>}, {transform_indices = @transform_1, window_bounds = array<i64: 128, 128>}, {transform_indices = @transform_2, window_bounds = array<i64: 128, 256>}, {transform_indices = @transform_3, window_bounds = array<i64: 1, 256>}, {transform_indices = @transform_4, window_bounds = array<i64: 256, 256>}, {transform_indices = @transform_5, window_bounds = array<i64: 128, 256>}]} {
    %c0 = arith.constant 0 : index
    %c0_0 = arith.constant 0 : index
    %0 = vector.load %arg3[%c0, %c0_0] : memref<128x128xbf16, #tpu.memory_space<vmem>>, vector<128x128xbf16>
    %c0_1 = arith.constant 0 : index
    %c0_2 = arith.constant 0 : index
    %1 = vector.load %arg4[%c0_1, %c0_2] : memref<128x256xbf16, #tpu.memory_space<vmem>>, vector<128x256xbf16>
    %cst = arith.constant dense<0.000000e+00> : vector<128x256xf32>
    %2 = tpu.matmul %0, %1, %cst {dimension_numbers = #tpu.dot_dimension_numbers<[1], [0], [0], [1], [0, 0, 1, 1], [], []>} : vector<128x128xbf16>, vector<128x256xbf16>, vector<128x256xf32> -> vector<128x256xf32>
    %c0_3 = arith.constant 0 : index
    %c0_4 = arith.constant 0 : index
    %3 = vector.load %arg5[%c0_3, %c0_4] : memref<1x256xf32, #tpu.memory_space<vmem>>, vector<1x256xf32>
    %4 = vector.broadcast %3 : vector<1x256xf32> to vector<128x256xf32>
    %5 = arith.addf %2, %4 : vector<128x256xf32>
    %6 = arith.negf %5 : vector<128x256xf32>
    %7 = math.exp %6 : vector<128x256xf32>
    %cst_5 = arith.constant 1.000000e+00 : f32
    %8 = vector.broadcast %cst_5 : f32 to vector<128x256xf32>
    %9 = arith.addf %8, %7 : vector<128x256xf32>
    %10 = arith.divf %8, %9 : vector<128x256xf32>
    %c0_6 = arith.constant 0 : index
    %c0_7 = arith.constant 0 : index
    %11 = vector.load %arg2[%c0_6, %c0_7] : memref<128x256xbf16, #tpu.memory_space<vmem>>, vector<128x256xbf16>
    %c0_8 = arith.constant 0 : index
    %c0_9 = arith.constant 0 : index
    %12 = vector.load %arg6[%c0_8, %c0_9] : memref<256x256xbf16, #tpu.memory_space<vmem>>, vector<256x256xbf16>
    %cst_10 = arith.constant dense<0.000000e+00> : vector<128x256xf32>
    %13 = tpu.matmul %11, %12, %cst_10 {dimension_numbers = #tpu.dot_dimension_numbers<[1], [0], [0], [1], [0, 0, 1, 1], [], []>} : vector<128x256xbf16>, vector<256x256xbf16>, vector<128x256xf32> -> vector<128x256xf32>
    %14 = arith.negf %13 : vector<128x256xf32>
    %15 = math.exp %14 : vector<128x256xf32>
    %cst_11 = arith.constant 1.000000e+00 : f32
    %16 = vector.broadcast %cst_11 : f32 to vector<128x256xf32>
    %17 = arith.addf %16, %15 : vector<128x256xf32>
    %18 = arith.divf %16, %17 : vector<128x256xf32>
    %19 = arith.mulf %10, %18 : vector<128x256xf32>
    %20 = arith.truncf %19 : vector<128x256xf32> to vector<128x256xbf16>
    %c0_12 = arith.constant 0 : index
    %c0_13 = arith.constant 0 : index
    %21 = vector.load %arg7[%c0_12, %c0_13] : memref<128x256xbf16, #tpu.memory_space<vmem>>, vector<128x256xbf16>
    tpu.vector_store %arg7[%c0_12, %c0_13], %20 {strides = array<i32>} : memref<128x256xbf16, #tpu.memory_space<vmem>>, vector<128x256xbf16>,
    return
  }
  func.func @transform_0(%arg0: i32, %arg1: i32) -> (i32, i32) {
    %c0_i32 = arith.constant 0 : i32
    %c0_i32_0 = arith.constant 0 : i32
    return %arg0, %c0_i32 : i32, i32
  }
  func.func @transform_1(%arg0: i32, %arg1: i32) -> (i32, i32) {
    %c0_i32 = arith.constant 0 : i32
    %c0_i32_0 = arith.constant 0 : i32
    return %arg0, %c0_i32 : i32, i32
  }
  func.func @transform_2(%arg0: i32, %arg1: i32) -> (i32, i32) {
    %c0_i32 = arith.constant 0 : i32
    %c0_i32_0 = arith.constant 0 : i32
    return %c0_i32, %arg1 : i32, i32
  }
  func.func @transform_3(%arg0: i32, %arg1: i32) -> (i32, i32) {
    %c0_i32 = arith.constant 0 : i32
    %c0_i32_0 = arith.constant 0 : i32
    return %c0_i32, %arg1 : i32, i32
  }
  func.func @transform_4(%arg0: i32, %arg1: i32) -> (i32, i32) {
    %c0_i32 = arith.constant 0 : i32
    %c0_i32_0 = arith.constant 0 : i32
    return %c0_i32, %arg1 : i32, i32
  }
  func.func @transform_5(%arg0: i32, %arg1: i32) -> (i32, i32) {
    %c0_i32 = arith.constant 0 : i32
    return %arg0, %arg1 : i32, i32
  }
}

</mosaic_0001>

<bundles_post_ra>
// kernel: vasp_forward.2
= control target key start
LH: loop header
LB: loop body
LE: loop exit
PB: predicated region body
PF: predicated region fallthrough
CT: control target
= control target key end

     0   :  { %vm556_vm0 = vcmask 523264   ;;  %s1396_s1 = inlined_call_operand.vmem [shape: bf16[256,128], index: 1, kind: input, shape index: {}]   ;;  %s1397_s2 = inlined_call_operand.vmem [shape: f32[1,128], index: 2, kind: input, shape index: {}]   ;;  %s1398_s0 = inlined_call_operand.vmem [shape: bf16[128,256], index: 0, kind: input, shape index: {}]   ;;  %s1399_s3 = inlined_call_operand.vmem [shape: bf16[128,128], index: 3, kind: input, shape index: {}]   ;;  %s1400_s4 = inlined_call_operand.vmem [shape: f32[1,128], index: 4, kind: input, shape index: {}]   ;;  %s1401_s5 = inlined_call_operand.vmem [shape: bf16[64,128], index: 5, kind: input, shape index: {}]   ;;  %s1402_s6 = inlined_call_operand.vmem [shape: f32[1,128], index: 6, kind: input, shape index: {}]   ;;  %s1403_s7 = inlined_call_operand.vmem [shape: f32[128,128], index: 7, kind: output, shape index: {0}]   ;;  %s1404_s8 = inlined_call_operand.vmem [shape: bf16[128,128], index: 8, kind: output, shape index: {1}]  }
   0x1   :  { %v893_v0 = vld [vmem:[%s1396_s1 + $0x38] sm:$0xff]  ;;  %v892_v2 = vld [vmem:[%s1396_s1 + $0x30] sm:$0xff]  ;;  %v891_v4 = vld [vmem:[%s1396_s1 + $0x28] sm:$0xff] }
   0x2   :  { %v901_v1 = vld [vmem:[%s1396_s1 + $0x78] sm:$0xff]  ;;  %257 = vmatpush.bf16.msra.mxu0 %v893_v0  ;;  %v900_v3 = vld [vmem:[%s1396_s1 + $0x70] sm:$0xff]  ;;  %v899_v5 = vld [vmem:[%s1396_s1 + $0x68] sm:$0xff] }
   0x3   :  { %306 = vmatpush.bf16.msra.mxu1 %v901_v1  ;;  %v890_v6 = vld [vmem:[%s1396_s1 + $0x20] sm:$0xff]  ;;  %v889_v8 = vld [vmem:[%s1396_s1 + $0x18] sm:$0xff]  ;;  %v888_v10 = vld [vmem:[%s1396_s1 + $0x10] sm:$0xff] }
   0x4   :  { %v898_v7 = vld [vmem:[%s1396_s1 + $0x60] sm:$0xff]  ;;  %v897_v9 = vld [vmem:[%s1396_s1 + $0x58] sm:$0xff]  ;;  %v896_v11 = vld [vmem:[%s1396_s1 + $0x50] sm:$0xff] }
   0x5   :  { %v887_v12 = vld [vmem:[%s1396_s1 + $0x8] sm:$0xff]  ;;  %v886_v14 = vld [vmem:[%s1396_s1] sm:$0xff]  ;;  %v696_v22 = vld [vmem:[%s1398_s0 + $0x10] sm:$0xf] }
   0x6   :  { %258 = vmatpush.bf16.msra.mxu0 %v892_v2  ;;  %v895_v13 = vld [vmem:[%s1396_s1 + $0x48] sm:$0xff]  ;;  %v894_v15 = vld [vmem:[%s1396_s1 + $0x40] sm:$0xff]  ;;  %v873_v23 = vld [vmem:[%s1398_s0 + $0x14] sm:$0xf0] }
   0x7   :  { %307 = vmatpush.bf16.msra.mxu1 %v900_v3  ;;  %v688_v16 = vld [vmem:[%s1398_s0] sm:$0xf]  ;;  %v871_v17 = vld [vmem:[%s1398_s0 + $0x4] sm:$0xf0]  ;;  %v870_v18 = vld [vmem:[%s1398_s0 + $0x4] sm:$0xf]  ;;  %v697_v26 = vor.u32 %v873_v23, %v696_v22 }
   0x8   :  { %v690_v19 = vld [vmem:[%s1398_s0 + $0x8] sm:$0xf0]  ;;  %v689_v20 = vor.u32 %v871_v17, %v688_v16  ;;  %v872_v24 = vld [vmem:[%s1398_s0 + $0x14] sm:$0xf]  ;;  %v698_v25 = vld [vmem:[%s1398_s0 + $0x18] sm:$0xf0] }
   0x9   :  { %v693_v21 = vor.u32 %v870_v18, %v690_v19  ;;  %v701_v27 = vor.u32 %v872_v24, %v698_v25  ;;  %v704_v28 = vld [vmem:[%s1398_s0 + $0x20] sm:$0xf]  ;;  %v875_v29 = vld [vmem:[%s1398_s0 + $0x24] sm:$0xf0]  ;;  %v874_v30 = vld [vmem:[%s1398_s0 + $0x24] sm:$0xf] }
   0xa   :  { %259 = vmatpush.bf16.msra.mxu0 %v891_v4  ;;  %v706_v31 = vld [vmem:[%s1398_s0 + $0x28] sm:$0xf0]  ;;  %v705_v32 = vor.u32 %v875_v29, %v704_v28  ;;  %v712_v34 = vld [vmem:[%s1398_s0 + $0x30] sm:$0xf]  ;;  %v877_v35 = vld [vmem:[%s1398_s0 + $0x34] sm:$0xf0] }
   0xb   :  { %308 = vmatpush.bf16.msra.mxu1 %v899_v5  ;;  %v709_v33 = vor.u32 %v874_v30, %v706_v31  ;;  %v876_v36 = vld [vmem:[%s1398_s0 + $0x34] sm:$0xf]  ;;  %v714_v37 = vld [vmem:[%s1398_s0 + $0x38] sm:$0xf0]  ;;  %v713_v38 = vor.u32 %v877_v35, %v712_v34  ;;  %v720_v40 = vld [vmem:[%s1398_s0 + $0x40] sm:$0xf] }
   0xc   :  { %v717_v39 = vor.u32 %v876_v36, %v714_v37  ;;  %v879_v41 = vld [vmem:[%s1398_s0 + $0x44] sm:$0xf0]  ;;  %v878_v42 = vld [vmem:[%s1398_s0 + $0x44] sm:$0xf]  ;;  %v722_v43 = vld [vmem:[%s1398_s0 + $0x48] sm:$0xf0] }
   0xd   :  { %v721_v44 = vor.u32 %v879_v41, %v720_v40  ;;  %v725_v45 = vor.u32 %v878_v42, %v722_v43  ;;  %v728_v46 = vld [vmem:[%s1398_s0 + $0x50] sm:$0xf]  ;;  %v881_v47 = vld [vmem:[%s1398_s0 + $0x54] sm:$0xf0]  ;;  %v880_v48 = vld [vmem:[%s1398_s0 + $0x54] sm:$0xf] }
   0xe   :  { %260 = vmatpush.bf16.msra.mxu0 %v890_v6  ;;  %v730_v49 = vld [vmem:[%s1398_s0 + $0x58] sm:$0xf0]  ;;  %v729_v50 = vor.u32 %v881_v47, %v728_v46  ;;  %v908_v53 = vld [vmem:[%s1399_s3 + $0x30] sm:$0xff]  ;;  %v907_v54 = vld [vmem:[%s1399_s3 + $0x28] sm:$0xff] }
   0xf   :  { %309 = vmatpush.bf16.msra.mxu1 %v898_v7  ;;  %v733_v51 = vor.u32 %v880_v48, %v730_v49  ;;  %v909_v52 = vld [vmem:[%s1399_s3 + $0x38] sm:$0xff]  ;;  %v736_v55 = vld [vmem:[%s1398_s0 + $0x60] sm:$0xf]  ;;  %v883_v56 = vld [vmem:[%s1398_s0 + $0x64] sm:$0xf0] }
  0x10   :  { %447 = vmatpush.bf16.msra.mxu2 %v909_v52  ;;  %v882_v57 = vld [vmem:[%s1398_s0 + $0x64] sm:$0xf]  ;;  %v738_v58 = vld [vmem:[%s1398_s0 + $0x68] sm:$0xf0]  ;;  %v737_v59 = vor.u32 %v883_v56, %v736_v55  ;;  %v905_v62 = vld [vmem:[%s1399_s3 + $0x18] sm:$0xff] }
  0x11   :  { %v741_v60 = vor.u32 %v882_v57, %v738_v58  ;;  %v906_v61 = vld [vmem:[%s1399_s3 + $0x20] sm:$0xff]  ;;  %v904_v63 = vld [vmem:[%s1399_s3 + $0x10] sm:$0xff]  ;;  %v885_v1 = vld [vmem:[%s1398_s0 + $0x74] sm:$0xf0] }
  0x12   :  { %261 = vmatpush.bf16.msra.mxu0 %v889_v8  ;;  %v744_v0 = vld [vmem:[%s1398_s0 + $0x70] sm:$0xf]  ;;  %v884_v2 = vld [vmem:[%s1398_s0 + $0x74] sm:$0xf]  ;;  %v746_v3 = vld [vmem:[%s1398_s0 + $0x78] sm:$0xf0] }
  0x13   :  { %310 = vmatpush.bf16.msra.mxu1 %v897_v9  ;;  %v903_v4 = vld [vmem:[%s1399_s3 + $0x8] sm:$0xff]  ;;  %v745_v5 = vor.u32 %v885_v1, %v744_v0  ;;  %v749_v6 = vor.u32 %v884_v2, %v746_v3  ;;  %v902_v7 = vld [vmem:[%s1399_s3] sm:$0xff] }
  0x14   :  { %448 = vmatpush.bf16.msra.mxu2 %v908_v53  ;;  %v1244_v8 = vld [vmem:[%s1397_s2] ss:$0 sm:$0xff] }
  0x16   :  { %262 = vmatpush.bf16.msra.mxu0 %v888_v10 }
  0x17   :  { %311 = vmatpush.bf16.msra.mxu1 %v896_v11 }
  0x18   :  { %449 = vmatpush.bf16.msra.mxu2 %v907_v54 }
  0x1a   :  { %263 = vmatpush.bf16.msra.mxu0 %v887_v12 }
  0x1b   :  { %312 = vmatpush.bf16.msra.mxu1 %v895_v13 }
  0x1c   :  { %450 = vmatpush.bf16.msra.mxu2 %v906_v61 }
  0x1e   :  { %264 = vmatpush.bf16.msra.mxu0 %v886_v14 }
  0x1f   :  { %313 = vmatpush.bf16.msra.mxu1 %v894_v15 }
  0x20   :  { %451 = vmatpush.bf16.msra.mxu2 %v905_v62 }
  0x21   :  { %265 = vmatmul.bf16.vlgmr.msra.gmra.mxu0 %v689_v20 }
  0x22   :  { %314 = vmatmul.bf16.vlgmr.msra.gmra.mxu1 %v693_v21 }
  0x24   :  { %452 = vmatpush.bf16.msra.mxu2 %v904_v63 }
  0x28   :  { %453 = vmatpush.bf16.msra.mxu2 %v903_v4 }
  0x2c   :  { %454 = vmatpush.bf16.msra.mxu2 %v902_v7 }
  0x31   :  { %270 = vmatmul.bf16.gmra.mxu0 %v697_v26 }
  0x32   :  { %319 = vmatmul.bf16.gmra.mxu1 %v701_v27 }
  0x41   :  { %275 = vmatmul.bf16.gmra.mxu0 %v705_v32 }
  0x42   :  { %324 = vmatmul.bf16.gmra.mxu1 %v709_v33 }
  0x51   :  { %280 = vmatmul.bf16.gmra.mxu0 %v713_v38 }
  0x52   :  { %329 = vmatmul.bf16.gmra.mxu1 %v717_v39 }
  0x61   :  { %285 = vmatmul.bf16.gmra.mxu0 %v721_v44 }
  0x62   :  { %334 = vmatmul.bf16.gmra.mxu1 %v725_v45 }
  0x71   :  { %290 = vmatmul.bf16.gmra.mxu0 %v729_v50 }
  0x72   :  { %339 = vmatmul.bf16.gmra.mxu1 %v733_v51 }
  0x81   :  { %295 = vmatmul.bf16.gmra.mxu0 %v737_v59 }
  0x82   :  { %344 = vmatmul.bf16.gmra.mxu1 %v741_v60 }
  0x91   :  { %300 = vmatmul.bf16.gmra.mxu0 %v745_v5 }
  0x92   :  { %349 = vmatmul.bf16.gmra.mxu1 %v749_v6 }
  0x9e   :  { %v266_v9 = vpop.f32.mrf.mxu0 }
  0x9f   :  { %v315_v10 = vpop.f32.mrf.mxu1  ;;  %v267_v11 = vadd.f32 %v1244_v8, %v266_v9 }
  0xa1   :  { %v316_v12 = vadd.f32 %v315_v10, %v267_v11 }
  0xa3   :  { %964 = vtanh.f32 %v316_v12 }
  0xa6   :  { %v268_v13 = vpop.f32.mrf.mxu0 }
  0xa7   :  { %v317_v14 = vpop.f32.mrf.mxu1  ;;  %v269_v15 = vadd.f32 %v1244_v8, %v268_v13 }
  0xa9   :  { %v318_v16 = vadd.f32 %v317_v14, %v269_v15  ;;  %v965_v19 = vpop.eup %964  ;;  %v913_v15 = vld [vmem:[%s1401_s5 + $0x18] sm:$0xff] }
  0xaa   :  { %585 = vmatpush.bf16.msra.mxu3 %v913_v15 }
  0xab   :  { %966 = vtanh.f32 %v318_v16 }
  0xae   :  { %v271_v17 = vpop.f32.mrf.mxu0 }
  0xaf   :  { %v320_v18 = vpop.f32.mrf.mxu1  ;;  %v272_v21 = vadd.f32 %v1244_v8, %v271_v17 }
  0xb1   :  { %v967_v20 = vpop.eup %966  ;;  %v321_v23 = vadd.f32 %v320_v18, %v272_v21 }
  0xb2   :  { %v371_v22 = vpack.c.bf16 %v967_v20, %v965_v19 }
  0xb3   :  { %968 = vtanh.f32 %v321_v23 }
  0xb4   :  { %455 = vmatmul.bf16.vlgmr.msra.gmra.mxu2 %v371_v22 }
  0xb6   :  { %v273_v24 = vpop.f32.mrf.mxu0 }
  0xb7   :  { %v322_v25 = vpop.f32.mrf.mxu1  ;;  %v274_v26 = vadd.f32 %v1244_v8, %v273_v24 }
  0xb9   :  { %v323_v27 = vadd.f32 %v322_v25, %v274_v26  ;;  %v969_v30 = vpop.eup %968 }
  0xbb   :  { %970 = vtanh.f32 %v323_v27 }
  0xbe   :  { %v276_v28 = vpop.f32.mrf.mxu0 }
  0xbf   :  { %v325_v29 = vpop.f32.mrf.mxu1  ;;  %v277_v32 = vadd.f32 %v1244_v8, %v276_v28 }
  0xc1   :  { %v971_v31 = vpop.eup %970  ;;  %v326_v34 = vadd.f32 %v325_v29, %v277_v32 }
  0xc2   :  { %v372_v33 = vpack.c.bf16 %v971_v31, %v969_v30  ;;  %v912_v30 = vld [vmem:[%s1401_s5 + $0x10] sm:$0xff] }
  0xc3   :  { %972 = vtanh.f32 %v326_v34  ;;  %586 = vmatpush.bf16.msra.mxu3 %v912_v30  ;;  %v910_v34 = vld [vmem:[%s1401_s5] sm:$0xff] }
  0xc4   :  { %460 = vmatmul.bf16.gmra.mxu2 %v372_v33  ;;  %v911_v33 = vld [vmem:[%s1401_s5 + $0x8] sm:$0xff] }
  0xc6   :  { %v278_v35 = vpop.f32.mrf.mxu0 }
  0xc7   :  { %v327_v36 = vpop.f32.mrf.mxu1  ;;  %v279_v37 = vadd.f32 %v1244_v8, %v278_v35  ;;  %587 = vmatpush.bf16.msra.mxu3 %v911_v33 }
  0xc9   :  { %v328_v38 = vadd.f32 %v327_v36, %v279_v37  ;;  %v973_v41 = vpop.eup %972  ;;  %v1277_v37 = vld [vmem:[%s1400_s4] ss:$0 sm:$0xff] }
  0xcb   :  { %974 = vtanh.f32 %v328_v38  ;;  %588 = vmatpush.bf16.msra.mxu3 %v910_v34 }
  0xce   :  { %v281_v39 = vpop.f32.mrf.mxu0 }
  0xcf   :  { %v330_v40 = vpop.f32.mrf.mxu1  ;;  %v282_v43 = vadd.f32 %v1244_v8, %v281_v39 }
  0xd1   :  { %v975_v42 = vpop.eup %974  ;;  %v331_v45 = vadd.f32 %v330_v40, %v282_v43 }
  0xd2   :  { %v373_v44 = vpack.c.bf16 %v975_v42, %v973_v41 }
  0xd3   :  { %976 = vtanh.f32 %v331_v45 }
  0xd4   :  { %465 = vmatmul.bf16.gmra.mxu2 %v373_v44 }
  0xd6   :  { %v283_v46 = vpop.f32.mrf.mxu0 }
  0xd7   :  { %v332_v47 = vpop.f32.mrf.mxu1  ;;  %v284_v48 = vadd.f32 %v1244_v8, %v283_v46 }
  0xd9   :  { %v333_v49 = vadd.f32 %v332_v47, %v284_v48  ;;  %v977_v52 = vpop.eup %976 }
  0xdb   :  { %978 = vtanh.f32 %v333_v49 }
  0xde   :  { %v286_v50 = vpop.f32.mrf.mxu0 }
  0xdf   :  { %v335_v51 = vpop.f32.mrf.mxu1  ;;  %v287_v54 = vadd.f32 %v1244_v8, %v286_v50 }
  0xe1   :  { %v979_v53 = vpop.eup %978  ;;  %v336_v56 = vadd.f32 %v335_v51, %v287_v54 }
  0xe2   :  { %v374_v55 = vpack.c.bf16 %v979_v53, %v977_v52 }
  0xe3   :  { %980 = vtanh.f32 %v336_v56 }
  0xe4   :  { %470 = vmatmul.bf16.gmra.mxu2 %v374_v55 }
  0xe6   :  { %v288_v57 = vpop.f32.mrf.mxu0 }
  0xe7   :  { %v337_v58 = vpop.f32.mrf.mxu1  ;;  %v289_v59 = vadd.f32 %v1244_v8, %v288_v57 }
  0xe9   :  { %v338_v60 = vadd.f32 %v337_v58, %v289_v59  ;;  %v981_v63 = vpop.eup %980 }
  0xeb   :  { %982 = vtanh.f32 %v338_v60 }
  0xee   :  { %v291_v61 = vpop.f32.mrf.mxu0 }
  0xef   :  { %v340_v62 = vpop.f32.mrf.mxu1  ;;  %v292_v1 = vadd.f32 %v1244_v8, %v291_v61 }
  0xf1   :  { %v983_v0 = vpop.eup %982  ;;  %v341_v3 = vadd.f32 %v340_v62, %v292_v1 }
  0xf2   :  { %v375_v2 = vpack.c.bf16 %v983_v0, %v981_v63 }
  0xf3   :  { %984 = vtanh.f32 %v341_v3 }
  0xf4   :  { %475 = vmatmul.bf16.gmra.mxu2 %v375_v2 }
  0xf6   :  { %v293_v4 = vpop.f32.mrf.mxu0 }
  0xf7   :  { %v342_v5 = vpop.f32.mrf.mxu1  ;;  %v294_v6 = vadd.f32 %v1244_v8, %v293_v4 }
  0xf9   :  { %v343_v7 = vadd.f32 %v342_v5, %v294_v6  ;;  %v985_v11 = vpop.eup %984 }
  0xfb   :  { %986 = vtanh.f32 %v343_v7 }
  0xfe   :  { %v296_v9 = vpop.f32.mrf.mxu0 }
  0xff   :  { %v345_v10 = vpop.f32.mrf.mxu1  ;;  %v297_v13 = vadd.f32 %v1244_v8, %v296_v9 }
 0x101   :  { %v987_v12 = vpop.eup %986  ;;  %v346_v16 = vadd.f32 %v345_v10, %v297_v13 }
 0x102   :  { %v376_v14 = vpack.c.bf16 %v987_v12, %v985_v11 }
 0x103   :  { %988 = vtanh.f32 %v346_v16  ;;  %v1354_v16 = vld [vmem:[%s1402_s6] ss:$0 sm:$0xff] }
 0x104   :  { %480 = vmatmul.bf16.gmra.mxu2 %v376_v14 }
 0x106   :  { %v298_v17 = vpop.f32.mrf.mxu0 }
 0x107   :  { %v347_v18 = vpop.f32.mrf.mxu1  ;;  %v299_v19 = vadd.f32 %v1244_v8, %v298_v17 }
 0x109   :  { %v348_v20 = vadd.f32 %v347_v18, %v299_v19  ;;  %v989_v23 = vpop.eup %988 }
 0x10b   :  { %990 = vtanh.f32 %v348_v20 }
 0x10e   :  { %v301_v21 = vpop.f32.mrf.mxu0 }
 0x10f   :  { %v350_v22 = vpop.f32.mrf.mxu1  ;;  %v302_v25 = vadd.f32 %v1244_v8, %v301_v21 }
 0x111   :  { %v991_v24 = vpop.eup %990  ;;  %v351_v27 = vadd.f32 %v350_v22, %v302_v25 }
 0x112   :  { %v377_v26 = vpack.c.bf16 %v991_v24, %v989_v23 }
 0x113   :  { %992 = vtanh.f32 %v351_v27 }
 0x114   :  { %485 = vmatmul.bf16.gmra.mxu2 %v377_v26 }
 0x116   :  { %v303_v28 = vpop.f32.mrf.mxu0 }
 0x117   :  { %v304_v29 = vadd.f32 %v1244_v8, %v303_v28  ;;  %v352_v31 = vpop.f32.mrf.mxu1 }
 0x119   :  { %v353_v32 = vadd.f32 %v352_v31, %v304_v29  ;;  %v993_v35 = vpop.eup %992 }
 0x11b   :  { %994 = vtanh.f32 %v353_v32 }
 0x121   :  { %v995_v8 = vpop.eup %994 }
 0x122   :  { %v378_v36 = vpack.c.bf16 %v995_v8, %v993_v35 }
 0x124   :  { %490 = vmatmul.bf16.gmra.mxu2 %v378_v36 }
 0x137   :  { %v456_v38 = vpop.f32.mrf.mxu2 }
 0x138   :  { %v457_v39 = vadd.f32 %v1277_v37, %v456_v38 }
 0x13a   :  { %496 = vst [vmem:[%s1403_s7] sm:$0xff] %v457_v39 }
 0x13f   :  { %v458_v40 = vpop.f32.mrf.mxu2 }
 0x140   :  { %v459_v41 = vadd.f32 %v1277_v37, %v458_v40 }
 0x142   :  { %497 = vst [vmem:[%s1403_s7 + $0x8] sm:$0xff] %v459_v41  ;;  %v512_v42 = vpack.c.bf16 %v459_v41, %v457_v39 }
 0x144   :  { %862 = vmatmul.msk.bf16.vlgmr.msra.gmra.mxu3 %vm556_vm0, %v512_v42 }
 0x147   :  { %v461_v43 = vpop.f32.mrf.mxu2 }
 0x148   :  { %v462_v44 = vadd.f32 %v1277_v37, %v461_v43 }
 0x14a   :  { %498 = vst [vmem:[%s1403_s7 + $0x10] sm:$0xff] %v462_v44 }
 0x14f   :  { %v463_v45 = vpop.f32.mrf.mxu2 }
 0x150   :  { %v464_v46 = vadd.f32 %v1277_v37, %v463_v45 }
 0x152   :  { %499 = vst [vmem:[%s1403_s7 + $0x18] sm:$0xff] %v464_v46  ;;  %v513_v47 = vpack.c.bf16 %v464_v46, %v462_v44 }
 0x154   :  { %863 = vmatmul.msk.bf16.gmra.mxu3 %vm556_vm0, %v513_v47 }
 0x157   :  { %v466_v48 = vpop.f32.mrf.mxu2 }
 0x158   :  { %v467_v49 = vadd.f32 %v1277_v37, %v466_v48 }
 0x15a   :  { %500 = vst [vmem:[%s1403_s7 + $0x20] sm:$0xff] %v467_v49 }
 0x15f   :  { %v468_v50 = vpop.f32.mrf.mxu2 }
 0x160   :  { %v469_v51 = vadd.f32 %v1277_v37, %v468_v50 }
 0x162   :  { %501 = vst [vmem:[%s1403_s7 + $0x28] sm:$0xff] %v469_v51  ;;  %v514_v52 = vpack.c.bf16 %v469_v51, %v467_v49 }
 0x164   :  { %864 = vmatmul.msk.bf16.gmra.mxu3 %vm556_vm0, %v514_v52 }
 0x167   :  { %v471_v53 = vpop.f32.mrf.mxu2 }
 0x168   :  { %v472_v54 = vadd.f32 %v1277_v37, %v471_v53 }
 0x16a   :  { %502 = vst [vmem:[%s1403_s7 + $0x30] sm:$0xff] %v472_v54 }
 0x16f   :  { %v473_v55 = vpop.f32.mrf.mxu2 }
 0x170   :  { %v474_v56 = vadd.f32 %v1277_v37, %v473_v55 }
 0x172   :  { %503 = vst [vmem:[%s1403_s7 + $0x38] sm:$0xff] %v474_v56  ;;  %v515_v57 = vpack.c.bf16 %v474_v56, %v472_v54 }
 0x174   :  { %865 = vmatmul.msk.bf16.gmra.mxu3 %vm556_vm0, %v515_v57 }
 0x177   :  { %v476_v58 = vpop.f32.mrf.mxu2 }
 0x178   :  { %v477_v59 = vadd.f32 %v1277_v37, %v476_v58 }
 0x17a   :  { %504 = vst [vmem:[%s1403_s7 + $0x40] sm:$0xff] %v477_v59 }
 0x17f   :  { %v478_v60 = vpop.f32.mrf.mxu2 }
 0x180   :  { %v479_v61 = vadd.f32 %v1277_v37, %v478_v60 }
 0x182   :  { %505 = vst [vmem:[%s1403_s7 + $0x48] sm:$0xff] %v479_v61  ;;  %v516_v62 = vpack.c.bf16 %v479_v61, %v477_v59 }
 0x184   :  { %866 = vmatmul.msk.bf16.gmra.mxu3 %vm556_vm0, %v516_v62 }
 0x187   :  { %v481_v63 = vpop.f32.mrf.mxu2 }
 0x188   :  { %v482_v0 = vadd.f32 %v1277_v37, %v481_v63 }
 0x18a   :  { %506 = vst [vmem:[%s1403_s7 + $0x50] sm:$0xff] %v482_v0 }
 0x18f   :  { %v483_v1 = vpop.f32.mrf.mxu2 }
 0x190   :  { %v484_v2 = vadd.f32 %v1277_v37, %v483_v1 }
 0x192   :  { %507 = vst [vmem:[%s1403_s7 + $0x58] sm:$0xff] %v484_v2  ;;  %v517_v3 = vpack.c.bf16 %v484_v2, %v482_v0 }
 0x194   :  { %867 = vmatmul.msk.bf16.gmra.mxu3 %vm556_vm0, %v517_v3 }
 0x197   :  { %v486_v4 = vpop.f32.mrf.mxu2 }
 0x198   :  { %v487_v5 = vadd.f32 %v1277_v37, %v486_v4 }
 0x19a   :  { %508 = vst [vmem:[%s1403_s7 + $0x60] sm:$0xff] %v487_v5 }
 0x19f   :  { %v488_v6 = vpop.f32.mrf.mxu2 }
 0x1a0   :  { %v489_v7 = vadd.f32 %v1277_v37, %v488_v6 }
 0x1a2   :  { %509 = vst [vmem:[%s1403_s7 + $0x68] sm:$0xff] %v489_v7  ;;  %v518_v9 = vpack.c.bf16 %v489_v7, %v487_v5 }
 0x1a4   :  { %868 = vmatmul.msk.bf16.gmra.mxu3 %vm556_vm0, %v518_v9 }
 0x1a7   :  { %v491_v10 = vpop.f32.mrf.mxu2 }
 0x1a8   :  { %v492_v11 = vadd.f32 %v1277_v37, %v491_v10 }
 0x1aa   :  { %510 = vst [vmem:[%s1403_s7 + $0x70] sm:$0xff] %v492_v11 }
 0x1af   :  { %v493_v12 = vpop.f32.mrf.mxu2 }
 0x1b0   :  { %v494_v13 = vadd.f32 %v1277_v37, %v493_v12 }
 0x1b2   :  { %511 = vst [vmem:[%s1403_s7 + $0x78] sm:$0xff] %v494_v13  ;;  %v519_v14 = vpack.c.bf16 %v494_v13, %v492_v11 }
 0x1b4   :  { %869 = vmatmul.msk.bf16.gmra.mxu3 %vm556_vm0, %v519_v14 }
 0x1c7   :  { %v590_v15 = vpop.f32.mrf.mxu3 }
 0x1c8   :  { %v591_v17 = vadd.f32 %v1354_v16, %v590_v15 }
 0x1ca   :  { %996 = vtanh.f32 %v591_v17 }
 0x1cf   :  { %v592_v18 = vpop.f32.mrf.mxu3 }
 0x1d0   :  { %v593_v19 = vadd.f32 %v1354_v16, %v592_v18  ;;  %v997_v20 = vpop.eup %996 }
 0x1d2   :  { %998 = vtanh.f32 %v593_v19 }
 0x1d7   :  { %v595_v21 = vpop.f32.mrf.mxu3 }
 0x1d8   :  { %v999_v22 = vpop.eup %998  ;;  %v596_v24 = vadd.f32 %v1354_v16, %v595_v21 }
 0x1d9   :  { %v917_v23 = vpack.c.bf16 %v999_v22, %v997_v20 }
 0x1da   :  { %1000 = vtanh.f32 %v596_v24 }
 0x1db   :  { %918 = vst [vmem:[%s1404_s8] sm:$0xff] %v917_v23  }
 0x1df   :  { %v597_v25 = vpop.f32.mrf.mxu3 }
 0x1e0   :  { %v598_v26 = vadd.f32 %v1354_v16, %v597_v25  ;;  %v1001_v27 = vpop.eup %1000 }
 0x1e2   :  { %1002 = vtanh.f32 %v598_v26 }
 0x1e7   :  { %v600_v28 = vpop.f32.mrf.mxu3 }
 0x1e8   :  { %v1003_v29 = vpop.eup %1002  ;;  %v601_v31 = vadd.f32 %v1354_v16, %v600_v28 }
 0x1e9   :  { %v922_v30 = vpack.c.bf16 %v1003_v29, %v1001_v27 }
 0x1ea   :  { %1004 = vtanh.f32 %v601_v31 }
 0x1eb   :  { %954 = vst [vmem:[%s1404_s8 + $0x8] sm:$0xff] %v922_v30  }
 0x1ef   :  { %v602_v32 = vpop.f32.mrf.mxu3 }
 0x1f0   :  { %v603_v33 = vadd.f32 %v1354_v16, %v602_v32  ;;  %v1005_v34 = vpop.eup %1004 }
 0x1f2   :  { %1006 = vtanh.f32 %v603_v33 }
 0x1f7   :  { %v605_v35 = vpop.f32.mrf.mxu3 }
 0x1f8   :  { %v1007_v8 = vpop.eup %1006  ;;  %v606_v37 = vadd.f32 %v1354_v16, %v605_v35 }
 0x1f9   :  { %v927_v36 = vpack.c.bf16 %v1007_v8, %v1005_v34 }
 0x1fa   :  { %1008 = vtanh.f32 %v606_v37 }
 0x1fb   :  { %955 = vst [vmem:[%s1404_s8 + $0x10] sm:$0xff] %v927_v36  }
 0x1ff   :  { %v607_v38 = vpop.f32.mrf.mxu3 }
 0x200   :  { %v608_v39 = vadd.f32 %v1354_v16, %v607_v38  ;;  %v1009_v40 = vpop.eup %1008 }
 0x202   :  { %1010 = vtanh.f32 %v608_v39 }
 0x207   :  { %v610_v41 = vpop.f32.mrf.mxu3 }
 0x208   :  { %v1011_v42 = vpop.eup %1010  ;;  %v611_v44 = vadd.f32 %v1354_v16, %v610_v41 }
 0x209   :  { %v932_v43 = vpack.c.bf16 %v1011_v42, %v1009_v40 }
 0x20a   :  { %1012 = vtanh.f32 %v611_v44 }
 0x20b   :  { %956 = vst [vmem:[%s1404_s8 + $0x18] sm:$0xff] %v932_v43  }
 0x20f   :  { %v612_v45 = vpop.f32.mrf.mxu3 }
 0x210   :  { %v613_v46 = vadd.f32 %v1354_v16, %v612_v45  ;;  %v1013_v47 = vpop.eup %1012 }
 0x212   :  { %1014 = vtanh.f32 %v613_v46 }
 0x217   :  { %v615_v48 = vpop.f32.mrf.mxu3 }
 0x218   :  { %v1015_v49 = vpop.eup %1014  ;;  %v616_v51 = vadd.f32 %v1354_v16, %v615_v48 }
 0x219   :  { %v937_v50 = vpack.c.bf16 %v1015_v49, %v1013_v47 }
 0x21a   :  { %1016 = vtanh.f32 %v616_v51 }
 0x21b   :  { %957 = vst [vmem:[%s1404_s8 + $0x20] sm:$0xff] %v937_v50  }
 0x21f   :  { %v617_v52 = vpop.f32.mrf.mxu3 }
 0x220   :  { %v618_v53 = vadd.f32 %v1354_v16, %v617_v52  ;;  %v1017_v54 = vpop.eup %1016 }
 0x222   :  { %1018 = vtanh.f32 %v618_v53 }
 0x227   :  { %v620_v55 = vpop.f32.mrf.mxu3 }
 0x228   :  { %v1019_v56 = vpop.eup %1018  ;;  %v621_v58 = vadd.f32 %v1354_v16, %v620_v55 }
 0x229   :  { %v942_v57 = vpack.c.bf16 %v1019_v56, %v1017_v54 }
 0x22a   :  { %1020 = vtanh.f32 %v621_v58 }
 0x22b   :  { %958 = vst [vmem:[%s1404_s8 + $0x28] sm:$0xff] %v942_v57  }
 0x22f   :  { %v622_v59 = vpop.f32.mrf.mxu3 }
 0x230   :  { %v623_v60 = vadd.f32 %v1354_v16, %v622_v59  ;;  %v1021_v61 = vpop.eup %1020 }
 0x232   :  { %1022 = vtanh.f32 %v623_v60 }
 0x237   :  { %v625_v62 = vpop.f32.mrf.mxu3 }
 0x238   :  { %v1023_v63 = vpop.eup %1022  ;;  %v626_v1 = vadd.f32 %v1354_v16, %v625_v62 }
 0x239   :  { %v947_v0 = vpack.c.bf16 %v1023_v63, %v1021_v61 }
 0x23a   :  { %1024 = vtanh.f32 %v626_v1 }
 0x23b   :  { %959 = vst [vmem:[%s1404_s8 + $0x30] sm:$0xff] %v947_v0  }
 0x23f   :  { %v627_v2 = vpop.f32.mrf.mxu3 }
 0x240   :  { %v628_v3 = vadd.f32 %v1354_v16, %v627_v2  ;;  %v1025_v4 = vpop.eup %1024 }
 0x242   :  { %1026 = vtanh.f32 %v628_v3 }
 0x248   :  { %v1027_v5 = vpop.eup %1026 }
 0x249   :  { %v952_v6 = vpack.c.bf16 %v1027_v5, %v1025_v4 }
 0x24b   :  { %960 = vst [vmem:[%s1404_s8 + $0x38] sm:$0xff] %v952_v6  }

// kernel: vasp_forward.3
= control target key start
LH: loop header
LB: loop body
LE: loop exit
PB: predicated region body
PF: predicated region fallthrough
CT: control target
= control target key end

     0   :  { %s5166_s0 = inlined_call_operand.vmem [shape: bf16[128,256], index: 0, kind: input, shape index: {}]   ;;  %s5167_s1 = inlined_call_operand.vmem [shape: bf16[128,128], index: 1, kind: input, shape index: {}]   ;;  %s5168_s2 = inlined_call_operand.vmem [shape: bf16[128,256], index: 2, kind: input, shape index: {}]   ;;  %s5169_s3 = inlined_call_operand.vmem [shape: f32[1,256], index: 3, kind: input, shape index: {}]   ;;  %s5170_s4 = inlined_call_operand.vmem [shape: bf16[256,256], index: 4, kind: input, shape index: {}]   ;;  %s5171_s5 = inlined_call_operand.hbm [shape: bf16[128,256], index: 5, kind: output, shape index: {}]  }
   0x1   :  { %v2157_v0 = vld [vmem:[%s5168_s2 + $0x70] sm:$0xf]  ;;  %v2442_v1 = vld [vmem:[%s5168_s2 + $0x74] sm:$0xf0]  ;;  %v2441_v2 = vld [vmem:[%s5168_s2 + $0x74] sm:$0xf] }
   0x2   :  { %v2158_v3 = vor.u32 %v2442_v1, %v2157_v0  ;;  %v2159_v4 = vld [vmem:[%s5168_s2 + $0x78] sm:$0xf0]  ;;  %v2149_v5 = vld [vmem:[%s5168_s2 + $0x60] sm:$0xf]  ;;  %v2440_v6 = vld [vmem:[%s5168_s2 + $0x64] sm:$0xf0] }
   0x3   :  { %v2162_v7 = vor.u32 %v2441_v2, %v2159_v4  ;;  %v2439_v8 = vld [vmem:[%s5168_s2 + $0x64] sm:$0xf]  ;;  %v2151_v9 = vld [vmem:[%s5168_s2 + $0x68] sm:$0xf0]  ;;  %v2150_v10 = vor.u32 %v2440_v6, %v2149_v5  ;;  %v2141_v12 = vld [vmem:[%s5168_s2 + $0x50] sm:$0xf] }
   0x4   :  { %187 = vmatpush.bf16.msra.mxu0 %v2158_v3  ;;  %2491 = vmatpush.bf16.msra.mxu2 %v2158_v3  ;;  %v2154_v11 = vor.u32 %v2439_v8, %v2151_v9  ;;  %v2438_v13 = vld [vmem:[%s5168_s2 + $0x54] sm:$0xf0]  ;;  %v2437_v14 = vld [vmem:[%s5168_s2 + $0x54] sm:$0xf]  ;;  %v2143_v15 = vld [vmem:[%s5168_s2 + $0x58] sm:$0xf0] }
   0x5   :  { %236 = vmatpush.bf16.msra.mxu1 %v2162_v7  ;;  %2499 = vmatpush.bf16.msra.mxu3 %v2162_v7  ;;  %v2142_v16 = vor.u32 %v2438_v13, %v2141_v12  ;;  %v2146_v17 = vor.u32 %v2437_v14, %v2143_v15  ;;  %v2133_v18 = vld [vmem:[%s5168_s2 + $0x40] sm:$0xf]  ;;  %v2436_v19 = vld [vmem:[%s5168_s2 + $0x44] sm:$0xf0]  ;;  %v2435_v20 = vld [vmem:[%s5168_s2 + $0x44] sm:$0xf] }
   0x6   :  { %v2135_v21 = vld [vmem:[%s5168_s2 + $0x48] sm:$0xf0]  ;;  %v2134_v22 = vor.u32 %v2436_v19, %v2133_v18  ;;  %v2125_v24 = vld [vmem:[%s5168_s2 + $0x30] sm:$0xf]  ;;  %v2434_v25 = vld [vmem:[%s5168_s2 + $0x34] sm:$0xf0] }
   0x7   :  { %v2138_v23 = vor.u32 %v2435_v20, %v2135_v21  ;;  %v2433_v26 = vld [vmem:[%s5168_s2 + $0x34] sm:$0xf]  ;;  %v2127_v27 = vld [vmem:[%s5168_s2 + $0x38] sm:$0xf0]  ;;  %v2126_v28 = vor.u32 %v2434_v25, %v2125_v24  ;;  %v2117_v30 = vld [vmem:[%s5168_s2 + $0x20] sm:$0xf] }
   0x8   :  { %188 = vmatpush.bf16.msra.mxu0 %v2150_v10  ;;  %2492 = vmatpush.bf16.msra.mxu2 %v2150_v10  ;;  %v2130_v29 = vor.u32 %v2433_v26, %v2127_v27  ;;  %v2432_v31 = vld [vmem:[%s5168_s2 + $0x24] sm:$0xf0]  ;;  %v2431_v32 = vld [vmem:[%s5168_s2 + $0x24] sm:$0xf]  ;;  %v2119_v33 = vld [vmem:[%s5168_s2 + $0x28] sm:$0xf0] }
   0x9   :  { %237 = vmatpush.bf16.msra.mxu1 %v2154_v11  ;;  %2500 = vmatpush.bf16.msra.mxu3 %v2154_v11 }
   0xc   :  { %189 = vmatpush.bf16.msra.mxu0 %v2142_v16  ;;  %2493 = vmatpush.bf16.msra.mxu2 %v2142_v16 }
   0xd   :  { %238 = vmatpush.bf16.msra.mxu1 %v2146_v17  ;;  %2501 = vmatpush.bf16.msra.mxu3 %v2146_v17 }
  0x10   :  { %190 = vmatpush.bf16.msra.mxu0 %v2134_v22  ;;  %2494 = vmatpush.bf16.msra.mxu2 %v2134_v22 }
  0x11   :  { %239 = vmatpush.bf16.msra.mxu1 %v2138_v23  ;;  %2502 = vmatpush.bf16.msra.mxu3 %v2138_v23 }
  0x12   :  { %10 = vsyncpa [#allocation3], 0  ;;  %v2118_v34 = vor.u32 %v2432_v31, %v2117_v30  ;;  %v2122_v35 = vor.u32 %v2431_v32, %v2119_v33  ;;  %v2109_v36 = vld [vmem:[%s5168_s2 + $0x10] sm:$0xf]  ;;  %v2430_v37 = vld [vmem:[%s5168_s2 + $0x14] sm:$0xf0] }
  0x13   :  { %v2429_v38 = vld [vmem:[%s5168_s2 + $0x14] sm:$0xf]  ;;  %v2111_v39 = vld [vmem:[%s5168_s2 + $0x18] sm:$0xf0]  ;;  %v2110_v40 = vor.u32 %v2430_v37, %v2109_v36  ;;  %v2101_v42 = vld [vmem:[%s5168_s2] sm:$0xf] }
  0x14   :  { %191 = vmatpush.bf16.msra.mxu0 %v2126_v28  ;;  %2495 = vmatpush.bf16.msra.mxu2 %v2126_v28  ;;  %v2114_v41 = vor.u32 %v2429_v38, %v2111_v39  ;;  %v2428_v43 = vld [vmem:[%s5168_s2 + $0x4] sm:$0xf0]  ;;  %v2427_v44 = vld [vmem:[%s5168_s2 + $0x4] sm:$0xf]  ;;  %v2103_v45 = vld [vmem:[%s5168_s2 + $0x8] sm:$0xf0] }
  0x15   :  { %240 = vmatpush.bf16.msra.mxu1 %v2130_v29  ;;  %2503 = vmatpush.bf16.msra.mxu3 %v2130_v29  ;;  %v2317_v46 = vld [vmem:[%s5170_s4 + $0x70] sm:$0xf]  ;;  %v2474_v47 = vld [vmem:[%s5170_s4 + $0x74] sm:$0xf0]  ;;  %v2102_v50 = vor.u32 %v2428_v43, %v2101_v42  ;;  %v2106_v51 = vor.u32 %v2427_v44, %v2103_v45  ;;  %v2419_v52 = vld [vmem:[%s5167_s1] sm:$0xff]  ;;  %s2055_s30 = sshll.u32 %s5171_s5, 4  ;;  %s2056_s30 = int_to_ptr.hbm [resolvable:$true] %s2055_s30 }
  0x16   :  { %v2381_v48 = vld [vmem:[%s5170_s4 + $0xf0] sm:$0xf]  ;;  %v2490_v49 = vld [vmem:[%s5170_s4 + $0xf4] sm:$0xf0]  ;;  %v2423_v53 = vld [vmem:[%s5167_s1 + $0x20] sm:$0xff]  ;;  %v2318_v56 = vor.u32 %v2474_v47, %v2317_v46  ;;  %s2793_s5 = smov 128  }
  0x17   :  { %v2473_v54 = vld [vmem:[%s5170_s4 + $0x74] sm:$0xf]  ;;  %v2319_v55 = vld [vmem:[%s5170_s4 + $0x78] sm:$0xf0]  ;;  %v2382_v57 = vor.u32 %v2490_v49, %v2381_v48  ;;  %v2309_v60 = vld [vmem:[%s5170_s4 + $0x60] sm:$0xf] }
  0x18   :  { %192 = vmatpush.bf16.msra.mxu0 %v2118_v34  ;;  %2496 = vmatpush.bf16.msra.mxu2 %v2118_v34  ;;  %v2489_v58 = vld [vmem:[%s5170_s4 + $0xf4] sm:$0xf]  ;;  %v2383_v59 = vld [vmem:[%s5170_s4 + $0xf8] sm:$0xf0]  ;;  %v2472_v61 = vld [vmem:[%s5170_s4 + $0x64] sm:$0xf0]  ;;  %v2322_v0 = vor.u32 %v2473_v54, %v2319_v55 }
  0x19   :  { %241 = vmatpush.bf16.msra.mxu1 %v2122_v35  ;;  %2504 = vmatpush.bf16.msra.mxu3 %v2122_v35  ;;  %v2373_v62 = vld [vmem:[%s5170_s4 + $0xe0] sm:$0xf]  ;;  %v2488_v63 = vld [vmem:[%s5170_s4 + $0xe4] sm:$0xf0]  ;;  %v2386_v1 = vor.u32 %v2489_v58, %v2383_v59  ;;  %v2471_v2 = vld [vmem:[%s5170_s4 + $0x64] sm:$0xf]  ;;  %v2310_v4 = vor.u32 %v2472_v61, %v2309_v60 }
  0x1a   :  { %v2311_v3 = vld [vmem:[%s5170_s4 + $0x68] sm:$0xf0]  ;;  %v2374_v5 = vor.u32 %v2488_v63, %v2373_v62  ;;  %v2487_v6 = vld [vmem:[%s5170_s4 + $0xe4] sm:$0xf]  ;;  %v2301_v8 = vld [vmem:[%s5170_s4 + $0x50] sm:$0xf] }
  0x1b   :  { %v2375_v7 = vld [vmem:[%s5170_s4 + $0xe8] sm:$0xf0]  ;;  %v2470_v9 = vld [vmem:[%s5170_s4 + $0x54] sm:$0xf0]  ;;  %v2365_v10 = vld [vmem:[%s5170_s4 + $0xd0] sm:$0xf]  ;;  %v2314_v12 = vor.u32 %v2471_v2, %v2311_v3 }
  0x1c   :  { %193 = vmatpush.bf16.msra.mxu0 %v2110_v40  ;;  %2497 = vmatpush.bf16.msra.mxu2 %v2110_v40  ;;  %v2486_v11 = vld [vmem:[%s5170_s4 + $0xd4] sm:$0xf0]  ;;  %v2378_v13 = vor.u32 %v2487_v6, %v2375_v7  ;;  %v2469_v14 = vld [vmem:[%s5170_s4 + $0x54] sm:$0xf]  ;;  %v2303_v15 = vld [vmem:[%s5170_s4 + $0x58] sm:$0xf0]  ;;  %v2302_v16 = vor.u32 %v2470_v9, %v2301_v8 }
  0x1d   :  { %242 = vmatpush.bf16.msra.mxu1 %v2114_v41  ;;  %2505 = vmatpush.bf16.msra.mxu3 %v2114_v41  ;;  %v2366_v17 = vor.u32 %v2486_v11, %v2365_v10  ;;  %v2485_v18 = vld [vmem:[%s5170_s4 + $0xd4] sm:$0xf]  ;;  %v2367_v19 = vld [vmem:[%s5170_s4 + $0xd8] sm:$0xf0]  ;;  %v2293_v20 = vld [vmem:[%s5170_s4 + $0x40] sm:$0xf]  ;;  %v2306_v24 = vor.u32 %v2469_v14, %v2303_v15 }
  0x1e   :  { %v2468_v21 = vld [vmem:[%s5170_s4 + $0x44] sm:$0xf0]  ;;  %v2357_v22 = vld [vmem:[%s5170_s4 + $0xc0] sm:$0xf]  ;;  %v2370_v25 = vor.u32 %v2485_v18, %v2367_v19  ;;  %v2467_v26 = vld [vmem:[%s5170_s4 + $0x44] sm:$0xf] }
  0x1f   :  { %v2484_v23 = vld [vmem:[%s5170_s4 + $0xc4] sm:$0xf0]  ;;  %v2295_v27 = vld [vmem:[%s5170_s4 + $0x48] sm:$0xf0]  ;;  %v2294_v28 = vor.u32 %v2468_v21, %v2293_v20  ;;  %v2483_v30 = vld [vmem:[%s5170_s4 + $0xc4] sm:$0xf] }
  0x20   :  { %194 = vmatpush.bf16.msra.mxu0 %v2102_v50  ;;  %2498 = vmatpush.bf16.msra.mxu2 %v2102_v50  ;;  %v2358_v29 = vor.u32 %v2484_v23, %v2357_v22  ;;  %v2359_v31 = vld [vmem:[%s5170_s4 + $0xc8] sm:$0xf0]  ;;  %v2285_v32 = vld [vmem:[%s5170_s4 + $0x30] sm:$0xf]  ;;  %v2466_v33 = vld [vmem:[%s5170_s4 + $0x34] sm:$0xf0]  ;;  %v2298_v38 = vor.u32 %v2467_v26, %v2295_v27 }
  0x21   :  { %243 = vmatpush.bf16.msra.mxu1 %v2106_v51  ;;  %2506 = vmatpush.bf16.msra.mxu3 %v2106_v51  ;;  %v2349_v34 = vld [vmem:[%s5170_s4 + $0xb0] sm:$0xf]  ;;  %v2482_v35 = vld [vmem:[%s5170_s4 + $0xb4] sm:$0xf0]  ;;  %v2420_v36 = vld [vmem:[%s5167_s1 + $0x8] sm:$0xff]  ;;  %v2362_v39 = vor.u32 %v2483_v30, %v2359_v31  ;;  %v2286_v42 = vor.u32 %v2466_v33, %v2285_v32  ;;  %s2794_s6 = smov 8  }
  0x22   :  { %v2424_v37 = vld [vmem:[%s5167_s1 + $0x28] sm:$0xff]  ;;  %v2465_v40 = vld [vmem:[%s5170_s4 + $0x34] sm:$0xf]  ;;  %v2287_v41 = vld [vmem:[%s5170_s4 + $0x38] sm:$0xf0]  ;;  %v2350_v43 = vor.u32 %v2482_v35, %v2349_v34 }
  0x23   :  { %195 = vmatmul.bf16.vlgmr.msra.gmra.mxu0 %v2419_v52  ;;  %215 = vmatmul.bf16.vlgmr.msra.gmra.mxu2 %v2423_v53  ;;  %v2481_v44 = vld [vmem:[%s5170_s4 + $0xb4] sm:$0xf]  ;;  %v2351_v45 = vld [vmem:[%s5170_s4 + $0xb8] sm:$0xf0]  ;;  %v2277_v46 = vld [vmem:[%s5170_s4 + $0x20] sm:$0xf]  ;;  %v2290_v50 = vor.u32 %v2465_v40, %v2287_v41 }
  0x24   :  { %1181 = vmatpush.bf16.msrb.mxu2 %v2318_v56  ;;  %244 = vmatmul.bf16.vlgmr.msra.gmra.mxu1 %v2419_v52  ;;  %v2464_v47 = vld [vmem:[%s5170_s4 + $0x24] sm:$0xf0]  ;;  %v2341_v48 = vld [vmem:[%s5170_s4 + $0xa0] sm:$0xf]  ;;  %v2354_v51 = vor.u32 %v2481_v44, %v2351_v45  ;;  %v2463_v52 = vld [vmem:[%s5170_s4 + $0x24] sm:$0xf] }
  0x25   :  { %1230 = vmatpush.bf16.msrb.mxu3 %v2382_v57  ;;  %1279 = vmatpush.bf16.msrb.mxu0 %v2322_v0  ;;  %v2480_v49 = vld [vmem:[%s5170_s4 + $0xa4] sm:$0xf0]  ;;  %v2279_v55 = vld [vmem:[%s5170_s4 + $0x28] sm:$0xf0]  ;;  %v2479_v56 = vld [vmem:[%s5170_s4 + $0xa4] sm:$0xf] }
  0x26   :  { %264 = vmatmul.bf16.vlgmr.msra.gmra.mxu3 %v2423_v53  ;;  %1328 = vmatpush.bf16.msrb.mxu1 %v2386_v1  ;;  %v2278_v53 = vor.u32 %v2464_v47, %v2277_v46  ;;  %v2342_v54 = vor.u32 %v2480_v49, %v2341_v48  ;;  %v2343_v57 = vld [vmem:[%s5170_s4 + $0xa8] sm:$0xf0]  ;;  %v2269_v58 = vld [vmem:[%s5170_s4 + $0x10] sm:$0xf]  ;;  %v2462_v59 = vld [vmem:[%s5170_s4 + $0x14] sm:$0xf0]  ;;  %v2282_v61 = vor.u32 %v2463_v52, %v2279_v55 }
  0x27   :  { %v2333_v60 = vld [vmem:[%s5170_s4 + $0x90] sm:$0xf]  ;;  %v2346_v62 = vor.u32 %v2479_v56, %v2343_v57  ;;  %v2478_v63 = vld [vmem:[%s5170_s4 + $0x94] sm:$0xf0]  ;;  %v2461_v0 = vld [vmem:[%s5170_s4 + $0x14] sm:$0xf]  ;;  %v2270_v2 = vor.u32 %v2462_v59, %v2269_v58 }
  0x28   :  { %1182 = vmatpush.bf16.msrb.mxu2 %v2310_v4  ;;  %v2271_v1 = vld [vmem:[%s5170_s4 + $0x18] sm:$0xf0]  ;;  %v2334_v3 = vor.u32 %v2478_v63, %v2333_v60  ;;  %v2477_v4 = vld [vmem:[%s5170_s4 + $0x94] sm:$0xf]  ;;  %v2261_v6 = vld [vmem:[%s5170_s4] sm:$0xf] }
  0x29   :  { %1231 = vmatpush.bf16.msrb.mxu3 %v2374_v5  ;;  %1280 = vmatpush.bf16.msrb.mxu0 %v2314_v12  ;;  %v2335_v5 = vld [vmem:[%s5170_s4 + $0x98] sm:$0xf0]  ;;  %v2460_v7 = vld [vmem:[%s5170_s4 + $0x4] sm:$0xf0]  ;;  %v2325_v8 = vld [vmem:[%s5170_s4 + $0x80] sm:$0xf]  ;;  %v2274_v10 = vor.u32 %v2461_v0, %v2271_v1 }
  0x2a   :  { %1329 = vmatpush.bf16.msrb.mxu1 %v2378_v13  ;;  %v2476_v9 = vld [vmem:[%s5170_s4 + $0x84] sm:$0xf0]  ;;  %v2338_v11 = vor.u32 %v2477_v4, %v2335_v5  ;;  %v2459_v12 = vld [vmem:[%s5170_s4 + $0x4] sm:$0xf]  ;;  %v2262_v13 = vor.u32 %v2460_v7, %v2261_v6  ;;  %v2263_v15 = vld [vmem:[%s5170_s4 + $0x8] sm:$0xf0] }
  0x2b   :  { %v2326_v14 = vor.u32 %v2476_v9, %v2325_v8  ;;  %v2266_v18 = vor.u32 %v2459_v12, %v2263_v15  ;;  %v2421_v20 = vld [vmem:[%s5167_s1 + $0x10] sm:$0xff]  ;;  %v2422_v22 = vld [vmem:[%s5167_s1 + $0x18] sm:$0xff]  ;;  %v2443_v26 = vld [vmem:[%s5166_s0 + $0x4] sm:$0xf] }
  0x2c   :  { %1183 = vmatpush.bf16.msrb.mxu2 %v2302_v16  ;;  %v2475_v16 = vld [vmem:[%s5170_s4 + $0x84] sm:$0xf]  ;;  %v2425_v21 = vld [vmem:[%s5167_s1 + $0x30] sm:$0xff]  ;;  %v2426_v23 = vld [vmem:[%s5167_s1 + $0x38] sm:$0xff] }
  0x2d   :  { %1232 = vmatpush.bf16.msrb.mxu3 %v2366_v17  ;;  %1281 = vmatpush.bf16.msrb.mxu0 %v2306_v24  ;;  %v2327_v17 = vld [vmem:[%s5170_s4 + $0x88] sm:$0xf0]  ;;  %v2197_v24 = vld [vmem:[%s5166_s0] sm:$0xf]  ;;  %v2205_v30 = vld [vmem:[%s5166_s0 + $0x10] sm:$0xf] }
  0x2e   :  { %1330 = vmatpush.bf16.msrb.mxu1 %v2370_v25  ;;  %v2330_v19 = vor.u32 %v2475_v16, %v2327_v17  ;;  %v2444_v25 = vld [vmem:[%s5166_s0 + $0x4] sm:$0xf0]  ;;  %v2199_v27 = vld [vmem:[%s5166_s0 + $0x8] sm:$0xf0]  ;;  %v2446_v31 = vld [vmem:[%s5166_s0 + $0x14] sm:$0xf0] }
  0x2f   :  { %v2445_v32 = vld [vmem:[%s5166_s0 + $0x14] sm:$0xf]  ;;  %v2207_v33 = vld [vmem:[%s5166_s0 + $0x18] sm:$0xf0]  ;;  %v2206_v34 = vor.u32 %v2446_v31, %v2205_v30  ;;  %v2229_v48 = vld [vmem:[%s5166_s0 + $0x40] sm:$0xf] }
  0x30   :  { %1184 = vmatpush.bf16.msrb.mxu2 %v2294_v28  ;;  %v2198_v28 = vor.u32 %v2444_v25, %v2197_v24  ;;  %v2210_v35 = vor.u32 %v2445_v32, %v2207_v33  ;;  %v2449_v44 = vld [vmem:[%s5166_s0 + $0x34] sm:$0xf]  ;;  %v2223_v45 = vld [vmem:[%s5166_s0 + $0x38] sm:$0xf0]  ;;  %v2452_v49 = vld [vmem:[%s5166_s0 + $0x44] sm:$0xf0] }
  0x31   :  { %1233 = vmatpush.bf16.msrb.mxu3 %v2358_v29  ;;  %1282 = vmatpush.bf16.msrb.mxu0 %v2298_v38  ;;  %v2202_v29 = vor.u32 %v2443_v26, %v2199_v27  ;;  %v2447_v38 = vld [vmem:[%s5166_s0 + $0x24] sm:$0xf]  ;;  %v2226_v47 = vor.u32 %v2449_v44, %v2223_v45  ;;  %v2230_v52 = vor.u32 %v2452_v49, %v2229_v48  ;;  %v2237_v0 = vld [vmem:[%s5166_s0 + $0x50] sm:$0xf]  ;;  %v2454_v1 = vld [vmem:[%s5166_s0 + $0x54] sm:$0xf0] }
  0x32   :  { %1331 = vmatpush.bf16.msrb.mxu1 %v2362_v39  ;;  %v2215_v39 = vld [vmem:[%s5166_s0 + $0x28] sm:$0xf0]  ;;  %v2453_v4 = vld [vmem:[%s5166_s0 + $0x54] sm:$0xf]  ;;  %v2239_v5 = vld [vmem:[%s5166_s0 + $0x58] sm:$0xf0]  ;;  %v2238_v8 = vor.u32 %v2454_v1, %v2237_v0 }
  0x33   :  { %200 = vmatmul.bf16.gmra.mxu0 %v2420_v36  ;;  %220 = vmatmul.bf16.gmra.mxu2 %v2424_v37  ;;  %v2218_v41 = vor.u32 %v2447_v38, %v2215_v39 }
  0x34   :  { %1185 = vmatpush.bf16.msrb.mxu2 %v2286_v42  ;;  %249 = vmatmul.bf16.gmra.mxu1 %v2420_v36  ;;  %v2213_v36 = vld [vmem:[%s5166_s0 + $0x20] sm:$0xf]  ;;  %v2221_v42 = vld [vmem:[%s5166_s0 + $0x30] sm:$0xf] }
  0x35   :  { %1234 = vmatpush.bf16.msrb.mxu3 %v2350_v43  ;;  %1283 = vmatpush.bf16.msrb.mxu0 %v2290_v50  ;;  %v2450_v43 = vld [vmem:[%s5166_s0 + $0x34] sm:$0xf0]  ;;  %v2451_v50 = vld [vmem:[%s5166_s0 + $0x44] sm:$0xf] }
  0x36   :  { %269 = vmatmul.bf16.gmra.mxu3 %v2424_v37  ;;  %1332 = vmatpush.bf16.msrb.mxu1 %v2354_v51  ;;  %v2448_v37 = vld [vmem:[%s5166_s0 + $0x24] sm:$0xf0]  ;;  %v2222_v46 = vor.u32 %v2450_v43, %v2221_v42  ;;  %v2231_v51 = vld [vmem:[%s5166_s0 + $0x48] sm:$0xf0] }
  0x37   :  { %v2214_v40 = vor.u32 %v2448_v37, %v2213_v36 }
  0x38   :  { %1186 = vmatpush.bf16.msrb.mxu2 %v2278_v53  ;;  %v2234_v53 = vor.u32 %v2451_v50, %v2231_v51 }
  0x39   :  { %1235 = vmatpush.bf16.msrb.mxu3 %v2342_v54  ;;  %1284 = vmatpush.bf16.msrb.mxu0 %v2282_v61  ;;  %v53_v54 = vld [vmem:[%s5169_s3] sm:$0x3] }
  0x3a   :  { %1333 = vmatpush.bf16.msrb.mxu1 %v2346_v62  ;;  %v3200_v55 = vperm.slane %v53_v54, 0  ;;  %v3202_v57 = vperm.slane %v53_v54, 1 }
  0x3c   :  { %1187 = vmatpush.bf16.msrb.mxu2 %v2270_v2 }
  0x3d   :  { %1236 = vmatpush.bf16.msrb.mxu3 %v2334_v3  ;;  %1285 = vmatpush.bf16.msrb.mxu0 %v2274_v10  ;;  %v2242_v10 = vor.u32 %v2453_v4, %v2239_v5 }
  0x3e   :  { %1334 = vmatpush.bf16.msrb.mxu1 %v2338_v11 }
  0x40   :  { %1188 = vmatpush.bf16.msrb.mxu2 %v2262_v13 }
  0x41   :  { %1237 = vmatpush.bf16.msrb.mxu3 %v2326_v14  ;;  %1286 = vmatpush.bf16.msrb.mxu0 %v2266_v18 }
  0x42   :  { %1335 = vmatpush.bf16.msrb.mxu1 %v2330_v19 }
  0x43   :  { %205 = vmatmul.bf16.gmra.mxu0 %v2421_v20  ;;  %225 = vmatmul.bf16.gmra.mxu2 %v2425_v21 }
  0x44   :  { %254 = vmatmul.bf16.gmra.mxu1 %v2421_v20 }
  0x46   :  { %274 = vmatmul.bf16.gmra.mxu3 %v2425_v21 }
  0x53   :  { %210 = vmatmul.bf16.gmra.mxu0 %v2422_v22  ;;  %230 = vmatmul.bf16.gmra.mxu2 %v2426_v23 }
  0x54   :  { %259 = vmatmul.bf16.gmra.mxu1 %v2422_v22 }
  0x56   :  { %279 = vmatmul.bf16.gmra.mxu3 %v2426_v23 }
  0x63   :  { %1189 = vmatmul.bf16.vlgmr.msrb.gmra.mxu2 %v2198_v28  ;;  %1287 = vmatmul.bf16.vlgmr.msrb.gmra.mxu0 %v2198_v28 }
  0x64   :  { %1336 = vmatmul.bf16.vlgmr.msrb.gmra.mxu1 %v2202_v29 }
  0x66   :  { %1238 = vmatmul.bf16.vlgmr.msrb.gmra.mxu3 %v2202_v29 }
  0x73   :  { %1194 = vmatmul.bf16.gmra.mxu2 %v2206_v34  ;;  %1292 = vmatmul.bf16.gmra.mxu0 %v2206_v34 }
  0x74   :  { %1341 = vmatmul.bf16.gmra.mxu1 %v2210_v35 }
  0x76   :  { %1243 = vmatmul.bf16.gmra.mxu3 %v2210_v35 }
  0x83   :  { %1199 = vmatmul.bf16.gmra.mxu2 %v2214_v40  ;;  %1297 = vmatmul.bf16.gmra.mxu0 %v2214_v40 }
  0x84   :  { %1346 = vmatmul.bf16.gmra.mxu1 %v2218_v41 }
  0x86   :  { %1248 = vmatmul.bf16.gmra.mxu3 %v2218_v41 }
  0x93   :  { %1204 = vmatmul.bf16.gmra.mxu2 %v2222_v46  ;;  %1302 = vmatmul.bf16.gmra.mxu0 %v2222_v46 }
  0x94   :  { %1351 = vmatmul.bf16.gmra.mxu1 %v2226_v47 }
  0x96   :  { %1253 = vmatmul.bf16.gmra.mxu3 %v2226_v47 }
  0xa0   :  { %v196_v56 = vpop.f32.mrf.mxu0 }
  0xa1   :  { %v245_v58 = vpop.f32.mrf.mxu1  ;;  %v197_v59 = vadd.f32 %v196_v56, %v3200_v55 }
  0xa2   :  { %v246_v60 = vadd.f32 %v245_v58, %v3202_v57 }
  0xa3   :  { %1209 = vmatmul.bf16.gmra.mxu2 %v2230_v52  ;;  %1307 = vmatmul.bf16.gmra.mxu0 %v2230_v52  ;;  %v2163_v63 = vmul.f32 -1.442695, %v197_v59 }
  0xa4   :  { %1356 = vmatmul.bf16.gmra.mxu1 %v2234_v53  ;;  %v2164_v2 = vmul.f32 -1.442695, %v246_v60 }
  0xa5   :  { %2510 = vpow2.f32 %v2163_v63 }
  0xa6   :  { %1258 = vmatmul.bf16.gmra.mxu3 %v2234_v53  ;;  %v216_v61 = vpop.f32.mrf.mxu2  ;;  %2512 = vpow2.f32 %v2164_v2 }
  0xa7   :  { %v217_v3 = vadd.f32 %v216_v61, %v3200_v55 }
  0xa8   :  { %v198_v7 = vpop.f32.mrf.mxu0 }
  0xa9   :  { %v265_v62 = vpop.f32.mrf.mxu3  ;;  %v247_v9 = vpop.f32.mrf.mxu1  ;;  %v2179_v11 = vmul.f32 -1.442695, %v217_v3  ;;  %v199_v12 = vadd.f32 %v198_v7, %v3200_v55 }
  0xaa   :  { %v266_v6 = vadd.f32 %v265_v62, %v3202_v57  ;;  %v248_v14 = vadd.f32 %v247_v9, %v3202_v57 }
  0xab   :  { %2514 = vpow2.f32 %v2179_v11  ;;  %v2165_v16 = vmul.f32 -1.442695, %v199_v12  ;;  %v2511_v17 = vpop.eup %2510 }
  0xac   :  { %v2180_v13 = vmul.f32 -1.442695, %v266_v6  ;;  %v2513_v18 = vpop.eup %2512  ;;  %v2166_v19 = vmul.f32 -1.442695, %v248_v14  ;;  %v3223_v21 = vadd.f32 1.0, %v2511_v17 }
  0xad   :  { %v3225_v22 = vadd.f32 1.0, %v2513_v18 }
  0xae   :  { %v218_v15 = vpop.f32.mrf.mxu2  ;;  %2516 = vpow2.f32 %v2180_v13  ;;  %v424_v48 = vand.u32 2147483648, %v3223_v21  ;;  %vm418_vm0 = vweird.f32 %v3223_v21  ;;  %v422_v53 = vand.u32 2147483647, %v3223_v21 }
  0xaf   :  { %v219_v20 = vadd.f32 %v218_v15, %v3200_v55  ;;  %2518 = vpow2.f32 %v2165_v16  ;;  %v439_v51 = vand.u32 2147483648, %v3225_v22  ;;  %v437_v56 = vand.u32 2147483647, %v3225_v22 }
  0xb0   :  { %2520 = vpow2.f32 %v2166_v19  ;;  %v201_v30 = vpop.f32.mrf.mxu0  ;;  %vm433_vm1 = vweird.f32 %v3225_v22  ;;  %v3272_v63 = vor.u32 1.1754944e-38, %v424_v48  ;;  %vm3299_vm4 = vcmp.eq.f32.partialorder %v422_v53, 8.507059e+37 }
  0xb1   :  { %v2515_v23 = vpop.eup %2514  ;;  %v2181_v24 = vmul.f32 -1.442695, %v219_v20  ;;  %2522 = vrcp.f32 %v3223_v21  ;;  %v267_v27 = vpop.f32.mrf.mxu3  ;;  %v202_v36 = vadd.f32 %v201_v30, %v3200_v55  ;;  %v3280_v4 = vor.u32 1.1754944e-38, %v439_v51 }
  0xb2   :  { %2524 = vrcp.f32 %v3225_v22  ;;  %v3229_v26 = vadd.f32 1.0, %v2515_v23  ;;  %v268_v32 = vadd.f32 %v267_v27, %v3202_v57  ;;  %v250_v34 = vpop.f32.mrf.mxu1  ;;  %vm3309_vm6 = vcmp.eq.f32.partialorder %v437_v56, 8.507059e+37 }
  0xb3   :  { %1214 = vmatmul.bf16.gmra.mxu2 %v2238_v8  ;;  %1312 = vmatmul.bf16.gmra.mxu0 %v2238_v8  ;;  %2526 = vpow2.f32 %v2181_v24  ;;  %v251_v41 = vadd.f32 %v250_v34, %v3202_v57  ;;  %v2167_v44 = vmul.f32 -1.442695, %v202_v36 }
  0xb4   :  { %1361 = vmatmul.bf16.gmra.mxu1 %v2242_v10  ;;  %v2517_v25 = vpop.eup %2516  ;;  %2528 = vrcp.f32 %v3229_v26  ;;  %v2182_v40 = vmul.f32 -1.442695, %v268_v32  ;;  %v664_v60 = vand.u32 2147483648, %v3229_v26  ;;  %v662_v5 = vand.u32 2147483647, %v3229_v26 }
  0xb5   :  { %v2519_v28 = vpop.eup %2518  ;;  %v3231_v29 = vadd.f32 1.0, %v2517_v25  ;;  %v2168_v49 = vmul.f32 -1.442695, %v251_v41  ;;  %vm658_vm5 = vweird.f32 %v3229_v26 }
  0xb6   :  { %1263 = vmatmul.bf16.gmra.mxu3 %v2242_v10  ;;  %v2521_v31 = vpop.eup %2520  ;;  %v3235_v33 = vadd.f32 1.0, %v2519_v28  ;;  %v221_v52 = vpop.f32.mrf.mxu2  ;;  %v3288_v12 = vor.u32 1.1754944e-38, %v664_v60  ;;  %vm3346_vm13 = vcmp.eq.f32.partialorder %v662_v5, 8.507059e+37 }
  0xb7   :  { %v3237_v35 = vpop.eup %2522  ;;  %2530 = vrcp.f32 %v3231_v29  ;;  %v3243_v38 = vadd.f32 1.0, %v2521_v31  ;;  %v679_v0 = vand.u32 2147483648, %v3231_v29  ;;  %v222_v1 = vadd.f32 %v221_v52, %v3200_v55 }
  0xb8   :  { %v3241_v37 = vpop.eup %2524  ;;  %v414_v42 = vmul.f32 %v3237_v35, %v3223_v21  ;;  %2532 = vrcp.f32 %v3235_v33  ;;  %vm419_vm2 = vweird.f32 %v3237_v35  ;;  %v203_v6 = vpop.f32.mrf.mxu0  ;;  %v677_v14 = vand.u32 2147483647, %v3231_v29 }
  0xb9   :  { %v2527_v39 = vpop.eup %2526  ;;  %v429_v43 = vmul.f32 %v3241_v37, %v3225_v22  ;;  %2534 = vrcp.f32 %v3243_v38  ;;  %v270_v62 = vpop.f32.mrf.mxu3  ;;  %vm434_vm3 = vweird.f32 %v3241_v37  ;;  %v3291_v16 = vor.u32 1.1754944e-38, %v679_v0  ;;  %vm3324_vm10 = vmor %vm418_vm0, %vm419_vm2 }
  0xba   :  { %v3251_v45 = vpop.eup %2528  ;;  %v3254_v46 = vadd.f32 1.0, %v2527_v39  ;;  %2536 = vpow2.f32 %v2182_v40  ;;  %v415_v50 = vsub.f32 1.0, %v414_v42  ;;  %v271_v10 = vadd.f32 %v270_v62, %v3202_v57  ;;  %v252_v30 = vpop.f32.mrf.mxu1  ;;  %vm3342_vm12 = vmor %vm433_vm1, %vm434_vm3 }
  0xbb   :  { %v430_v54 = vsub.f32 1.0, %v429_v43  ;;  %2538 = vpow2.f32 %v2167_v44  ;;  %v654_v59 = vmul.f32 %v3251_v45, %v3229_v26  ;;  %v2183_v18 = vmul.f32 -1.442695, %v222_v1 }
  0xbc   :  { %2540 = vrcp.f32 %v3254_v46  ;;  %v416_v3 = vmul.f32 %v3237_v35, %v415_v50  ;;  %v204_v19 = vadd.f32 %v203_v6, %v3200_v55  ;;  %v452_v25 = vand.u32 2147483647, %v3235_v33 }
  0xbd   :  { %v3256_v47 = vpop.eup %2530  ;;  %2542 = vpow2.f32 %v2168_v49  ;;  %v431_v8 = vmul.f32 %v3241_v37, %v430_v54  ;;  %v655_v11 = vsub.f32 1.0, %v654_v59  ;;  %v454_v27 = vand.u32 2147483648, %v3235_v33 }
  0xbe   :  { %v3263_v58 = vpop.eup %2532  ;;  %v669_v61 = vmul.f32 %v3256_v47, %v3231_v29  ;;  %v417_v23 = vadd.f32 %v3237_v35, %v416_v3  ;;  %vm659_vm7 = vweird.f32 %v3251_v45  ;;  %vm673_vm8 = vweird.f32 %v3231_v29  ;;  %v223_v43 = vpop.f32.mrf.mxu2 }
  0xbf   :  { %v3276_v2 = vpop.eup %2534  ;;  %v444_v9 = vmul.f32 %v3263_v58, %v3235_v33  ;;  %v432_v32 = vadd.f32 %v3241_v37, %v431_v8  ;;  %v2184_v39 = vmul.f32 -1.442695, %v271_v10  ;;  %v656_v40 = vmul.f32 %v3251_v45, %v655_v11  ;;  %vm3380_vm1 = vmor %vm658_vm5, %vm659_vm7 }
  0xc0   :  { %v2537_v7 = vpop.eup %2536  ;;  %v670_v13 = vsub.f32 1.0, %v669_v61  ;;  %v459_v17 = vmul.f32 %v3276_v2, %v3243_v38  ;;  %vm674_vm9 = vweird.f32 %v3256_v47  ;;  %vm448_vm11 = vweird.f32 %v3235_v33 }
  0xc1   :  { %v2539_v15 = vpop.eup %2538  ;;  %v3306_v28 = vadd.f32 1.0, %v2537_v7  ;;  %v445_v36 = vsub.f32 1.0, %v444_v9  ;;  %2544 = vpow2.f32 %v2183_v18  ;;  %v2169_v49 = vmul.f32 -1.442695, %v204_v19  ;;  %vm3400_vm3 = vmor %vm673_vm8, %vm674_vm9  ;;  %v272_v29 = vpop.f32.mrf.mxu3 }
  0xc2   :  { %v3296_v20 = vpop.eup %2540  ;;  %v671_v41 = vmul.f32 %v3256_v47, %v670_v13  ;;  %v3318_v42 = vadd.f32 1.0, %v2539_v15  ;;  %v460_v48 = vsub.f32 1.0, %v459_v17  ;;  %v253_v50 = vadd.f32 %v252_v30, %v3202_v57 }
  0xc3   :  { %v2543_v31 = vpop.eup %2542  ;;  %v421_v51 = vsel %vm3324_vm10, %v3237_v35, %v417_v23  ;;  %v684_v52 = vmul.f32 %v3296_v20, %v3254_v46  ;;  %2546 = vrcp.f32 %v3306_v28  ;;  %vm3350_vm14 = vcmp.eq.f32.partialorder %v677_v14, 8.507059e+37  ;;  %v2245_v35 = vld [vmem:[%s5166_s0 + $0x60] sm:$0xf]  ;;  %v2253_v23 = vld [vmem:[%s5166_s0 + $0x70] sm:$0xf] }
  0xc4   :  { %v3336_v21 = vadd.f32 1.0, %v2543_v31  ;;  %v446_v56 = vmul.f32 %v3263_v58, %v445_v36  ;;  %v455_v59 = vor.u32 1.1754944e-38, %v454_v27  ;;  %2548 = vpow2.f32 %v2184_v39  ;;  %v206_v27 = vpop.f32.mrf.mxu0 }
  0xc5   :  { %v224_v60 = vadd.f32 %v223_v43, %v3200_v55  ;;  %v436_v22 = vsel %vm3342_vm12, %v3241_v37, %v432_v32  ;;  %v657_v61 = vadd.f32 %v3251_v45, %v656_v40  ;;  %v467_v62 = vand.u32 2147483647, %v3243_v38  ;;  %v255_v43 = vpop.f32.mrf.mxu1 }
  0xc6   :  { %2550 = vrcp.f32 %v3318_v42  ;;  %v672_v0 = vadd.f32 %v3256_v47, %v671_v41  ;;  %vm3363_vm15 = vcmp.eq.f32.partialorder %v452_v25, 8.507059e+37  ;;  %v461_v3 = vmul.f32 %v3276_v2, %v460_v48  ;;  %v226_v14 = vpop.f32.mrf.mxu2 }
  0xc7   :  { %2552 = vpow2.f32 %v2169_v49  ;;  %v2170_v5 = vmul.f32 -1.442695, %v253_v50  ;;  %vm463_vm0 = vweird.f32 %v3243_v38  ;;  %v469_v37 = vand.u32 2147483648, %v3243_v38  ;;  %v2545_v7 = vpop.eup %2544 }
  0xc8   :  { %v685_v6 = vsub.f32 1.0, %v684_v52  ;;  %2554 = vrcp.f32 %v3336_v21  ;;  %v3374_v8 = vsel %vm3299_vm4, %v3272_v63, %v421_v51  ;;  %v447_v10 = vadd.f32 %v3263_v58, %v446_v56  ;;  %v2456_v56 = vld [vmem:[%s5166_s0 + $0x64] sm:$0xf0] }
  0xc9   :  { %vm449_vm2 = vweird.f32 %v3263_v58  ;;  %v2185_v11 = vmul.f32 -1.442695, %v224_v60  ;;  %v3386_v13 = vpop.eup %2546  ;;  %v3391_v63 = vsel %vm3309_vm6, %v3280_v4, %v436_v22  ;;  %v661_v26 = vsel %vm3380_vm1, %v3251_v45, %v657_v61 }
  0xca   :  { %vm464_vm4 = vweird.f32 %v3276_v2  ;;  %vm3405_vm5 = vcmp.eq.f32.partialorder %v467_v62, 8.507059e+37  ;;  %v2549_v4 = vpop.eup %2548  ;;  %v676_v17 = vsel %vm3400_vm3, %v3256_v47, %v672_v0  ;;  %v462_v45 = vadd.f32 %v3276_v2, %v461_v3  ;;  %vm3420_vm6 = vmor %vm448_vm11, %vm449_vm2 }
  0xcb   :  { %v694_v18 = vand.u32 2147483648, %v3254_v46  ;;  %2556 = vpow2.f32 %v2170_v5  ;;  %v470_v24 = vor.u32 1.1754944e-38, %v469_v37  ;;  %v686_v25 = vmul.f32 %v3296_v20, %v685_v6  ;;  %vm3450_vm8 = vmor %vm463_vm0, %vm464_vm4  ;;  %v2247_v6 = vld [vmem:[%s5166_s0 + $0x68] sm:$0xf0] }
  0xcc   :  { %v3414_v19 = vpop.eup %2550  ;;  %vm688_vm7 = vweird.f32 %v3254_v46  ;;  %v692_v47 = vand.u32 2147483647, %v3254_v46  ;;  %v451_v31 = vsel %vm3420_vm6, %v3263_v58, %v447_v10  ;;  %v699_v33 = vmul.f32 %v3386_v13, %v3306_v28 }
  0xcd   :  { %v2553_v30 = vpop.eup %2552  ;;  %v3432_v32 = vadd.f32 1.0, %v2545_v7  ;;  %2558 = vpow2.f32 %v2185_v11  ;;  %v3439_v36 = vsel %vm3346_vm13, %v3288_v12, %v661_v26  ;;  %v3444_v39 = vsel %vm3350_vm14, %v3291_v16, %v676_v17  ;;  %v275_v17 = vpop.f32.mrf.mxu3 }
  0xce   :  { %v3434_v34 = vpop.eup %2554  ;;  %5205 = vst [vmem:[#allocation5_spill] sm:$0xff] %v3439_v36  ;;  %v709_v40 = vand.u32 2147483648, %v3306_v28  ;;  %v273_v41 = vadd.f32 %v272_v29, %v3202_v57  ;;  %v466_v12 = vsel %vm3450_vm8, %v3276_v2, %v462_v45  ;;  %v695_v44 = vor.u32 1.1754944e-38, %v694_v18 }
  0xcf   :  { %5206 = vst [vmem:[#allocation6_spill] sm:$0xff] %v3444_v39  ;;  %v474_v16 = vmul.f32 %v3414_v19, %v3318_v42  ;;  %v207_v48 = vadd.f32 %v206_v27, %v3200_v55  ;;  %v3464_v38 = vsel %vm3363_vm15, %v455_v59, %v451_v31  ;;  %v687_v49 = vadd.f32 %v3296_v20, %v686_v25  ;;  %v2455_v59 = vld [vmem:[%s5166_s0 + $0x64] sm:$0xf]  ;;  %v3533_v27 = vpop.f32.mrf.mxu0 }
  0xd0   :  { %vm689_vm9 = vweird.f32 %v3296_v20  ;;  %vm3468_vm10 = vcmp.eq.f32.partialorder %v692_v47, 8.507059e+37  ;;  %v3472_v51 = vadd.f32 1.0, %v2549_v4  ;;  %v700_v52 = vsub.f32 1.0, %v699_v33  ;;  %v2255_v33 = vld [vmem:[%s5166_s0 + $0x78] sm:$0xf0] }
  0xd1   :  { %v2557_v2 = vpop.eup %2556  ;;  %v489_v53 = vmul.f32 %v3434_v34, %v3336_v21  ;;  %2560 = vrcp.f32 %v3432_v32  ;;  %v3477_v54 = vadd.f32 1.0, %v2553_v30  ;;  %v3490_v60 = vsel %vm3405_vm5, %v470_v24, %v466_v12  ;;  %vm3499_vm11 = vmor %vm688_vm7, %vm689_vm9  ;;  %v3535_v30 = vpop.f32.mrf.mxu1 }
  0xd2   :  { %v707_v22 = vand.u32 2147483647, %v3306_v28  ;;  %v3493_v61 = vor.u32 1.1754944e-38, %v709_v40  ;;  %v2186_v62 = vmul.f32 -1.442695, %v273_v41  ;;  %v475_v3 = vsub.f32 1.0, %v474_v16 }
  0xd3   :  { %v2559_v0 = vpop.eup %2558  ;;  %vm478_vm12 = vweird.f32 %v3318_v42  ;;  %v2171_v5 = vmul.f32 -1.442695, %v207_v48  ;;  %v256_v37 = vadd.f32 %v255_v43, %v3202_v57  ;;  %v691_v7 = vsel %vm3499_vm11, %v3296_v20, %v687_v49 }
  0xd4   :  { %vm703_vm13 = vweird.f32 %v3306_v28  ;;  %v482_v46 = vand.u32 2147483647, %v3318_v42  ;;  %2562 = vrcp.f32 %v3472_v51  ;;  %v3514_v9 = vadd.f32 1.0, %v2557_v2 }
  0xd5   :  { %v701_v10 = vmul.f32 %v3386_v13, %v700_v52  ;;  %v484_v11 = vand.u32 2147483648, %v3318_v42  ;;  %v490_v26 = vsub.f32 1.0, %v489_v53  ;;  %2564 = vrcp.f32 %v3477_v54 }
  0xd6   :  { %v3519_v15 = vadd.f32 1.0, %v2559_v0  ;;  %2566 = vpow2.f32 %v2186_v62  ;;  %v2246_v20 = vor.u32 %v2456_v56, %v2245_v35  ;;  %v2250_v4 = vor.u32 %v2455_v59, %v2247_v6 }
  0xd7   :  { %v3521_v45 = vpop.eup %2560  ;;  %v476_v18 = vmul.f32 %v3414_v19, %v475_v3  ;;  %vm493_vm14 = vweird.f32 %v3336_v21  ;;  %2568 = vpow2.f32 %v2171_v5  ;;  %v2172_v29 = vmul.f32 -1.442695, %v256_v37 }
  0xd8   :  { %vm3525_vm15 = vcmp.eq.f32.partialorder %v707_v22, 8.507059e+37  ;;  %v497_v24 = vand.u32 2147483647, %v3336_v21  ;;  %v499_v25 = vand.u32 2147483648, %v3336_v21  ;;  %2570 = vrcp.f32 %v3514_v9  ;;  %1219 = vmatmul.bf16.gmra.mxu2 %v2246_v20  ;;  %1268 = vmatmul.bf16.gmra.mxu3 %v2250_v4 }
  0xd9   :  { %v227_v47 = vadd.f32 %v226_v14, %v3200_v55  ;;  %v3539_v31 = vsel %vm3468_vm10, %v695_v44, %v691_v7  ;;  %vm704_vm0 = vweird.f32 %v3386_v13  ;;  %vm3542_vm1 = vcmp.eq.f32.partialorder %v482_v46, 8.507059e+37  ;;  %1317 = vmatmul.bf16.gmra.mxu0 %v2246_v20  ;;  %1366 = vmatmul.bf16.gmra.mxu1 %v2250_v4  ;;  %v277_v20 = vpop.f32.mrf.mxu3 }
  0xda   :  { %5215 = vst [vmem:[#allocation7_spill] sm:$0xff] %v3539_v31  ;;  %v724_v58 = vand.u32 2147483648, %v3432_v32  ;;  %v3547_v40 = vpop.eup %2562  ;;  %v702_v41 = vadd.f32 %v3386_v13, %v701_v10  ;;  %v491_v43 = vmul.f32 %v3434_v34, %v490_v26  ;;  %v714_v12 = vmul.f32 %v3521_v45, %v3432_v32  ;;  %vm3568_vm4 = vmor %vm703_vm13, %vm704_vm0 }
  0xdb   :  { %2572 = vrcp.f32 %v3519_v15  ;;  %v3554_v44 = vpop.eup %2564  ;;  %v477_v16 = vadd.f32 %v3414_v19, %v476_v18  ;;  %vm479_vm2 = vweird.f32 %v3414_v19  ;;  %v485_v48 = vor.u32 1.1754944e-38, %v484_v11 }
  0xdc   :  { %2574 = vpow2.f32 %v2172_v29  ;;  %v2567_v49 = vpop.eup %2566  ;;  %vm3558_vm3 = vcmp.eq.f32.partialorder %v497_v24, 8.507059e+37  ;;  %v500_v2 = vor.u32 1.1754944e-38, %v499_v25  ;;  %v722_v52 = vand.u32 2147483647, %v3432_v32  ;;  %vm3586_vm6 = vmor %vm478_vm12, %vm479_vm2 }
  0xdd   :  { %v739_v53 = vand.u32 2147483648, %v3472_v51  ;;  %v2187_v35 = vmul.f32 -1.442695, %v227_v47  ;;  %v2569_v56 = vpop.eup %2568  ;;  %vm494_vm5 = vweird.f32 %v3434_v34  ;;  %v3573_v22 = vor.u32 1.1754944e-38, %v724_v58 }
  0xde   :  { %v737_v62 = vand.u32 2147483647, %v3472_v51  ;;  %v276_v0 = vadd.f32 %v275_v17, %v3202_v57  ;;  %v3577_v1 = vpop.eup %2570  ;;  %v706_v3 = vsel %vm3568_vm4, %v3386_v13, %v702_v41  ;;  %v492_v5 = vadd.f32 %v3434_v34, %v491_v43  ;;  %vm3618_vm8 = vmor %vm493_vm14, %vm494_vm5  ;;  %v211_v41 = vpop.f32.mrf.mxu0 }
  0xdf   :  { %v715_v37 = vsub.f32 1.0, %v714_v12  ;;  %v514_v6 = vand.u32 2147483648, %v3477_v54  ;;  %v481_v7 = vsel %vm3586_vm6, %v3414_v19, %v477_v16  ;;  %v729_v13 = vmul.f32 %v3547_v40, %v3472_v51  ;;  %v228_v19 = vpop.f32.mrf.mxu2  ;;  %v3641_v43 = vpop.f32.mrf.mxu1  ;;  %v2457_v12 = vld [vmem:[%s5166_s0 + $0x74] sm:$0xf] }
  0xe0   :  { %v504_v46 = vmul.f32 %v3554_v44, %v3477_v54  ;;  %v3599_v42 = vadd.f32 1.0, %v2567_v49  ;;  %vm718_vm7 = vweird.f32 %v3432_v32  ;;  %v3604_v11 = vor.u32 1.1754944e-38, %v739_v53 }
  0xe1   :  { %v3601_v10 = vpop.eup %2572  ;;  %v512_v26 = vand.u32 2147483647, %v3477_v54  ;;  %v3607_v14 = vadd.f32 1.0, %v2569_v56  ;;  %2576 = vpow2.f32 %v2187_v35  ;;  %v3612_v17 = vsel %vm3525_vm15, %v3493_v61, %v706_v3  ;;  %v2458_v61 = vld [vmem:[%s5166_s0 + $0x74] sm:$0xf0]  ;;  %s2792_s0 = smov [#allocation2]  }
  0xe2   :  { %v2575_v4 = vpop.eup %2574  ;;  %5224 = vst [vmem:[#allocation8_spill] sm:$0xff] %v3612_v17  ;;  %vm719_vm9 = vweird.f32 %v3521_v45  ;;  %v519_v29 = vmul.f32 %v3577_v1, %v3514_v9  ;;  %v2188_v24 = vmul.f32 -1.442695, %v276_v0  ;;  %v3633_v21 = vsel %vm3542_vm1, %v485_v48, %v481_v7  ;;  %s2053_s27 = sshll.u32 %s2792_s0, 4  ;;  %s2054_s27 = int_to_ptr.vmem [resolvable:$true] %s2053_s27 }
  0xe3   :  { %v496_v25 = vsel %vm3618_vm8, %v3434_v34, %v492_v5  ;;  %v716_v47 = vmul.f32 %v3521_v45, %v715_v37  ;;  %v3639_v58 = vor.u32 1.1754944e-38, %v514_v6  ;;  %v730_v16 = vsub.f32 1.0, %v729_v13  ;;  %vm3685_vm15 = vmor %vm718_vm7, %vm719_vm9 }
  0xe4   :  { %vm734_vm10 = vweird.f32 %v3547_v40  ;;  %v505_v48 = vsub.f32 1.0, %v504_v46  ;;  %2578 = vrcp.f32 %v3599_v42  ;;  %v209_v34 = vadd.f32 %v3533_v27, %v3200_v55 }
  0xe5   :  { %v744_v49 = vmul.f32 %v3601_v10, %v3519_v15  ;;  %2580 = vrcp.f32 %v3607_v14  ;;  %v3656_v53 = vadd.f32 1.0, %v2575_v4  ;;  %v2254_v35 = vor.u32 %v2458_v61, %v2253_v23 }
  0xe6   :  { %v3660_v56 = vsel %vm3558_vm3, %v500_v2, %v496_v25  ;;  %vm3662_vm11 = vcmp.eq.f32.partialorder %v722_v52, 8.507059e+37  ;;  %vm733_vm12 = vweird.f32 %v3472_v51  ;;  %v520_v0 = vsub.f32 1.0, %v519_v29 }
  0xe7   :  { %2582 = vpow2.f32 %v2188_v24  ;;  %v2258_v27 = vor.u32 %v2457_v12, %v2255_v33  ;;  %v2577_v3 = vpop.eup %2576  ;;  %v717_v28 = vadd.f32 %v3521_v45, %v716_v47  ;;  %vm508_vm13 = vweird.f32 %v3477_v54  ;;  %v3712_v25 = vpop.f32.mrf.mxu2  ;;  %vm3744_vm6 = vmor %vm733_vm12, %vm734_vm10 }
  0xe8   :  { %vm509_vm14 = vweird.f32 %v3554_v44  ;;  %v529_v50 = vand.u32 2147483648, %v3514_v9  ;;  %v258_v2 = vadd.f32 %v3535_v30, %v3202_v57  ;;  %v731_v52 = vmul.f32 %v3547_v40, %v730_v16  ;;  %1224 = vmatmul.bf16.gmra.mxu2 %v2254_v35  ;;  %v3714_v47 = vpop.f32.mrf.mxu3 }
  0xe9   :  { %v527_v5 = vand.u32 2147483647, %v3514_v9  ;;  %v2173_v37 = vmul.f32 -1.442695, %v209_v34  ;;  %v229_v6 = vadd.f32 %v228_v19, %v3200_v55  ;;  %v506_v7 = vmul.f32 %v3554_v44, %v505_v48  ;;  %1273 = vmatmul.bf16.gmra.mxu3 %v2258_v27  ;;  %1322 = vmatmul.bf16.gmra.mxu0 %v2254_v35  ;;  %v3727_v35 = vpop.f32.mrf.mxu1  ;;  %vm3759_vm7 = vmor %vm508_vm13, %vm509_vm14 }
  0xea   :  { %v745_v13 = vsub.f32 1.0, %v744_v49  ;;  %2584 = vrcp.f32 %v3656_v53  ;;  %v278_v46 = vadd.f32 %v277_v20, %v3202_v57  ;;  %v3679_v4 = vpop.eup %2578  ;;  %vm3691_vm0 = vcmp.eq.f32.partialorder %v737_v62, 8.507059e+37  ;;  %1371 = vmatmul.bf16.gmra.mxu1 %v2258_v27  ;;  %v3725_v49 = vpop.f32.mrf.mxu0 }
  0xeb   :  { %v521_v20 = vmul.f32 %v3577_v1, %v520_v0  ;;  %vm523_vm1 = vweird.f32 %v3514_v9  ;;  %v3697_v18 = vadd.f32 1.0, %v2577_v3  ;;  %v212_v29 = vadd.f32 %v211_v41, %v3200_v55  ;;  %v3700_v32 = vpop.eup %2580 }
  0xec   :  { %v721_v24 = vsel %vm3685_vm15, %v3521_v45, %v717_v28  ;;  %vm3707_vm2 = vcmp.eq.f32.partialorder %v512_v26, 8.507059e+37  ;;  %v530_v23 = vor.u32 1.1754944e-38, %v529_v50  ;;  %vm748_vm3 = vweird.f32 %v3519_v15 }
  0xed   :  { %v2174_v61 = vmul.f32 -1.442695, %v258_v2  ;;  %v2583_v41 = vpop.eup %2582  ;;  %v732_v12 = vadd.f32 %v3547_v40, %v731_v52  ;;  %vm3717_vm4 = vcmp.eq.f32.partialorder %v527_v5, 8.507059e+37  ;;  %v752_v45 = vand.u32 2147483647, %v3519_v15 }
  0xee   :  { %2586 = vpow2.f32 %v2173_v37  ;;  %v2189_v26 = vmul.f32 -1.442695, %v229_v6  ;;  %v507_v16 = vadd.f32 %v3554_v44, %v506_v7  ;;  %vm524_vm5 = vweird.f32 %v3577_v1 }
  0xef   :  { %v746_v48 = vmul.f32 %v3601_v10, %v745_v13  ;;  %v2190_v34 = vmul.f32 -1.442695, %v278_v46  ;;  %v522_v0 = vadd.f32 %v3577_v1, %v521_v20  ;;  %v759_v27 = vmul.f32 %v3679_v4, %v3599_v42  ;;  %vm3775_vm9 = vmor %vm523_vm1, %vm524_vm5 }
  0xf0   :  { %2588 = vrcp.f32 %v3697_v18  ;;  %v2175_v3 = vmul.f32 -1.442695, %v212_v29  ;;  %v3733_v28 = vpop.eup %2584  ;;  %v3738_v50 = vsel %vm3662_vm11, %v3573_v22, %v721_v24  ;;  %v534_v52 = vmul.f32 %v3700_v32, %v3607_v14 }
  0xf1   :  { %5237 = vst [vmem:[#allocation9_spill] sm:$0xff] %v3738_v50  ;;  %v3750_v5 = vadd.f32 1.0, %v2583_v41  ;;  %2590 = vpow2.f32 %v2174_v61  ;;  %v736_v59 = vsel %vm3744_vm6, %v3547_v40, %v732_v12  ;;  %vm3763_vm8 = vcmp.eq.f32.partialorder %v752_v45, 8.507059e+37  ;;  %v3818_v12 = vpop.f32.mrf.mxu2  ;;  %v3820_v45 = vpop.f32.mrf.mxu3 }
  0xf2   :  { %v754_v37 = vand.u32 2147483648, %v3519_v15  ;;  %2592 = vpow2.f32 %v2189_v26  ;;  %v511_v6 = vsel %vm3759_vm7, %v3554_v44, %v507_v16  ;;  %v747_v40 = vadd.f32 %v3601_v10, %v746_v48  ;;  %v3832_v2 = vpop.f32.mrf.mxu1 }
  0xf3   :  { %vm749_vm10 = vweird.f32 %v3601_v10  ;;  %2594 = vpow2.f32 %v2190_v34  ;;  %v526_v13 = vsel %vm3775_vm9, %v3577_v1, %v522_v0  ;;  %v760_v46 = vsub.f32 1.0, %v759_v27 }
  0xf4   :  { %v2587_v7 = vpop.eup %2586  ;;  %v549_v44 = vmul.f32 %v3733_v28, %v3656_v53  ;;  %2596 = vpow2.f32 %v2175_v3  ;;  %v3789_v9 = vsel %vm3691_vm0, %v3604_v11, %v736_v59  ;;  %v769_v30 = vand.u32 2147483648, %v3599_v42  ;;  %vm3802_vm11 = vmor %vm748_vm3, %vm749_vm10  ;;  %v3830_v3 = vpop.f32.mrf.mxu0 }
  0xf5   :  { %5246 = vst [vmem:[#allocation10_spill] sm:$0xff] %v3789_v9  ;;  %v535_v20 = vsub.f32 1.0, %v534_v52  ;;  %2598 = vrcp.f32 %v3750_v5  ;;  %v3798_v1 = vsel %vm3707_vm2, %v3639_v58, %v511_v6  ;;  %v755_v11 = vor.u32 1.1754944e-38, %v754_v37 }
  0xf6   :  { %v3793_v29 = vpop.eup %2588  ;;  %vm763_vm12 = vweird.f32 %v3599_v42  ;;  %v767_v19 = vand.u32 2147483647, %v3599_v42  ;;  %v3810_v41 = vsel %vm3717_vm4, %v530_v23, %v526_v13  ;;  %v751_v58 = vsel %vm3802_vm11, %v3601_v10, %v747_v40 }
  0xf7   :  { %v2591_v61 = vpop.eup %2590  ;;  %v544_v15 = vand.u32 2147483648, %v3607_v14  ;;  %v3816_v62 = vadd.f32 1.0, %v2587_v7  ;;  %v761_v16 = vmul.f32 %v3679_v4, %v760_v46  ;;  %v542_v48 = vand.u32 2147483647, %v3607_v14 }
  0xf8   :  { %v2593_v26 = vpop.eup %2592  ;;  %v550_v33 = vsub.f32 1.0, %v549_v44  ;;  %v261_v23 = vadd.f32 %v3641_v43, %v3202_v57  ;;  %v770_v0 = vor.u32 1.1754944e-38, %v769_v30  ;;  %v536_v10 = vmul.f32 %v3700_v32, %v535_v20 }
  0xf9   :  { %v2595_v34 = vpop.eup %2594  ;;  %vm538_vm13 = vweird.f32 %v3607_v14  ;;  %v774_v27 = vmul.f32 %v3793_v29, %v3697_v18  ;;  %v3836_v59 = vsel %vm3763_vm8, %v755_v11, %v751_v58  ;;  %vm3838_vm14 = vcmp.eq.f32.partialorder %v767_v19, 8.507059e+37  ;;  %v3900_v14 = vpop.f32.mrf.mxu2 }
  0xfa   :  { %v2597_v52 = vpop.eup %2596  ;;  %5249 = vst [vmem:[#allocation11_spill] sm:$0xff] %v3836_v59  ;;  %vm553_vm15 = vweird.f32 %v3656_v53  ;;  %v557_v51 = vand.u32 2147483647, %v3656_v53  ;;  %v3844_v37 = vadd.f32 1.0, %v2591_v61  ;;  %v545_v54 = vor.u32 1.1754944e-38, %v544_v15 }
  0xfb   :  { %v3846_v6 = vpop.eup %2598  ;;  %v559_v40 = vand.u32 2147483648, %v3656_v53  ;;  %2600 = vrcp.f32 %v3816_v62  ;;  %v3850_v22 = vadd.f32 1.0, %v2593_v26  ;;  %v762_v7 = vadd.f32 %v3679_v4, %v761_v16 }
  0xfc   :  { %vm764_vm0 = vweird.f32 %v3679_v4  ;;  %vm3854_vm1 = vcmp.eq.f32.partialorder %v542_v48, 8.507059e+37  ;;  %v551_v46 = vmul.f32 %v3733_v28, %v550_v33  ;;  %v2176_v44 = vmul.f32 -1.442695, %v261_v23 }
  0xfd   :  { %v537_v30 = vadd.f32 %v3700_v32, %v536_v10  ;;  %vm539_vm2 = vweird.f32 %v3700_v32  ;;  %v775_v20 = vsub.f32 1.0, %v774_v27  ;;  %v3861_v24 = vadd.f32 1.0, %v2595_v34  ;;  %vm3874_vm4 = vmor %vm763_vm12, %vm764_vm0 }
  0xfe   :  { %vm3863_vm3 = vcmp.eq.f32.partialorder %v557_v51, 8.507059e+37  ;;  %v789_v19 = vmul.f32 %v3846_v6, %v3750_v5  ;;  %2602 = vrcp.f32 %v3844_v37  ;;  %v3870_v61 = vadd.f32 1.0, %v2597_v52  ;;  %vm3886_vm6 = vmor %vm538_vm13, %vm539_vm2 }
  0xff   :  { %vm554_vm5 = vweird.f32 %v3733_v28  ;;  %v560_v15 = vor.u32 1.1754944e-38, %v559_v40  ;;  %v784_v26 = vand.u32 2147483648, %v3697_v18  ;;  %2604 = vrcp.f32 %v3850_v22 }
 0x100   :  { %v766_v16 = vsel %vm3874_vm4, %v3679_v4, %v762_v7  ;;  %v552_v42 = vadd.f32 %v3733_v28, %v551_v46  ;;  %v782_v33 = vand.u32 2147483647, %v3697_v18  ;;  %2606 = vpow2.f32 %v2176_v44  ;;  %v3902_v4 = vpop.f32.mrf.mxu3  ;;  %vm3917_vm8 = vmor %vm553_vm15, %vm554_vm5  ;;  %v3923_v44 = vpop.f32.mrf.mxu0 }
 0x101   :  { %v3892_v23 = vpop.eup %2600  ;;  %v541_v34 = vsel %vm3886_vm6, %v3700_v32, %v537_v30  ;;  %v776_v10 = vmul.f32 %v3793_v29, %v775_v20  ;;  %vm778_vm7 = vweird.f32 %v3697_v18  ;;  %2608 = vrcp.f32 %v3861_v24 }
 0x102   :  { %v790_v27 = vsub.f32 1.0, %v789_v19  ;;  %2610 = vrcp.f32 %v3870_v61  ;;  %v232_v52 = vadd.f32 %v3712_v25, %v3200_v55  ;;  %v214_v51 = vadd.f32 %v3725_v49, %v3200_v55  ;;  %v3925_v49 = vpop.f32.mrf.mxu1 }
 0x103   :  { %v3911_v32 = vsel %vm3838_vm14, %v770_v0, %v766_v16  ;;  %v785_v7 = vor.u32 1.1754944e-38, %v784_v26  ;;  %v797_v46 = vand.u32 2147483647, %v3750_v5  ;;  %v799_v25 = vand.u32 2147483648, %v3750_v5 }
 0x104   :  { %5260 = vst [vmem:[#allocation12_spill] sm:$0xff] %v3911_v32  ;;  %v3927_v43 = vpop.eup %2602  ;;  %v556_v0 = vsel %vm3917_vm8, %v3733_v28, %v552_v42  ;;  %vm3932_vm9 = vcmp.eq.f32.partialorder %v782_v33, 8.507059e+37  ;;  %vm793_vm10 = vweird.f32 %v3750_v5  ;;  %v564_v30 = vmul.f32 %v3892_v23, %v3816_v62 }
 0x105   :  { %v574_v19 = vand.u32 2147483648, %v3816_v62  ;;  %v3941_v58 = vpop.eup %2604  ;;  %v3945_v26 = vsel %vm3854_vm1, %v545_v54, %v541_v34  ;;  %v777_v28 = vadd.f32 %v3793_v29, %v776_v10  ;;  %vm779_vm11 = vweird.f32 %v3793_v29 }
 0x106   :  { %v2191_v16 = vmul.f32 -1.442695, %v232_v52  ;;  %v2607_v48 = vpop.eup %2606  ;;  %v791_v42 = vmul.f32 %v3846_v6, %v790_v27  ;;  %v281_v33 = vadd.f32 %v3714_v47, %v3202_v57  ;;  %v2177_v40 = vmul.f32 -1.442695, %v214_v51  ;;  %vm3967_vm13 = vmor %vm778_vm7, %vm779_vm11 }
 0x107   :  { %v263_v20 = vadd.f32 %v3727_v35, %v3202_v57  ;;  %v3954_v59 = vpop.eup %2608  ;;  %v3958_v54 = vsel %vm3863_vm3, %v560_v15, %v556_v0  ;;  %vm794_vm12 = vweird.f32 %v3846_v6  ;;  %v800_v13 = vor.u32 1.1754944e-38, %v799_v25 }
 0x108   :  { %v3961_v34 = vadd.f32 1.0, %v2607_v48  ;;  %v3963_v10 = vpop.eup %2610  ;;  %vm3971_vm14 = vcmp.eq.f32.partialorder %v797_v46, 8.507059e+37  ;;  %v565_v11 = vsub.f32 1.0, %v564_v30  ;;  %v3975_v15 = vor.u32 1.1754944e-38, %v574_v19  ;;  %vm4010_vm1 = vmor %vm793_vm10, %vm794_vm12  ;;  %v4017_v32 = vpop.f32.mrf.mxu0 }
 0x109   :  { %v587_v27 = vand.u32 2147483647, %v3844_v37  ;;  %v2178_v52 = vmul.f32 -1.442695, %v263_v20  ;;  %v781_v51 = vsel %vm3967_vm13, %v3793_v29, %v777_v28  ;;  %v579_v18 = vmul.f32 %v3927_v43, %v3844_v37  ;;  %v3994_v28 = vpop.f32.mrf.mxu2 }
 0x10a   :  { %v589_v25 = vand.u32 2147483648, %v3844_v37  ;;  %2612 = vpow2.f32 %v2191_v16  ;;  %v792_v46 = vadd.f32 %v3846_v6, %v791_v42  ;;  %v804_v0 = vmul.f32 %v3941_v58, %v3850_v22  ;;  %v3996_v16 = vpop.f32.mrf.mxu3 }
 0x10b   :  { %v2192_v30 = vmul.f32 -1.442695, %v281_v33  ;;  %2614 = vpow2.f32 %v2177_v40  ;;  %vm568_vm15 = vweird.f32 %v3816_v62  ;;  %v814_v20 = vand.u32 2147483648, %v3850_v22 }
 0x10c   :  { %v819_v29 = vmul.f32 %v3954_v59, %v3861_v24  ;;  %v594_v19 = vmul.f32 %v3963_v10, %v3870_v61  ;;  %2616 = vrcp.f32 %v3961_v34  ;;  %v566_v48 = vmul.f32 %v3892_v23, %v565_v11 }
 0x10d   :  { %vm569_vm0 = vweird.f32 %v3892_v23  ;;  %2618 = vpow2.f32 %v2178_v52  ;;  %v1338_v42 = vadd.f32 %v3832_v2, %v3830_v3  ;;  %v4004_v33 = vsel %vm3932_vm9, %v785_v7, %v781_v51  ;;  %v4019_v3 = vpop.f32.mrf.mxu1 }
 0x10e   :  { %5269 = vst [vmem:[#allocation13_spill] sm:$0xff] %v4004_v33  ;;  %v580_v47 = vsub.f32 1.0, %v579_v18  ;;  %v4014_v11 = vor.u32 1.1754944e-38, %v589_v25  ;;  %v812_v52 = vand.u32 2147483647, %v3850_v22  ;;  %v796_v2 = vsel %vm4010_vm1, %v3846_v6, %v792_v46  ;;  %vm4074_vm9 = vmor %vm568_vm15, %vm569_vm0 }
 0x10f   :  { %vm583_vm2 = vweird.f32 %v3844_v37  ;;  %v805_v5 = vsub.f32 1.0, %v804_v0  ;;  %v829_v7 = vand.u32 2147483648, %v3861_v24  ;;  %2620 = vpow2.f32 %v2192_v30 }
 0x110   :  { %v2613_v53 = vpop.eup %2612  ;;  %vm808_vm3 = vweird.f32 %v3850_v22  ;;  %v4027_v51 = vor.u32 1.1754944e-38, %v814_v20  ;;  %v820_v18 = vsub.f32 1.0, %v819_v29  ;;  %v827_v25 = vand.u32 2147483647, %v3861_v24 }
 0x111   :  { %v595_v33 = vsub.f32 1.0, %v594_v19  ;;  %v2615_v50 = vpop.eup %2614  ;;  %v567_v9 = vadd.f32 %v3892_v23, %v566_v48  ;;  %v5272_v6 = vand.u32 2147483647, %v3816_v62  ;;  %vm823_vm5 = vweird.f32 %v3861_v24 }
 0x112   :  { %vm598_vm6 = vweird.f32 %v3870_v61  ;;  %v234_v0 = vadd.f32 %v3818_v12, %v3200_v55  ;;  %v2388_v30 = vmul.f32 -1.442695, %v1338_v42  ;;  %v4041_v20 = vpop.eup %2616  ;;  %v4045_v29 = vsel %vm3971_vm14, %v800_v13, %v796_v2  ;;  %v4068_v2 = vpop.f32.mrf.mxu3 }
 0x113   :  { %vm4033_vm4 = vcmp.eq.f32.partialorder %v5272_v6, 8.507059e+37  ;;  %5275 = vst [vmem:[#allocation14_spill] sm:$0xff] %v4045_v29  ;;  %v581_v19 = vmul.f32 %v3927_v43, %v580_v47  ;;  %vm584_vm7 = vweird.f32 %v3927_v43  ;;  %v4049_v48 = vadd.f32 1.0, %v2615_v50  ;;  %v2619_v40 = vpop.eup %2618  ;;  %v4066_v47 = vpop.f32.mrf.mxu2 }
 0x114   :  { %v806_v6 = vmul.f32 %v3941_v58, %v805_v5  ;;  %v4052_v31 = vor.u32 1.1754944e-38, %v829_v7  ;;  %v602_v55 = vand.u32 2147483647, %v3870_v61  ;;  %v283_v12 = vadd.f32 %v3820_v45, %v3202_v57  ;;  %vm4104_vm15 = vmor %vm583_vm2, %vm584_vm7 }
 0x115   :  { %vm4057_vm8 = vcmp.eq.f32.partialorder %v587_v27, 8.507059e+37  ;;  %v821_v13 = vmul.f32 %v3954_v59, %v820_v18  ;;  %v596_v42 = vmul.f32 %v3963_v10, %v595_v33  ;;  %v4063_v50 = vadd.f32 1.0, %v2613_v53  ;;  %v2621_v5 = vpop.eup %2620 }
 0x116   :  { %2622 = vrcp.f32 %v4049_v48  ;;  %vm4078_vm10 = vcmp.eq.f32.partialorder %v812_v52, 8.507059e+37  ;;  %v609_v27 = vmul.f32 %v4041_v20, %v3961_v34  ;;  %v2193_v33 = vmul.f32 -1.442695, %v234_v0 }
 0x117   :  { %2624 = vpow2.f32 %v2388_v30  ;;  %v1240_v7 = vadd.f32 %v3902_v4, %v3900_v14  ;;  %v571_v62 = vsel %vm4074_vm9, %v3892_v23, %v567_v9  ;;  %v582_v53 = vadd.f32 %v3927_v43, %v581_v19  ;;  %v4113_v30 = vpop.f32.mrf.mxu0  ;;  %v4115_v19 = vpop.f32.mrf.mxu1 }
 0x118   :  { %vm809_vm11 = vweird.f32 %v3941_v58  ;;  %vm4091_vm12 = vcmp.eq.f32.partialorder %v827_v25, 8.507059e+37  ;;  %v4095_v18 = vadd.f32 1.0, %v2619_v40  ;;  %v807_v0 = vadd.f32 %v3941_v58, %v806_v6 }
 0x119   :  { %vm824_vm13 = vweird.f32 %v3954_v59  ;;  %vm599_vm14 = vweird.f32 %v3963_v10  ;;  %v2194_v14 = vmul.f32 -1.442695, %v283_v12  ;;  %v822_v23 = vadd.f32 %v3954_v59, %v821_v13  ;;  %vm4119_vm0 = vmor %vm808_vm3, %vm809_vm11 }
 0x11a   :  { %v597_v4 = vadd.f32 %v3963_v10, %v596_v42  ;;  %2626 = vrcp.f32 %v4063_v50  ;;  %v4111_v25 = vadd.f32 1.0, %v2621_v5  ;;  %v604_v40 = vand.u32 2147483648, %v3870_v61  ;;  %vm4138_vm1 = vmor %vm823_vm5, %vm824_vm13 }
 0x11b   :  { %v610_v6 = vsub.f32 1.0, %v609_v27  ;;  %2628 = vpow2.f32 %v2193_v33  ;;  %v2387_v12 = vmul.f32 -1.442695, %v1240_v7  ;;  %v4129_v42 = vsel %vm4033_vm4, %v3975_v15, %v571_v62  ;;  %vm4154_vm3 = vmor %vm598_vm6, %vm599_vm14  ;;  %v4169_v33 = vpop.f32.mrf.mxu2  ;;  %v4171_v7 = vpop.f32.mrf.mxu3 }
 0x11c   :  { %5286 = vst [vmem:[#allocation15_spill] sm:$0xff] %v4111_v25  ;;  %v4124_v13 = vpop.eup %2622  ;;  %v586_v22 = vsel %vm4104_vm15, %v3927_v43, %v582_v53  ;;  %vm4142_vm2 = vcmp.eq.f32.partialorder %v602_v55, 8.507059e+37  ;;  %2630 = vrcp.f32 %v4095_v18  ;;  %v811_v46 = vsel %vm4119_vm0, %v3941_v58, %v807_v0 }
 0x11d   :  { %v2625_v15 = vpop.eup %2624  ;;  %v617_v43 = vand.u32 2147483647, %v3961_v34  ;;  %v624_v55 = vmul.f32 %v4124_v13, %v4049_v48  ;;  %2632 = vpow2.f32 %v2194_v14  ;;  %v826_v27 = vsel %vm4138_vm1, %v3954_v59, %v822_v23 }
 0x11e   :  { %v601_v58 = vsel %vm4154_vm3, %v3963_v10, %v597_v4  ;;  %v619_v61 = vand.u32 2147483648, %v3961_v34  ;;  %2634 = vrcp.f32 %v4111_v25  ;;  %v4176_v62 = vsel %vm4057_vm8, %v4014_v11, %v586_v22 }
 0x11f   :  { %v605_v53 = vor.u32 1.1754944e-38, %v604_v40  ;;  %v611_v59 = vmul.f32 %v4041_v20, %v610_v6  ;;  %2636 = vpow2.f32 %v2387_v12  ;;  %v4184_v10 = vsel %vm4078_vm10, %v4027_v51, %v811_v46 }
 0x120   :  { %v4179_v0 = vpop.eup %2626  ;;  %5295 = vst [vmem:[#allocation16_spill] sm:$0xff] %v4184_v10  ;;  %v844_v14 = vand.u32 2147483648, %v4063_v50  ;;  %v625_v9 = vsub.f32 1.0, %v624_v55  ;;  %v4187_v23 = vadd.f32 1.0, %v2625_v15  ;;  %v4192_v11 = vsel %vm4091_vm12, %v4052_v31, %v826_v27 }
 0x121   :  { %v2629_v4 = vpop.eup %2628  ;;  %5296 = vst [vmem:[#allocation17_spill] sm:$0xff] %v4192_v11  ;;  %v4196_v35 = vsel %vm4142_vm2, %v605_v53, %v601_v58  ;;  %vm613_vm4 = vweird.f32 %v3961_v34  ;;  %vm4199_vm5 = vcmp.eq.f32.partialorder %v617_v43, 8.507059e+37  ;;  %v620_v37 = vor.u32 1.1754944e-38, %v619_v61 }
 0x122   :  { %v4203_v45 = vpop.eup %2630  ;;  %v859_v40 = vand.u32 2147483648, %v4111_v25  ;;  %v1340_v52 = vadd.f32 %v3925_v49, %v3923_v44  ;;  %v1242_v31 = vadd.f32 %v3996_v16, %v3994_v28  ;;  %v612_v12 = vadd.f32 %v4041_v20, %v611_v59  ;;  %v4223_v49 = vpop.f32.mrf.mxu0 }
 0x123   :  { %v2633_v6 = vpop.eup %2632  ;;  %vm614_vm6 = vweird.f32 %v4041_v20  ;;  %v834_v22 = vmul.f32 %v4179_v0, %v4063_v50  ;;  %v1343_v5 = vadd.f32 %v4019_v3, %v4017_v32  ;;  %v4219_v46 = vor.u32 1.1754944e-38, %v844_v14  ;;  %v4225_v28 = vpop.f32.mrf.mxu1 }
 0x124   :  { %v4216_v57 = vpop.eup %2634  ;;  %v626_v44 = vmul.f32 %v4124_v13, %v625_v9  ;;  %2638 = vrcp.f32 %v4187_v23  ;;  %v632_v43 = vand.u32 2147483647, %v4049_v48  ;;  %v639_v32 = vmul.f32 %v4203_v45, %v4095_v18  ;;  %vm4237_vm7 = vmor %vm613_vm4, %vm614_vm6  ;;  %v4246_v53 = vpop.f32.mrf.mxu2 }
 0x125   :  { %5299 = vst [vmem:[#allocation18_spill] sm:$0xff] %v4216_v57  ;;  %v2637_v16 = vpop.eup %2636  ;;  %v4231_v3 = vadd.f32 1.0, %v2629_v4  ;;  %v4241_v27 = vor.u32 1.1754944e-38, %v859_v40  ;;  %vm628_vm8 = vweird.f32 %v4049_v48  ;;  %v634_v58 = vand.u32 2147483648, %v4049_v48  ;;  %v4248_v59 = vpop.f32.mrf.mxu3 }
 0x126   :  { %5300 = vst [vmem:[#allocation19_spill] sm:$0xff] %v4219_v46  ;;  %v649_v61 = vand.u32 2147483648, %v4095_v18  ;;  %v616_v34 = vsel %vm4237_vm7, %v4041_v20, %v612_v12  ;;  %v835_v14 = vsub.f32 1.0, %v834_v22  ;;  %v4255_v9 = vmul.f32 %v4216_v57, %v4111_v25 }
 0x127   :  { %5301 = vst [vmem:[#allocation20_spill] sm:$0xff] %v4231_v3  ;;  %v4257_v4 = vadd.f32 1.0, %v2633_v6  ;;  %v627_v40 = vadd.f32 %v4124_v13, %v626_v44  ;;  %vm629_vm9 = vweird.f32 %v4124_v13  ;;  %v4261_v24 = vadd.f32 1.0, %v2637_v16 }
 0x128   :  { %5304 = vst [vmem:[#allocation21_spill] sm:$0xff] %v4241_v27  ;;  %v2390_v15 = vmul.f32 -1.442695, %v1340_v52  ;;  %vm4263_vm10 = vcmp.eq.f32.partialorder %v632_v43, 8.507059e+37  ;;  %v640_v55 = vsub.f32 1.0, %v639_v32  ;;  %2640 = vrcp.f32 %v4231_v3  ;;  %vm4281_vm11 = vmor %vm628_vm8, %vm629_vm9 }
 0x129   :  { %5305 = vst [vmem:[#allocation22_spill] sm:$0xff] %v4255_v9  ;;  %v2389_v20 = vmul.f32 -1.442695, %v1242_v31  ;;  %v4272_v6 = vsel %vm4199_vm5, %v620_v37, %v616_v34  ;;  %v635_v22 = vor.u32 1.1754944e-38, %v634_v58  ;;  %2642 = vrcp.f32 %v4261_v24 }
 0x12a   :  { %5306 = vst [vmem:[#allocation23_spill] sm:$0xff] %v4257_v4  ;;  %v4268_v12 = vpop.eup %2638  ;;  %v4277_v52 = vmul.f32 %v4179_v0, %v835_v14  ;;  %v4285_v31 = vor.u32 1.1754944e-38, %v649_v61  ;;  %2644 = vrcp.f32 %v4257_v4  ;;  %v631_v43 = vsel %vm4281_vm11, %v4124_v13, %v627_v40  ;;  %v1300_v40 = vpop.f32.mrf.mxu0 }
 0x12b   :  { %v1521_v51 = vmul.f32 %v4268_v12, %v4187_v23  ;;  %vm643_vm12 = vweird.f32 %v4095_v18  ;;  %2646 = vpow2.f32 %v2390_v15  ;;  %v641_v32 = vmul.f32 %v4203_v45, %v640_v55  ;;  %v1349_v16 = vpop.f32.mrf.mxu1 }
 0x12c   :  { %2648 = vpow2.f32 %v2389_v20  ;;  %v2392_v61 = vmul.f32 -1.442695, %v1343_v5  ;;  %vm644_vm13 = vweird.f32 %v4203_v45  ;;  %v1531_v34 = vand.u32 2147483648, %v4187_v23 }
 0x12d   :  { %v1522_v58 = vsub.f32 1.0, %v1521_v51  ;;  %v1245_v14 = vadd.f32 %v4068_v2, %v4066_v47  ;;  %v1345_v13 = vadd.f32 %v4115_v19, %v4113_v30  ;;  %v4307_v15 = vsel %vm4263_vm10, %v635_v22, %v631_v43  ;;  %v4314_v30 = vpop.f32.mrf.mxu2  ;;  %v4316_v19 = vpop.f32.mrf.mxu3  ;;  %vm4349_vm1 = vmor %vm643_vm12, %vm644_vm13 }
 0x12e   :  { %v4303_v37 = vpop.eup %2640  ;;  %2650 = vpow2.f32 %v2392_v61  ;;  %v1247_v55 = vadd.f32 %v4171_v7, %v4169_v33  ;;  %vm1525_vm14 = vweird.f32 %v4187_v23  ;;  %vm1526_vm15 = vweird.f32 %v4268_v12 }
 0x12f   :  { %5311 = vst [vmem:[#allocation24_spill] sm:$0xff] %v4303_v37  ;;  %v1523_v5 = vmul.f32 %v4268_v12, %v1522_v58  ;;  %v2643_v20 = vpop.eup %2642  ;;  %v2391_v47 = vmul.f32 -1.442695, %v1245_v14  ;;  %v2394_v2 = vmul.f32 -1.442695, %v1345_v13  ;;  %v4321_v22 = vadd.f32 %v4203_v45, %v641_v32  ;;  %vm4331_vm0 = vmor %vm1525_vm14, %vm1526_vm15 }
 0x130   :  { %v4318_v10 = vpop.eup %2644  ;;  %v1506_v33 = vmul.f32 %v2643_v20, %v4261_v24  ;;  %v2393_v7 = vmul.f32 -1.442695, %v1247_v55  ;;  %v1529_v58 = vand.u32 2147483647, %v4187_v23  ;;  %v1532_v61 = vor.u32 1.1754944e-38, %v1531_v34 }
 0x131   :  { %5312 = vst [vmem:[#allocation25_spill] sm:$0xff] %v4318_v10  ;;  %v1524_v51 = vadd.f32 %v4268_v12, %v1523_v5  ;;  %v2647_v43 = vpop.eup %2646  ;;  %v1514_v14 = vand.u32 2147483647, %v4261_v24  ;;  %2652 = vpow2.f32 %v2391_v47  ;;  %v1516_v48 = vand.u32 2147483648, %v4261_v24 }
 0x132   :  { %v2649_v13 = vpop.eup %2648  ;;  %v1507_v5 = vsub.f32 1.0, %v1506_v33  ;;  %v4336_v55 = vadd.f32 1.0, %v2647_v43  ;;  %2654 = vpow2.f32 %v2394_v2  ;;  %v1348_v23 = vadd.f32 %v4225_v28, %v4223_v49 }
 0x133   :  { %v1528_v34 = vsel %vm4331_vm0, %v4268_v12, %v1524_v51  ;;  %v4341_v47 = vadd.f32 1.0, %v2649_v13  ;;  %2656 = vpow2.f32 %v2393_v7  ;;  %vm1511_vm2 = vweird.f32 %v2643_v20 }
 0x134   :  { %v2651_v44 = vpop.eup %2650  ;;  %v1508_v2 = vmul.f32 %v2643_v20, %v1507_v5  ;;  %2658 = vrcp.f32 %v4336_v55  ;;  %v1250_v12 = vadd.f32 %v4248_v59, %v4246_v53  ;;  %vm1530_vm3 = vcmp.eq.f32.partialorder %v1529_v58, 8.507059e+37  ;;  %v4370_v5 = vpop.f32.mrf.mxu0 }
 0x135   :  { %vm1510_vm4 = vweird.f32 %v4261_v24  ;;  %2660 = vrcp.f32 %v4341_v47  ;;  %v1533_v28 = vsel %vm1530_vm3, %v1532_v61, %v1528_v34  ;;  %vm4362_vm5 = vcmp.eq.f32.partialorder %v1514_v14, 8.507059e+37  ;;  %v4372_v24 = vpop.f32.mrf.mxu1  ;;  %v4382_v11 = vpop.f32.mrf.mxu2 }
 0x136   :  { %v1509_v51 = vadd.f32 %v2643_v20, %v1508_v2  ;;  %v4366_v43 = vadd.f32 1.0, %v2651_v44  ;;  %vm1512_vm6 = vmor %vm1510_vm4, %vm1511_vm2  ;;  %v1517_v53 = vor.u32 1.1754944e-38, %v1516_v48  ;;  %v1559_v59 = vand.u32 2147483647, %v4336_v55  ;;  %v4384_v27 = vpop.f32.mrf.mxu3 }
 0x137   :  { %v2653_v13 = vpop.eup %2652  ;;  %v1561_v32 = vand.u32 2147483648, %v4336_v55  ;;  %v2396_v58 = vmul.f32 -1.442695, %v1348_v23  ;;  %v4375_v14 = vmul.f32 -1.442695, %v1250_v12  ;;  %v1350_v44 = vadd.f32 %v1349_v16, %v1300_v40 }
 0x138   :  { %v2655_v61 = vpop.eup %2654  ;;  %v1513_v34 = vsel %vm1512_vm6, %v2643_v20, %v1509_v51  ;;  %2662 = vrcp.f32 %v4366_v43  ;;  %v1986_v49 = vmul.f32 %v1533_v28, %v3391_v63  ;;  %vm1555_vm7 = vweird.f32 %v4336_v55 }
 0x139   :  { %v2657_v2 = vpop.eup %2656  ;;  %v1518_v48 = vsel %vm4362_vm5, %v1517_v53, %v1513_v34  ;;  %v1544_v23 = vand.u32 2147483647, %v4341_v47  ;;  %vm1540_vm8 = vweird.f32 %v4341_v47  ;;  %v1546_v40 = vand.u32 2147483648, %v4341_v47 }
 0x13a   :  { %v2659_v20 = vpop.eup %2658  ;;  %v1985_v51 = vmul.f32 %v1518_v48, %v3374_v8  ;;  %v4389_v16 = vadd.f32 1.0, %v2653_v13  ;;  %v4391_v63 = vadd.f32 1.0, %v2655_v61  ;;  %vm4394_vm9 = vcmp.eq.f32.partialorder %v1559_v59, 8.507059e+37 }
 0x13b   :  { %v2661_v12 = vpop.eup %2660  ;;  %v1551_v28 = vmul.f32 %v2659_v20, %v4336_v55  ;;  %v1562_v53 = vor.u32 1.1754944e-38, %v1561_v32  ;;  %2664 = vpow2.f32 %v2396_v58  ;;  %v4400_v48 = vmul.f32 -1.442695, %v1350_v44 }
 0x13c   :  { %v2017_v34 = vpack.c.bf16 %v1986_v49, %v1985_v51  ;;  %v1536_v8 = vmul.f32 %v2661_v12, %v4341_v47  ;;  %2666 = vrcp.f32 %v4389_v16  ;;  %v1589_v61 = vand.u32 2147483647, %v4366_v43  ;;  %v4423_v36 = vpop.f32.mrf.mxu0 }
 0x13d   :  { %v1552_v13 = vsub.f32 1.0, %v1551_v28  ;;  %v1591_v29 = vand.u32 2147483648, %v4366_v43  ;;  %v4404_v25 = vadd.f32 1.0, %v2657_v2  ;;  %vm4408_vm10 = vcmp.eq.f32.partialorder %v1544_v23, 8.507059e+37  ;;  %v4425_v39 = vpop.f32.mrf.mxu1  ;;  %v4442_v55 = vpop.f32.mrf.mxu2 }
 0x13e   :  { %v4406_v59 = vpop.eup %2662  ;;  %2033 = vst [vmem:[#allocation2] sm:$0xff] %v2017_v34  ;;  %v1537_v17 = vsub.f32 1.0, %v1536_v8  ;;  %v1547_v49 = vor.u32 1.1754944e-38, %v1546_v40  ;;  %2668 = vrcp.f32 %v4391_v63  ;;  %vm1556_vm11 = vweird.f32 %v2659_v20 }
 0x13f   :  { %v1553_v58 = vmul.f32 %v2659_v20, %v1552_v13  ;;  %v1581_v44 = vmul.f32 %v4406_v59, %v4366_v43  ;;  %v1574_v51 = vand.u32 2147483647, %v4389_v16  ;;  %vm1541_vm12 = vweird.f32 %v2661_v12  ;;  %vm1557_vm15 = vmor %vm1555_vm7, %vm1556_vm11 }
 0x140   :  { %v1538_v2 = vmul.f32 %v2661_v12, %v1537_v17  ;;  %vm1585_vm13 = vweird.f32 %v4366_v43  ;;  %v1576_v28 = vand.u32 2147483648, %v4389_v16  ;;  %vm4418_vm14 = vcmp.eq.f32.partialorder %v1589_v61, 8.507059e+37  ;;  %vm1542_vm3 = vmor %vm1540_vm8, %vm1541_vm12 }
 0x141   :  { %v2665_v23 = vpop.eup %2664  ;;  %v1554_v34 = vadd.f32 %v2659_v20, %v1553_v58  ;;  %v1582_v8 = vsub.f32 1.0, %v1581_v44  ;;  %v1592_v13 = vor.u32 1.1754944e-38, %v1591_v29  ;;  %2670 = vrcp.f32 %v4404_v25 }
 0x142   :  { %v2667_v17 = vpop.eup %2666  ;;  %v1539_v10 = vadd.f32 %v2661_v12, %v1538_v2  ;;  %vm1586_vm0 = vweird.f32 %v4406_v59  ;;  %vm1570_vm2 = vweird.f32 %v4389_v16  ;;  %v1619_v61 = vand.u32 2147483647, %v4391_v63  ;;  %v4444_v2 = vpop.f32.mrf.mxu3 }
 0x143   :  { %v1558_v58 = vsel %vm1557_vm15, %v2659_v20, %v1554_v34  ;;  %v1583_v29 = vmul.f32 %v4406_v59, %v1582_v8  ;;  %v1566_v44 = vmul.f32 %v2667_v17, %v4389_v16  ;;  %vm4438_vm4 = vcmp.eq.f32.partialorder %v1574_v51, 8.507059e+37  ;;  %vm4459_vm7 = vmor %vm1585_vm13, %vm1586_vm0 }
 0x144   :  { %v2669_v46 = vpop.eup %2668  ;;  %v1563_v20 = vsel %vm4394_vm9, %v1562_v53, %v1558_v58  ;;  %v1543_v34 = vsel %vm1542_vm3, %v2661_v12, %v1539_v10  ;;  %v1577_v37 = vor.u32 1.1754944e-38, %v1576_v28  ;;  %vm1615_vm5 = vweird.f32 %v4391_v63 }
 0x145   :  { %v1621_v47 = vand.u32 2147483648, %v4391_v63  ;;  %v1548_v51 = vsel %vm4408_vm10, %v1547_v49, %v1543_v34  ;;  %v1584_v8 = vadd.f32 %v4406_v59, %v1583_v29  ;;  %v1567_v3 = vsub.f32 1.0, %v1566_v44  ;;  %v4489_v44 = vpop.f32.mrf.mxu1 }
 0x146   :  { %vm1571_vm6 = vweird.f32 %v2667_v17  ;;  %v1988_v57 = vmul.f32 %v1563_v20, %v3490_v60  ;;  %v1987_v9 = vmul.f32 %v1548_v51, %v3464_v38  ;;  %v1611_v12 = vmul.f32 %v2669_v46, %v4391_v63  ;;  %v4506_v51 = vpop.f32.mrf.mxu2 }
 0x147   :  { %vm4464_vm8 = vcmp.eq.f32.partialorder %v1619_v61, 8.507059e+37  ;;  %v4468_v53 = vadd.f32 1.0, %v2665_v23  ;;  %v2671_v32 = vpop.eup %2670  ;;  %v1588_v38 = vsel %vm4459_vm7, %v4406_v59, %v1584_v8  ;;  %v1568_v60 = vmul.f32 %v2667_v17, %v1567_v3  ;;  %vm1572_vm10 = vmor %vm1570_vm2, %vm1571_vm6  ;;  %v4487_v59 = vpop.f32.mrf.mxu0 }
 0x148   :  { %2672 = vpow2.f32 %v4375_v14  ;;  %v1252_v43 = vadd.f32 %v4316_v19, %v4314_v30  ;;  %v2018_v49 = vpack.c.bf16 %v1988_v57, %v1987_v9  ;;  %v1612_v28 = vsub.f32 1.0, %v1611_v12 }
 0x149   :  { %v1596_v61 = vmul.f32 %v2671_v32, %v4404_v25  ;;  %vm1600_vm9 = vweird.f32 %v4404_v25  ;;  %v1569_v58 = vadd.f32 %v2667_v17, %v1568_v60  ;;  %v1622_v23 = vor.u32 1.1754944e-38, %v1621_v47 }
 0x14a   :  { %v1606_v29 = vand.u32 2147483648, %v4404_v25  ;;  %2674 = vrcp.f32 %v4468_v53  ;;  %2034 = vst [vmem:[#allocation2 + $0x8] sm:$0xff] %v2018_v49  ;;  %v1593_v3 = vsel %vm4418_vm14, %v1592_v13, %v1588_v38  ;;  %v1613_v57 = vmul.f32 %v2669_v46, %v1612_v28  ;;  %v4508_v4 = vpop.f32.mrf.mxu3 }
 0x14b   :  { %vm1616_vm11 = vweird.f32 %v2669_v46  ;;  %v1597_v9 = vsub.f32 1.0, %v1596_v61  ;;  %v1573_v30 = vsel %vm1572_vm10, %v2667_v17, %v1569_v58  ;;  %v1604_v19 = vand.u32 2147483647, %v4404_v25 }
 0x14c   :  { %2676 = vpow2.f32 %v4400_v48  ;;  %v2397_v14 = vmul.f32 -1.442695, %v1252_v43  ;;  %v5331_v40 = vand.u32 2147483647, %v4095_v18  ;;  %v1578_v16 = vsel %vm4438_vm4, %v1577_v37, %v1573_v30  ;;  %vm1617_vm14 = vmor %vm1615_vm5, %vm1616_vm11 }
 0x14d   :  { %v1614_v20 = vadd.f32 %v2669_v46, %v1613_v57  ;;  %v1598_v17 = vmul.f32 %v2671_v32, %v1597_v9  ;;  %vm1601_vm13 = vweird.f32 %v2671_v32  ;;  %v1990_v48 = vmul.f32 %v1593_v3, %v3660_v56  ;;  %v4552_v30 = vpop.f32.mrf.mxu1 }
 0x14e   :  { %vm4493_vm12 = vcmp.eq.f32.partialorder %v5331_v40, 8.507059e+37  ;;  %v2673_v34 = vpop.eup %2672  ;;  %v1989_v47 = vmul.f32 %v1578_v16, %v3633_v21  ;;  %2678 = vpow2.f32 %v2397_v14  ;;  %v1353_v18 = vadd.f32 %v4372_v24, %v4370_v5  ;;  %vm1602_vm15 = vmor %vm1600_vm9, %vm1601_vm13  ;;  %v4572_v16 = vpop.f32.mrf.mxu2 }
 0x14f   :  { %v1618_v37 = vsel %vm1617_vm14, %v2669_v46, %v1614_v20  ;;  %v1599_v8 = vadd.f32 %v2671_v32, %v1598_v17  ;;  %v1607_v10 = vor.u32 1.1754944e-38, %v1606_v29  ;;  %v4510_v12 = vadd.f32 1.0, %v2673_v34  ;;  %v4550_v9 = vpop.f32.mrf.mxu0 }
 0x150   :  { %v4512_v56 = vpop.eup %2674  ;;  %v2019_v21 = vpack.c.bf16 %v1990_v48, %v1989_v47  ;;  %v1623_v63 = vsel %vm4464_vm8, %v1622_v23, %v1618_v37  ;;  %v2400_v5 = vmul.f32 -1.442695, %v1353_v18  ;;  %v1255_v24 = vadd.f32 %v4384_v27, %v4382_v11 }
 0x151   :  { %v1603_v38 = vsel %vm1602_vm15, %v2671_v32, %v1599_v8  ;;  %vm1605_vm0 = vcmp.eq.f32.partialorder %v1604_v19, 8.507059e+37  ;;  %v1641_v46 = vmul.f32 %v4512_v56, %v4468_v53  ;;  %vm1645_vm2 = vweird.f32 %v4468_v53 }
 0x152   :  { %v2677_v60 = vpop.eup %2676  ;;  %2035 = vst [vmem:[#allocation2 + $0x10] sm:$0xff] %v2019_v21  ;;  %v1608_v43 = vsel %vm1605_vm0, %v1607_v10, %v1603_v38  ;;  %v1649_v7 = vand.u32 2147483647, %v4468_v53  ;;  %2680 = vrcp.f32 %v4510_v12  ;;  %v1355_v25 = vadd.f32 %v4425_v39, %v4423_v36  ;;  %v4574_v20 = vpop.f32.mrf.mxu3 }
 0x153   :  { %v1992_v49 = vmul.f32 %v1623_v63, %v3810_v41  ;;  %v1991_v11 = vmul.f32 %v1608_v43, %v3798_v1  ;;  %v1642_v27 = vsub.f32 1.0, %v1641_v46  ;;  %v4530_v32 = vadd.f32 1.0, %v2677_v60 }
 0x154   :  { %v2679_v28 = vpop.eup %2678  ;;  %vm1646_vm3 = vweird.f32 %v4512_v56  ;;  %v1651_v61 = vand.u32 2147483648, %v4468_v53  ;;  %2682 = vpow2.f32 %v2400_v5  ;;  %v2399_v58 = vmul.f32 -1.442695, %v1255_v24 }
 0x155   :  { %v2020_v23 = vpack.c.bf16 %v1992_v49, %v1991_v11  ;;  %v1643_v29 = vmul.f32 %v4512_v56, %v1642_v27  ;;  %v1634_v3 = vand.u32 2147483647, %v4510_v12  ;;  %2684 = vrcp.f32 %v4530_v32 }
 0x156   :  { %v5334_v36 = vsel %vm4349_vm1, %v4203_v45, %v4321_v22  ;;  %v1636_v1 = vand.u32 2147483648, %v4510_v12  ;;  %v4548_v41 = vadd.f32 1.0, %v2679_v28  ;;  %v2402_v57 = vmul.f32 -1.442695, %v1355_v25  ;;  %vm4565_vm1 = vmor %vm1645_vm2, %vm1646_vm3 }
 0x157   :  { %v4545_v39 = vsel %vm4493_vm12, %v4285_v31, %v5334_v36  ;;  %2036 = vst [vmem:[#allocation2 + $0x18] sm:$0xff] %v2020_v23  ;;  %v1644_v33 = vadd.f32 %v4512_v56, %v1643_v29  ;;  %vm4555_vm4 = vcmp.eq.f32.partialorder %v1649_v7, 8.507059e+37  ;;  %2686 = vpow2.f32 %v2399_v58  ;;  %v4612_v58 = vpop.f32.mrf.mxu0  ;;  %v4614_v23 = vpop.f32.mrf.mxu1 }
 0x158   :  { %v1257_v45 = vadd.f32 %v4444_v2, %v4442_v55  ;;  %v2681_v31 = vpop.eup %2680  ;;  %v1652_v14 = vor.u32 1.1754944e-38, %v1651_v61  ;;  %v1679_v40 = vand.u32 2147483647, %v4530_v32  ;;  %v1681_v13 = vand.u32 2147483648, %v4530_v32 }
 0x159   :  { %2688 = vrcp.f32 %v4548_v41  ;;  %v1648_v55 = vsel %vm4565_vm1, %v4512_v56, %v1644_v33  ;;  %v1626_v2 = vmul.f32 %v2681_v31, %v4510_v12  ;;  %vm1630_vm5 = vweird.f32 %v4510_v12 }
 0x15a   :  { %vm4581_vm6 = vcmp.eq.f32.partialorder %v1634_v3, 8.507059e+37  ;;  %v2683_v17 = vpop.eup %2682  ;;  %v1637_v34 = vor.u32 1.1754944e-38, %v1636_v1  ;;  %2690 = vpow2.f32 %v2402_v57  ;;  %v2401_v48 = vmul.f32 -1.442695, %v1257_v45  ;;  %v4618_v1 = vpop.f32.mrf.mxu2 }
 0x15b   :  { %v1358_v47 = vadd.f32 %v4489_v44, %v4487_v59  ;;  %v2685_v18 = vpop.eup %2684  ;;  %v1627_v37 = vsub.f32 1.0, %v1626_v2  ;;  %vm1675_vm7 = vweird.f32 %v4530_v32  ;;  %v1664_v8 = vand.u32 2147483647, %v4548_v41  ;;  %v4620_v57 = vpop.f32.mrf.mxu3 }
 0x15c   :  { %v4589_v10 = vadd.f32 1.0, %v2683_v17  ;;  %v1653_v56 = vsel %vm4555_vm4, %v1652_v14, %v1648_v55  ;;  %v1671_v21 = vmul.f32 %v2685_v18, %v4530_v32  ;;  %vm4594_vm8 = vcmp.eq.f32.partialorder %v1679_v40, 8.507059e+37 }
 0x15d   :  { %v1682_v5 = vor.u32 1.1754944e-38, %v1681_v13  ;;  %v1666_v59 = vand.u32 2147483648, %v4548_v41  ;;  %v2687_v44 = vpop.eup %2686  ;;  %v1628_v24 = vmul.f32 %v2681_v31, %v1627_v37  ;;  %vm1631_vm9 = vweird.f32 %v2681_v31 }
 0x15e   :  { %vm1660_vm10 = vweird.f32 %v4548_v41  ;;  %2692 = vrcp.f32 %v4589_v10  ;;  %v1672_v46 = vsub.f32 1.0, %v1671_v21  ;;  %v4601_v60 = vadd.f32 1.0, %v2687_v44  ;;  %vm1632_vm12 = vmor %vm1630_vm5, %vm1631_vm9 }
 0x15f   :  { %v2689_v38 = vpop.eup %2688  ;;  %2694 = vpow2.f32 %v2401_v48  ;;  %v2404_v43 = vmul.f32 -1.442695, %v1358_v47  ;;  %v1994_v7 = vmul.f32 %v1653_v56, %v3958_v54  ;;  %v1629_v25 = vadd.f32 %v2681_v31, %v1628_v24 }
 0x160   :  { %v1656_v49 = vmul.f32 %v2689_v38, %v4548_v41  ;;  %vm4605_vm11 = vcmp.eq.f32.partialorder %v1664_v8, 8.507059e+37  ;;  %v2691_v27 = vpop.eup %2690  ;;  %v1673_v28 = vmul.f32 %v2685_v18, %v1672_v46  ;;  %vm1676_vm13 = vweird.f32 %v2685_v18 }
 0x161   :  { %v1667_v61 = vor.u32 1.1754944e-38, %v1666_v59  ;;  %2696 = vrcp.f32 %v4601_v60  ;;  %v1633_v54 = vsel %vm1632_vm12, %v2681_v31, %v1629_v25  ;;  %v1709_v3 = vand.u32 2147483647, %v4589_v10  ;;  %vm1677_vm14 = vmor %vm1675_vm7, %vm1676_vm13  ;;  %v4663_v25 = vpop.f32.mrf.mxu0 }
 0x162   :  { %v1657_v29 = vsub.f32 1.0, %v1656_v49  ;;  %v1711_v36 = vand.u32 2147483648, %v4589_v10  ;;  %v1638_v12 = vsel %vm4581_vm6, %v1637_v34, %v1633_v54  ;;  %v1674_v33 = vadd.f32 %v2685_v18, %v1673_v28  ;;  %v4665_v49 = vpop.f32.mrf.mxu1 }
 0x163   :  { %v4624_v19 = vadd.f32 1.0, %v2691_v27  ;;  %2698 = vpow2.f32 %v2404_v43  ;;  %v1993_v22 = vmul.f32 %v1638_v12, %v3945_v26  ;;  %vm1661_vm15 = vweird.f32 %v2689_v38  ;;  %v1266_v54 = vpop.f32.mrf.mxu3 }
 0x164   :  { %v2693_v45 = vpop.eup %2692  ;;  %v1658_v31 = vmul.f32 %v2689_v38, %v1657_v29  ;;  %v1694_v14 = vand.u32 2147483647, %v4601_v60  ;;  %v1678_v13 = vsel %vm1677_vm14, %v2685_v18, %v1674_v33  ;;  %vm1705_vm0 = vweird.f32 %v4589_v10  ;;  %vm1662_vm3 = vmor %vm1660_vm10, %vm1661_vm15 }
 0x165   :  { %v2695_v40 = vpop.eup %2694  ;;  %v1701_v55 = vmul.f32 %v2693_v45, %v4589_v10  ;;  %2700 = vrcp.f32 %v4624_v19  ;;  %v2021_v2 = vpack.c.bf16 %v1994_v7, %v1993_v22  ;;  %v1683_v26 = vsel %vm4594_vm8, %v1682_v5, %v1678_v13 }
 0x166   :  { %v1659_v53 = vadd.f32 %v2689_v38, %v1658_v31  ;;  %vm4636_vm2 = vcmp.eq.f32.partialorder %v1709_v3, 8.507059e+37  ;;  %v1712_v48 = vor.u32 1.1754944e-38, %v1711_v36  ;;  %vm1690_vm4 = vweird.f32 %v4601_v60 }
 0x167   :  { %v2697_v17 = vpop.eup %2696  ;;  %v1702_v34 = vsub.f32 1.0, %v1701_v55  ;;  %v1696_v47 = vand.u32 2147483648, %v4601_v60  ;;  %2037 = vst [vmem:[#allocation2 + $0x20] sm:$0xff] %v2021_v2  ;;  %vm1706_vm1 = vweird.f32 %v2693_v45  ;;  %vm4645_vm5 = vcmp.eq.f32.partialorder %v1694_v14, 8.507059e+37 }
 0x168   :  { %v1663_v18 = vsel %vm1662_vm3, %v2689_v38, %v1659_v53  ;;  %v1686_v37 = vmul.f32 %v2697_v17, %v4601_v60  ;;  %v4649_v56 = vadd.f32 1.0, %v2695_v40  ;;  %v1996_v41 = vmul.f32 %v1683_v26, %v4176_v62  ;;  %vm4670_vm7 = vmor %vm1705_vm0, %vm1706_vm1 }
 0x169   :  { %v2699_v21 = vpop.eup %2698  ;;  %v1668_v63 = vsel %vm4605_vm11, %v1667_v61, %v1663_v18  ;;  %v1703_v5 = vmul.f32 %v2693_v45, %v1702_v34  ;;  %v1739_v59 = vand.u32 2147483647, %v4624_v19  ;;  %v1741_v38 = vand.u32 2147483648, %v4624_v19  ;;  %v1217_v61 = vpop.f32.mrf.mxu2 }
 0x16a   :  { %v1995_v44 = vmul.f32 %v1668_v63, %v4129_v42  ;;  %v1687_v24 = vsub.f32 1.0, %v1686_v37  ;;  %2702 = vrcp.f32 %v4649_v56  ;;  %v1697_v7 = vor.u32 1.1754944e-38, %v1696_v47  ;;  %v1318_v8 = vpop.f32.mrf.mxu0 }
 0x16b   :  { %v4658_v46 = vpop.eup %2700  ;;  %v1704_v43 = vadd.f32 %v2693_v45, %v1703_v5  ;;  %vm1735_vm6 = vweird.f32 %v4624_v19  ;;  %v4661_v62 = vadd.f32 1.0, %v2699_v21  ;;  %vm1691_vm8 = vweird.f32 %v2697_v17  ;;  %v1367_v21 = vpop.f32.mrf.mxu1 }
 0x16c   :  { %v2022_v11 = vpack.c.bf16 %v1996_v41, %v1995_v44  ;;  %v1688_v27 = vmul.f32 %v2697_v17, %v1687_v24  ;;  %v1731_v28 = vmul.f32 %v4658_v46, %v4624_v19  ;;  %v1724_v3 = vand.u32 2147483647, %v4649_v56  ;;  %vm1692_vm10 = vmor %vm1690_vm4, %vm1691_vm8  ;;  %v1269_v5 = vpop.f32.mrf.mxu3 }
 0x16d   :  { %v1708_v29 = vsel %vm4670_vm7, %v2693_v45, %v1704_v43  ;;  %v1726_v36 = vand.u32 2147483648, %v4649_v56  ;;  %2704 = vrcp.f32 %v4661_v62  ;;  %vm4681_vm9 = vcmp.eq.f32.partialorder %v1739_v59, 8.507059e+37 }
 0x16e   :  { %2038 = vst [vmem:[#allocation2 + $0x28] sm:$0xff] %v2022_v11  ;;  %v1689_v10 = vadd.f32 %v2697_v17, %v1688_v27  ;;  %v1732_v12 = vsub.f32 1.0, %v1731_v28  ;;  %v1742_v22 = vor.u32 1.1754944e-38, %v1741_v38  ;;  %v1713_v31 = vsel %vm4636_vm2, %v1712_v48, %v1708_v29 }
 0x16f   :  { %vm1736_vm11 = vweird.f32 %v4658_v46  ;;  %vm1720_vm12 = vweird.f32 %v4649_v56  ;;  %v1260_v45 = vadd.f32 %v4508_v4, %v4506_v51  ;;  %v1360_v55 = vadd.f32 %v4552_v30, %v4550_v9 }
 0x170   :  { %v2703_v14 = vpop.eup %2702  ;;  %v1693_v40 = vsel %vm1692_vm10, %v2697_v17, %v1689_v10  ;;  %v1733_v13 = vmul.f32 %v4658_v46, %v1732_v12  ;;  %v1262_v2 = vadd.f32 %v4574_v20, %v4572_v16  ;;  %vm4701_vm13 = vcmp.eq.f32.partialorder %v1724_v3, 8.507059e+37  ;;  %vm4716_vm0 = vmor %vm1735_vm6, %vm1736_vm11 }
 0x171   :  { %v1698_v60 = vsel %vm4645_vm5, %v1697_v7, %v1693_v40  ;;  %v1716_v26 = vmul.f32 %v2703_v14, %v4649_v56  ;;  %v1727_v51 = vor.u32 1.1754944e-38, %v1726_v36  ;;  %vm1765_vm14 = vweird.f32 %v4661_v62  ;;  %v1220_v63 = vpop.f32.mrf.mxu2 }
 0x172   :  { %v1998_v4 = vmul.f32 %v1713_v31, %v4272_v6  ;;  %v1997_v32 = vmul.f32 %v1698_v60, %v4196_v35  ;;  %v1734_v9 = vadd.f32 %v4658_v46, %v1733_v13  ;;  %v2403_v30 = vmul.f32 -1.442695, %v1260_v45  ;;  %v5366_v13 = vld [vmem:[#allocation18_spill] sm:$0xff] }
 0x173   :  { %v4709_v16 = vpop.eup %2704  ;;  %vm839_vm15 = vweird.f32 %v4179_v0  ;;  %v1717_v17 = vsub.f32 1.0, %v1716_v26  ;;  %v2406_v34 = vmul.f32 -1.442695, %v1360_v55  ;;  %v2405_v6 = vmul.f32 -1.442695, %v1262_v2  ;;  %v5367_v2 = vld [vmem:[#allocation20_spill] sm:$0xff] }
 0x174   :  { %v1363_v35 = vadd.f32 %v4614_v23, %v4612_v58  ;;  %v2023_v48 = vpack.c.bf16 %v1998_v4, %v1997_v32  ;;  %v1738_v47 = vsel %vm4716_vm0, %v4658_v46, %v1734_v9  ;;  %vm1721_vm2 = vweird.f32 %v2703_v14 }
 0x175   :  { %v1761_v18 = vmul.f32 %v4709_v16, %v4661_v62  ;;  %vm838_vm3 = vweird.f32 %v4063_v50  ;;  %v1718_v19 = vmul.f32 %v2703_v14, %v1717_v17  ;;  %vm1766_vm4 = vweird.f32 %v4709_v16  ;;  %vm1722_vm1 = vmor %vm1720_vm12, %vm1721_vm2 }
 0x176   :  { %2706 = vpow2.f32 %v2403_v30  ;;  %v2408_v37 = vmul.f32 -1.442695, %v1363_v35  ;;  %2039 = vst [vmem:[#allocation2 + $0x30] sm:$0xff] %v2023_v48  ;;  %v1743_v58 = vsel %vm4681_vm9, %v1742_v22, %v1738_v47  ;;  %v1265_v41 = vadd.f32 %v4620_v57, %v4618_v1  ;;  %vm4758_vm6 = vmor %vm1765_vm14, %vm1766_vm4 }
 0x177   :  { %v1762_v23 = vsub.f32 1.0, %v1761_v18  ;;  %2708 = vpow2.f32 %v2406_v34  ;;  %v1719_v59 = vadd.f32 %v2703_v14, %v1718_v19  ;;  %v1365_v44 = vadd.f32 %v4665_v49, %v4663_v25  ;;  %vm4773_vm7 = vmor %vm838_vm3, %vm839_vm15  ;;  %v5369_v34 = vld [vmem:[#allocation19_spill] sm:$0xff] }
 0x178   :  { %2710 = vpow2.f32 %v2405_v6  ;;  %v1267_v24 = vadd.f32 %v1266_v54, %v1217_v61  ;;  %v2407_v46 = vmul.f32 -1.442695, %v1265_v41  ;;  %v1368_v43 = vadd.f32 %v1367_v21, %v1318_v8  ;;  %v5370_v19 = vld [vmem:[#allocation23_spill] sm:$0xff]  ;;  %v5372_v21 = vld [vmem:[#allocation6_spill] sm:$0xff] }
 0x179   :  { %v1763_v38 = vmul.f32 %v4709_v16, %v1762_v23  ;;  %2712 = vpow2.f32 %v2408_v37  ;;  %v5357_v7 = vand.u32 2147483647, %v4063_v50  ;;  %v1723_v57 = vsel %vm1722_vm1, %v2703_v14, %v1719_v59  ;;  %v5364_v14 = vld [vmem:[#allocation22_spill] sm:$0xff]  ;;  %v5368_v50 = vld [vmem:[#allocation24_spill] sm:$0xff]  ;;  %v5371_v37 = vld [vmem:[#allocation25_spill] sm:$0xff] }
 0x17a   :  { %v2410_v11 = vmul.f32 -1.442695, %v1365_v44  ;;  %v2409_v42 = vmul.f32 -1.442695, %v1267_v24  ;;  %v1270_v25 = vadd.f32 %v1269_v5, %v1220_v63  ;;  %v1728_v49 = vsel %vm4701_vm13, %v1727_v51, %v1723_v57 }
 0x17b   :  { %vm4741_vm5 = vcmp.eq.f32.partialorder %v5357_v7, 8.507059e+37  ;;  %v1764_v56 = vadd.f32 %v4709_v16, %v1763_v38  ;;  %v1771_v27 = vand.u32 2147483648, %v4661_v62  ;;  %2714 = vpow2.f32 %v2407_v46 }
 0x17c   :  { %v2707_v28 = vpop.eup %2706  ;;  %v837_v61 = vadd.f32 %v4179_v0, %v4277_v52  ;;  %v2000_v54 = vmul.f32 %v1743_v58, %v4545_v39  ;;  %v1999_v29 = vmul.f32 %v1728_v49, %v4307_v15  ;;  %v1769_v3 = vand.u32 2147483647, %v4661_v62 }
 0x17d   :  { %v2709_v36 = vpop.eup %2708  ;;  %v4762_v12 = vadd.f32 1.0, %v2707_v28  ;;  %2716 = vpow2.f32 %v2410_v11  ;;  %v2412_v33 = vmul.f32 -1.442695, %v1368_v43  ;;  %v2411_v52 = vmul.f32 -1.442695, %v1270_v25  ;;  %v4835_v11 = vpop.f32.mrf.mxu0 }
 0x17e   :  { %v2711_v22 = vpop.eup %2710  ;;  %v2024_v39 = vpack.c.bf16 %v2000_v54, %v1999_v29  ;;  %v1768_v15 = vsel %vm4758_vm6, %v4709_v16, %v1764_v56  ;;  %v4767_v31 = vadd.f32 1.0, %v2709_v36  ;;  %2718 = vpow2.f32 %v2409_v42  ;;  %v4837_v42 = vpop.f32.mrf.mxu1 }
 0x17f   :  { %v2713_v45 = vpop.eup %2712  ;;  %v5365_v40 = vsub.f32 1.0, %v5364_v14  ;;  %v874_v60 = vand.u32 2147483648, %v5367_v2  ;;  %v1772_v26 = vor.u32 1.1754944e-38, %v1771_v27  ;;  %2720 = vrcp.f32 %v4762_v12  ;;  %v4843_v28 = vpop.f32.mrf.mxu2 }
 0x180   :  { %v841_v53 = vsel %vm4773_vm7, %v4179_v0, %v837_v61  ;;  %v4789_v51 = vmul.f32 %v5368_v50, %v5367_v2  ;;  %2040 = vst [vmem:[#allocation2 + $0x38] sm:$0xff] %v2024_v39  ;;  %vm1770_vm8 = vcmp.eq.f32.partialorder %v1769_v3, 8.507059e+37  ;;  %2722 = vrcp.f32 %v4767_v31  ;;  %v4845_v61 = vpop.f32.mrf.mxu3 }
 0x181   :  { %v4780_v55 = vmul.f32 %v5366_v13, %v5365_v40  ;;  %v2715_v4 = vpop.eup %2714  ;;  %v1773_v32 = vsel %vm1770_vm8, %v1772_v26, %v1768_v15  ;;  %v4792_v9 = vadd.f32 1.0, %v2711_v22  ;;  %v4794_v30 = vadd.f32 1.0, %v2713_v45 }
 0x182   :  { %2724 = vpow2.f32 %v2412_v33  ;;  %v1754_v16 = vand.u32 2147483647, %v4762_v12  ;;  %v1756_v20 = vand.u32 2147483648, %v4762_v12  ;;  %v4798_v0 = vadd.f32 1.0, %v2715_v4 }
 0x183   :  { %2726 = vpow2.f32 %v2411_v52  ;;  %v2717_v17 = vpop.eup %2716  ;;  %v4803_v6 = vsel %vm4741_vm5, %v5369_v34, %v841_v53  ;;  %v1799_v35 = vand.u32 2147483647, %v4767_v31  ;;  %v1801_v48 = vand.u32 2147483648, %v4767_v31 }
 0x184   :  { %2728 = vrcp.f32 %v4792_v9  ;;  %v2719_v47 = vpop.eup %2718  ;;  %v865_v18 = vsub.f32 1.0, %v4789_v51  ;;  %v4811_v8 = vmul.f32 %v5371_v37, %v5370_v19  ;;  %v4814_v58 = vmul.f32 %v1773_v32, %v5372_v21 }
 0x185   :  { %2730 = vrcp.f32 %v4794_v30  ;;  %v2721_v23 = vpop.eup %2720  ;;  %vm1750_vm9 = vweird.f32 %v4762_v12  ;;  %vm1795_vm10 = vweird.f32 %v4767_v31  ;;  %v1786_v41 = vand.u32 2147483648, %v4792_v9  ;;  %v4894_v7 = vpop.f32.mrf.mxu0 }
 0x186   :  { %2732 = vrcp.f32 %v4798_v0  ;;  %v2723_v63 = vpop.eup %2722  ;;  %v1746_v5 = vmul.f32 %v2721_v23, %v4762_v12  ;;  %vm4822_vm11 = vcmp.eq.f32.partialorder %v1754_v16, 8.507059e+37  ;;  %v1757_v44 = vor.u32 1.1754944e-38, %v1756_v20  ;;  %v5383_v12 = vld [vmem:[#allocation5_spill] sm:$0xff] }
 0x187   :  { %v1784_v24 = vand.u32 2147483647, %v4792_v9  ;;  %v1831_v38 = vand.u32 2147483648, %v4794_v30  ;;  %v1791_v43 = vmul.f32 %v2723_v63, %v4767_v31  ;;  %vm4829_vm12 = vcmp.eq.f32.partialorder %v1799_v35, 8.507059e+37 }
 0x188   :  { %v2725_v46 = vpop.eup %2724  ;;  %v1802_v1 = vor.u32 1.1754944e-38, %v1801_v48  ;;  %vm1825_vm13 = vweird.f32 %v4794_v30  ;;  %v1829_v57 = vand.u32 2147483647, %v4794_v30  ;;  %v1747_v49 = vsub.f32 1.0, %v1746_v5 }
 0x189   :  { %v2727_v25 = vpop.eup %2726  ;;  %vm1751_vm14 = vweird.f32 %v2721_v23  ;;  %vm1780_vm15 = vweird.f32 %v4792_v9  ;;  %v1814_v56 = vand.u32 2147483647, %v4798_v0  ;;  %v4841_v27 = vadd.f32 1.0, %v2717_v17 }
 0x18a   :  { %v2729_v54 = vpop.eup %2728  ;;  %v1792_v29 = vsub.f32 1.0, %v1791_v43  ;;  %vm1796_vm0 = vweird.f32 %v2723_v63  ;;  %v1787_v3 = vor.u32 1.1754944e-38, %v1786_v41  ;;  %v1816_v36 = vand.u32 2147483648, %v4798_v0  ;;  %vm1752_vm5 = vmor %vm1750_vm9, %vm1751_vm14 }
 0x18b   :  { %v2731_v10 = vpop.eup %2730  ;;  %v1748_v33 = vmul.f32 %v2721_v23, %v1747_v49  ;;  %v1776_v52 = vmul.f32 %v2729_v54, %v4792_v9  ;;  %vm4849_vm2 = vcmp.eq.f32.partialorder %v1784_v24, 8.507059e+37  ;;  %v1832_v39 = vor.u32 1.1754944e-38, %v1831_v38  ;;  %vm1797_vm7 = vmor %vm1795_vm10, %vm1796_vm0 }
 0x18c   :  { %v4854_v15 = vadd.f32 1.0, %v2719_v47  ;;  %v2733_v45 = vpop.eup %2732  ;;  %v1793_v62 = vmul.f32 %v2723_v63, %v1792_v29  ;;  %v1821_v14 = vmul.f32 %v2731_v10, %v4794_v30  ;;  %vm4857_vm4 = vcmp.eq.f32.partialorder %v1829_v57, 8.507059e+37  ;;  %v1225_v29 = vpop.f32.mrf.mxu2  ;;  %v5388_v30 = vld [vmem:[#allocation7_spill] sm:$0xff] }
 0x18d   :  { %2734 = vrcp.f32 %v4841_v27  ;;  %v4862_v26 = vadd.f32 1.0, %v2725_v46  ;;  %v1749_v53 = vadd.f32 %v2721_v23, %v1748_v33  ;;  %v1777_v4 = vsub.f32 1.0, %v1776_v52  ;;  %v5386_v33 = vld [vmem:[#allocation8_spill] sm:$0xff] }
 0x18e   :  { %v1806_v32 = vmul.f32 %v2733_v45, %v4798_v0  ;;  %vm4865_vm1 = vcmp.eq.f32.partialorder %v1814_v56, 8.507059e+37  ;;  %v4869_v20 = vadd.f32 1.0, %v2727_v25  ;;  %v1794_v17 = vadd.f32 %v2723_v63, %v1793_v62 }
 0x18f   :  { %vm1781_vm6 = vweird.f32 %v2729_v54  ;;  %v1822_v34 = vsub.f32 1.0, %v1821_v14  ;;  %v1817_v35 = vor.u32 1.1754944e-38, %v1816_v36  ;;  %v1753_v48 = vsel %vm1752_vm5, %v2721_v23, %v1749_v53  ;;  %v1274_v36 = vpop.f32.mrf.mxu3 }
 0x190   :  { %v1778_v47 = vmul.f32 %v2729_v54, %v1777_v4  ;;  %vm1826_vm8 = vweird.f32 %v2731_v10  ;;  %v1807_v21 = vsub.f32 1.0, %v1806_v32  ;;  %v1758_v41 = vsel %vm4822_vm11, %v1757_v44, %v1753_v48  ;;  %vm4887_vm9 = vmor %vm1780_vm15, %vm1781_vm6  ;;  %v5389_v32 = vld [vmem:[#allocation10_spill] sm:$0xff] }
 0x191   :  { %v1798_v5 = vsel %vm1797_vm7, %v2723_v63, %v1794_v17  ;;  %v1823_v24 = vmul.f32 %v2731_v10, %v1822_v34  ;;  %vm1811_vm3 = vweird.f32 %v2733_v45  ;;  %v2001_v38 = vmul.f32 %v1758_v41, %v5383_v12  ;;  %vm1827_vm10 = vmor %vm1825_vm13, %vm1826_vm8  ;;  %v5390_v34 = vld [vmem:[#allocation9_spill] sm:$0xff] }
 0x192   :  { %v1803_v46 = vsel %vm4829_vm12, %v1802_v1, %v1798_v5  ;;  %v1779_v43 = vadd.f32 %v2729_v54, %v1778_v47  ;;  %v1808_v23 = vmul.f32 %v2733_v45, %v1807_v21  ;;  %v1859_v63 = vand.u32 2147483647, %v4841_v27  ;;  %v4896_v1 = vpop.f32.mrf.mxu1 }
 0x193   :  { %v4882_v57 = vpop.eup %2734  ;;  %v1824_v59 = vadd.f32 %v2731_v10, %v1823_v24  ;;  %v1861_v44 = vand.u32 2147483648, %v4841_v27  ;;  %2736 = vrcp.f32 %v4854_v15  ;;  %v2025_v25 = vpack.c.bf16 %v4814_v58, %v2001_v38 }
 0x194   :  { %v1783_v9 = vsel %vm4887_vm9, %v2729_v54, %v1779_v43  ;;  %v1809_v49 = vadd.f32 %v2733_v45, %v1808_v23  ;;  %v1851_v56 = vmul.f32 %v4882_v57, %v4841_v27  ;;  %v2004_v52 = vmul.f32 %v1803_v46, %v5386_v33  ;;  %v1325_v43 = vpop.f32.mrf.mxu0 }
 0x195   :  { %v1788_v62 = vsel %vm4849_vm2, %v1787_v3, %v1783_v9  ;;  %v1828_v14 = vsel %vm1827_vm10, %v2731_v10, %v1824_v59  ;;  %vm5387_vm11 = vweird.f32 %v4798_v0  ;;  %vm1856_vm14 = vweird.f32 %v4882_v57  ;;  %2041 = vst [vmem:[#allocation2 + $0x40] sm:$0xff] %v2025_v25  ;;  %v5397_v9 = vld [vmem:[#allocation15_spill] sm:$0xff] }
 0x196   :  { %vm1812_vm12 = vmor %vm5387_vm11, %vm1811_vm3  ;;  %v2003_v58 = vmul.f32 %v1788_v62, %v5388_v30  ;;  %v1833_v54 = vsel %vm4857_vm4, %v1832_v39, %v1828_v14  ;;  %v1852_v4 = vsub.f32 1.0, %v1851_v56  ;;  %v1844_v10 = vand.u32 2147483647, %v4854_v15  ;;  %v5398_v30 = vld [vmem:[#allocation12_spill] sm:$0xff] }
 0x197   :  { %v1813_v53 = vsel %vm1812_vm12, %v2733_v45, %v1809_v49  ;;  %v2006_v17 = vmul.f32 %v1833_v54, %v5389_v32  ;;  %v1846_v0 = vand.u32 2147483648, %v4854_v15  ;;  %2738 = vrcp.f32 %v4862_v26  ;;  %v1276_v25 = vpop.f32.mrf.mxu3 }
 0x198   :  { %v1818_v3 = vsel %vm4865_vm1, %v1817_v35, %v1813_v53  ;;  %v2026_v22 = vpack.c.bf16 %v2004_v52, %v2003_v58  ;;  %v1853_v47 = vmul.f32 %v4882_v57, %v1852_v4  ;;  %v4926_v39 = vadd.f32 %v5366_v13, %v4780_v55 }
 0x199   :  { %v2005_v48 = vmul.f32 %v1818_v3, %v5390_v34  ;;  %v2737_v40 = vpop.eup %2736  ;;  %v4931_v45 = vmul.f32 %v5368_v50, %v865_v18  ;;  %v880_v16 = vsub.f32 1.0, %v4811_v8  ;;  %v1370_v35 = vadd.f32 %v4837_v42, %v4835_v11 }
 0x19a   :  { %2042 = vst [vmem:[#allocation2 + $0x48] sm:$0xff] %v2026_v22  ;;  %v1854_v41 = vadd.f32 %v4882_v57, %v1853_v47  ;;  %vm1855_vm13 = vweird.f32 %v4841_v27  ;;  %v1836_v5 = vmul.f32 %v2737_v40, %v4854_v15  ;;  %vm4945_vm0 = vcmp.eq.f32.partialorder %v1859_v63, 8.507059e+37  ;;  %v1374_v23 = vpop.f32.mrf.mxu1 }
 0x19b   :  { %v2027_v21 = vpack.c.bf16 %v2006_v17, %v2005_v48  ;;  %vm4941_vm15 = vmor %vm1855_vm13, %vm1856_vm14  ;;  %v1862_v18 = vor.u32 1.1754944e-38, %v1861_v44  ;;  %vm1840_vm2 = vweird.f32 %v4854_v15  ;;  %2740 = vrcp.f32 %v4869_v20  ;;  %v1227_v44 = vpop.f32.mrf.mxu2  ;;  %v5399_v15 = vld [vmem:[#allocation11_spill] sm:$0xff] }
 0x19c   :  { %v1858_v11 = vsel %vm4941_vm15, %v4882_v57, %v1854_v41  ;;  %v1837_v42 = vsub.f32 1.0, %v1836_v5  ;;  %vm4954_vm3 = vcmp.eq.f32.partialorder %v1844_v10, 8.507059e+37  ;;  %v1847_v24 = vor.u32 1.1754944e-38, %v1846_v0 }
 0x19d   :  { %2043 = vst [vmem:[#allocation2 + $0x50] sm:$0xff] %v2027_v21  ;;  %vm854_vm4 = vweird.f32 %v5366_v13  ;;  %vm1885_vm1 = vweird.f32 %v4862_v26  ;;  %v1889_v12 = vand.u32 2147483647, %v4862_v26  ;;  %v2414_v38 = vmul.f32 -1.442695, %v1370_v35  ;;  %v2739_v31 = vpop.eup %2738 }
 0x19e   :  { %v1272_v46 = vadd.f32 %v4845_v61, %v4843_v28  ;;  %v1863_v57 = vsel %vm4945_vm0, %v1862_v18, %v1858_v11  ;;  %v1838_v59 = vmul.f32 %v2737_v40, %v1837_v42  ;;  %vm1841_vm5 = vweird.f32 %v2737_v40 }
 0x19f   :  { %v1891_v63 = vand.u32 2147483648, %v4862_v26  ;;  %vm853_vm6 = vweird.f32 %v5397_v9  ;;  %v1881_v49 = vmul.f32 %v2739_v31, %v4862_v26  ;;  %v1874_v56 = vand.u32 2147483647, %v4869_v20  ;;  %vm1842_vm7 = vmor %vm1840_vm2, %vm1841_vm5 }
 0x1a0   :  { %2742 = vpow2.f32 %v2414_v38  ;;  %v2413_v28 = vmul.f32 -1.442695, %v1272_v46  ;;  %v1839_v61 = vadd.f32 %v2737_v40, %v1838_v59  ;;  %v1373_v33 = vadd.f32 %v4896_v1, %v4894_v7  ;;  %vm5006_vm13 = vmor %vm853_vm6, %vm854_vm4  ;;  %v5407_v59 = vld [vmem:[#allocation14_spill] sm:$0xff] }
 0x1a1   :  { %v1275_v52 = vadd.f32 %v1274_v36, %v1225_v29  ;;  %v1375_v62 = vadd.f32 %v1374_v23, %v1325_v43  ;;  %v2741_v14 = vpop.eup %2740  ;;  %v2008_v58 = vmul.f32 %v1863_v57, %v5398_v30  ;;  %v1882_v54 = vsub.f32 1.0, %v1881_v49 }
 0x1a2   :  { %2744 = vpow2.f32 %v2413_v28  ;;  %v1277_v53 = vadd.f32 %v1276_v25, %v1227_v44  ;;  %vm869_vm8 = vweird.f32 %v5368_v50  ;;  %v1843_v4 = vsel %vm1842_vm7, %v2737_v40, %v1839_v61 }
 0x1a3   :  { %vm1886_vm9 = vweird.f32 %v2739_v31  ;;  %v1866_v32 = vmul.f32 %v2741_v14, %v4869_v20  ;;  %v2416_v17 = vmul.f32 -1.442695, %v1373_v33  ;;  %v1848_v7 = vsel %vm4954_vm3, %v1847_v24, %v1843_v4  ;;  %v5411_v33 = vld [vmem:[#allocation21_spill] sm:$0xff] }
 0x1a4   :  { %v1883_v1 = vmul.f32 %v2739_v31, %v1882_v54  ;;  %v2415_v29 = vmul.f32 -1.442695, %v1275_v52  ;;  %v2418_v36 = vmul.f32 -1.442695, %v1375_v62  ;;  %vm868_vm10 = vweird.f32 %v5367_v2  ;;  %vm4991_vm14 = vmor %vm1885_vm1, %vm1886_vm9 }
 0x1a5   :  { %v2007_v3 = vmul.f32 %v1848_v7, %v5399_v15  ;;  %v1867_v10 = vsub.f32 1.0, %v1866_v32  ;;  %2746 = vpow2.f32 %v2416_v17  ;;  %v2417_v0 = vmul.f32 -1.442695, %v1277_v53  ;;  %vm5037_vm5 = vmor %vm868_vm10, %vm869_vm8 }
 0x1a6   :  { %v2743_v22 = vpop.eup %2742  ;;  %v5400_v34 = vand.u32 2147483647, %v5397_v9  ;;  %v1884_v47 = vadd.f32 %v2739_v31, %v1883_v1  ;;  %vm1871_vm12 = vweird.f32 %v2741_v14  ;;  %v1876_v40 = vand.u32 2147483648, %v4869_v20 }
 0x1a7   :  { %2748 = vpow2.f32 %v2415_v29  ;;  %v2028_v35 = vpack.c.bf16 %v2008_v58, %v2007_v3  ;;  %v1868_v41 = vmul.f32 %v2741_v14, %v1867_v10  ;;  %v4995_v5 = vadd.f32 1.0, %v2743_v22 }
 0x1a8   :  { %vm4983_vm11 = vcmp.eq.f32.partialorder %v5400_v34, 8.507059e+37  ;;  %2750 = vpow2.f32 %v2418_v36  ;;  %v2745_v55 = vpop.eup %2744  ;;  %v881_v51 = vmul.f32 %v5371_v37, %v880_v16  ;;  %v1888_v18 = vsel %vm4991_vm14, %v2739_v31, %v1884_v47 }
 0x1a9   :  { %v1892_v11 = vor.u32 1.1754944e-38, %v1891_v63  ;;  %2752 = vpow2.f32 %v2417_v0  ;;  %2044 = vst [vmem:[#allocation2 + $0x58] sm:$0xff] %v2028_v35  ;;  %vm1890_vm15 = vcmp.eq.f32.partialorder %v1889_v12, 8.507059e+37  ;;  %v1869_v42 = vadd.f32 %v2741_v14, %v1868_v41 }
 0x1aa   :  { %vm1870_vm0 = vweird.f32 %v4869_v20  ;;  %2754 = vrcp.f32 %v4995_v5  ;;  %vm883_vm2 = vweird.f32 %v5370_v19  ;;  %v1877_v16 = vor.u32 1.1754944e-38, %v1876_v40 }
 0x1ab   :  { %v1893_v8 = vsel %vm1890_vm15, %v1892_v11, %v1888_v18  ;;  %vm1872_vm3 = vmor %vm1870_vm0, %vm1871_vm12  ;;  %v5014_v27 = vadd.f32 1.0, %v2745_v55  ;;  %v2747_v24 = vpop.eup %2746  ;;  %v856_v38 = vsel %vm5006_vm13, %v5366_v13, %v4926_v39  ;;  %v5022_v12 = vadd.f32 %v5368_v50, %v4931_v45  ;;  %v5408_v39 = vld [vmem:[#allocation13_spill] sm:$0xff] }
 0x1ac   :  { %v1873_v20 = vsel %vm1872_vm3, %v2741_v14, %v1869_v42  ;;  %vm1875_vm4 = vcmp.eq.f32.partialorder %v1874_v56, 8.507059e+37  ;;  %v5025_v43 = vadd.f32 %v5371_v37, %v881_v51  ;;  %vm884_vm1 = vweird.f32 %v5371_v37 }
 0x1ad   :  { %v2749_v46 = vpop.eup %2748  ;;  %v1878_v23 = vsel %vm1875_vm4, %v1877_v16, %v1873_v20  ;;  %2756 = vrcp.f32 %v5014_v27  ;;  %v887_v57 = vand.u32 2147483647, %v5370_v19  ;;  %v2010_v13 = vmul.f32 %v1893_v8, %v5407_v59  ;;  %vm5061_vm6 = vmor %vm883_vm2, %vm884_vm1 }
 0x1ae   :  { %v2751_v31 = vpop.eup %2750  ;;  %v2009_v63 = vmul.f32 %v1878_v23, %v5408_v39  ;;  %v1919_v45 = vand.u32 2147483647, %v4995_v5  ;;  %v1921_v9 = vand.u32 2147483648, %v4995_v5  ;;  %v5042_v49 = vadd.f32 1.0, %v2747_v24 }
 0x1af   :  { %v2753_v44 = vpop.eup %2752  ;;  %v5044_v56 = vadd.f32 1.0, %v2749_v46  ;;  %v5046_v28 = vadd.f32 1.0, %v2751_v31  ;;  %v5051_v52 = vsel %vm4983_vm11, %v5411_v33, %v856_v38  ;;  %v871_v62 = vsel %vm5037_vm5, %v5368_v50, %v5022_v12 }
 0x1b0   :  { %v2755_v61 = vpop.eup %2754  ;;  %v889_v30 = vand.u32 2147483648, %v5370_v19  ;;  %v2029_v58 = vpack.c.bf16 %v2010_v13, %v2009_v63  ;;  %v886_v54 = vsel %vm5061_vm6, %v5371_v37, %v5025_v43  ;;  %vm1915_vm7 = vweird.f32 %v4995_v5 }
 0x1b1   :  { %v1911_v53 = vmul.f32 %v2755_v61, %v4995_v5  ;;  %2758 = vrcp.f32 %v5042_v49  ;;  %v1904_v4 = vand.u32 2147483647, %v5014_v27  ;;  %v1906_v32 = vand.u32 2147483648, %v5014_v27 }
 0x1b2   :  { %2045 = vst [vmem:[#allocation2 + $0x60] sm:$0xff] %v2029_v58  ;;  %2760 = vrcp.f32 %v5044_v56  ;;  %v5076_v17 = vadd.f32 1.0, %v2753_v44  ;;  %vm5078_vm8 = vcmp.eq.f32.partialorder %v1919_v45, 8.507059e+37  ;;  %v1922_v36 = vor.u32 1.1754944e-38, %v1921_v9  ;;  %v5425_v9 = vld [vmem:[#allocation17_spill] sm:$0xff] }
 0x1b3   :  { %v2757_v7 = vpop.eup %2756  ;;  %v1912_v1 = vsub.f32 1.0, %v1911_v53  ;;  %2762 = vrcp.f32 %v5046_v28  ;;  %vm1900_vm9 = vweird.f32 %v5014_v27  ;;  %v1949_v3 = vand.u32 2147483647, %v5042_v49  ;;  %v5426_v53 = vld [vmem:[#allocation16_spill] sm:$0xff] }
 0x1b4   :  { %v1896_v15 = vmul.f32 %v2757_v7, %v5014_v27  ;;  %v1951_v10 = vand.u32 2147483648, %v5042_v49  ;;  %vm1916_vm10 = vweird.f32 %v2755_v61  ;;  %v1934_v22 = vand.u32 2147483647, %v5044_v56 }
 0x1b5   :  { %v1913_v0 = vmul.f32 %v2755_v61, %v1912_v1  ;;  %v1936_v34 = vand.u32 2147483648, %v5044_v56  ;;  %vm5089_vm11 = vcmp.eq.f32.partialorder %v1904_v4, 8.507059e+37  ;;  %v1907_v40 = vor.u32 1.1754944e-38, %v1906_v32  ;;  %vm1917_vm15 = vmor %vm1915_vm7, %vm1916_vm10 }
 0x1b6   :  { %v1897_v48 = vsub.f32 1.0, %v1896_v15  ;;  %2764 = vrcp.f32 %v5076_v17  ;;  %vm1901_vm12 = vweird.f32 %v2757_v7  ;;  %vm1945_vm14 = vweird.f32 %v5042_v49 }
 0x1b7   :  { %v2759_v35 = vpop.eup %2758  ;;  %v1914_v21 = vadd.f32 %v2755_v61, %v1913_v0  ;;  %vm1930_vm13 = vweird.f32 %v5044_v56  ;;  %vm5099_vm0 = vcmp.eq.f32.partialorder %v1949_v3, 8.507059e+37  ;;  %v1952_v11 = vor.u32 1.1754944e-38, %v1951_v10  ;;  %vm1902_vm3 = vmor %vm1900_vm9, %vm1901_vm12 }
 0x1b8   :  { %v2761_v41 = vpop.eup %2760  ;;  %v1898_v55 = vmul.f32 %v2757_v7, %v1897_v48  ;;  %v1941_v51 = vmul.f32 %v2759_v35, %v5042_v49  ;;  %vm5104_vm2 = vcmp.eq.f32.partialorder %v1934_v22, 8.507059e+37  ;;  %v1937_v24 = vor.u32 1.1754944e-38, %v1936_v34 }
 0x1b9   :  { %v2763_v26 = vpop.eup %2762  ;;  %v1918_v42 = vsel %vm1917_vm15, %v2755_v61, %v1914_v21  ;;  %v1926_v8 = vmul.f32 %v2761_v41, %v5044_v56  ;;  %vm1946_vm4 = vweird.f32 %v2759_v35  ;;  %vm1975_vm1 = vweird.f32 %v5046_v28 }
 0x1ba   :  { %v1923_v5 = vsel %vm5078_vm8, %v1922_v36, %v1918_v42  ;;  %v1899_v38 = vadd.f32 %v2757_v7, %v1898_v55  ;;  %v1942_v20 = vsub.f32 1.0, %v1941_v51  ;;  %v1971_v46 = vmul.f32 %v2763_v26, %v5046_v28  ;;  %vm1947_vm10 = vmor %vm1945_vm14, %vm1946_vm4 }
 0x1bb   :  { %v1927_v23 = vsub.f32 1.0, %v1926_v8  ;;  %v1981_v31 = vand.u32 2147483648, %v5046_v28  ;;  %vm1931_vm7 = vweird.f32 %v2761_v41  ;;  %v5422_v45 = vand.u32 2147483647, %v5367_v2 }
 0x1bc   :  { %v2765_v59 = vpop.eup %2764  ;;  %v1903_v13 = vsel %vm1902_vm3, %v2757_v7, %v1899_v38  ;;  %v1943_v39 = vmul.f32 %v2759_v35, %v1942_v20  ;;  %v1972_v63 = vsub.f32 1.0, %v1971_v46  ;;  %v2012_v27 = vmul.f32 %v1923_v5, %v5425_v9 }
 0x1bd   :  { %vm5118_vm8 = vcmp.eq.f32.partialorder %v5422_v45, 8.507059e+37  ;;  %v1908_v61 = vsel %vm5089_vm11, %v1907_v40, %v1903_v13  ;;  %v1928_v33 = vmul.f32 %v2761_v41, %v1927_v23  ;;  %v1956_v58 = vmul.f32 %v2765_v59, %v5076_v17  ;;  %vm1932_vm11 = vmor %vm1930_vm13, %vm1931_vm7 }
 0x1be   :  { %v2011_v4 = vmul.f32 %v1908_v61, %v5426_v53  ;;  %v1944_v32 = vadd.f32 %v2759_v35, %v1943_v39  ;;  %v1973_v7 = vmul.f32 %v2763_v26, %v1972_v63  ;;  %vm1976_vm9 = vweird.f32 %v2763_v26 }
 0x1bf   :  { %v1929_v1 = vadd.f32 %v2761_v41, %v1928_v33  ;;  %v1979_v29 = vand.u32 2147483647, %v5046_v28  ;;  %v1957_v36 = vsub.f32 1.0, %v1956_v58  ;;  %v1964_v15 = vand.u32 2147483647, %v5076_v17  ;;  %vm1977_vm12 = vmor %vm1975_vm1, %vm1976_vm9 }
 0x1c0   :  { %v2030_v3 = vpack.c.bf16 %v2012_v27, %v2011_v4  ;;  %v1948_v10 = vsel %vm1947_vm10, %v2759_v35, %v1944_v32  ;;  %v1974_v0 = vadd.f32 %v2763_v26, %v1973_v7  ;;  %v1966_v22 = vand.u32 2147483648, %v5076_v17 }
 0x1c1   :  { %v1953_v34 = vsel %vm5099_vm0, %v1952_v11, %v1948_v10  ;;  %v1933_v49 = vsel %vm1932_vm11, %v2761_v41, %v1929_v1  ;;  %v1958_v48 = vmul.f32 %v2765_v59, %v1957_v36  ;;  %vm1961_vm14 = vweird.f32 %v2765_v59 }
 0x1c2   :  { %2046 = vst [vmem:[#allocation2 + $0x68] sm:$0xff] %v2030_v3  ;;  %v1938_v47 = vsel %vm5104_vm2, %v1937_v24, %v1933_v49  ;;  %v1978_v40 = vsel %vm1977_vm12, %v2763_v26, %v1974_v0  ;;  %v1982_v35 = vor.u32 1.1754944e-38, %v1981_v31  ;;  %vm1960_vm13 = vweird.f32 %v5076_v17 }
 0x1c3   :  { %v2014_v56 = vmul.f32 %v1953_v34, %v5051_v52  ;;  %v2013_v21 = vmul.f32 %v1938_v47, %v4803_v6  ;;  %vm1980_vm15 = vcmp.eq.f32.partialorder %v1979_v29, 8.507059e+37  ;;  %v1959_v55 = vadd.f32 %v2765_v59, %v1958_v48  ;;  %vm1962_vm0 = vmor %vm1960_vm13, %vm1961_vm14 }
 0x1c4   :  { %v875_v28 = vor.u32 1.1754944e-38, %v874_v60  ;;  %v890_v41 = vor.u32 1.1754944e-38, %v889_v30  ;;  %v1983_v51 = vsel %vm1980_vm15, %v1982_v35, %v1978_v40  ;;  %v1967_v18 = vor.u32 1.1754944e-38, %v1966_v22 }
 0x1c5   :  { %vm888_vm2 = vcmp.eq.f32.partialorder %v887_v57, 8.507059e+37  ;;  %v2031_v11 = vpack.c.bf16 %v2014_v56, %v2013_v21  ;;  %v1963_v17 = vsel %vm1962_vm0, %v2765_v59, %v1959_v55  ;;  %vm1965_vm3 = vcmp.eq.f32.partialorder %v1964_v15, 8.507059e+37 }
 0x1c6   :  { %v876_v2 = vsel %vm5118_vm8, %v875_v28, %v871_v62  ;;  %v891_v60 = vsel %vm888_vm2, %v890_v41, %v886_v54  ;;  %v1968_v6 = vsel %vm1965_vm3, %v1967_v18, %v1963_v17 }
 0x1c7   :  { %2047 = vst [vmem:[#allocation2 + $0x70] sm:$0xff] %v2031_v11  ;;  %v2016_v19 = vmul.f32 %v1983_v51, %v891_v60  ;;  %v2015_v57 = vmul.f32 %v1968_v6, %v876_v2 }
 0x1c9   :  { %v2032_v52 = vpack.c.bf16 %v2016_v19, %v2015_v57 }
 0x1cb   :  { %2048 = vst [vmem:[#allocation2 + $0x78] sm:$0xff] %v2032_v52 }
 0x1cc   :  { %2061 = dma.vmem_to_hbm [thread:$0]  %s2054_s27, 2048, %s2056_s30, [#allocation3], %s2793_s5, %s2793_s5, %s2794_s6  }
 0x1cd   :  { %2790 = dma.done.wait [#allocation3], 2048  }
 0x1ce   :  { %2791 = vsyncadd [#allocation3], 4294965248 }
 0x1cf   :  { %2066 = vsyncpa [#allocation3], 1 }

</bundles_post_ra>
